<compile_context>
chip_gen: v5e
topology: v5e:2x2
jax: 0.10.0
libtpu: 0.0.40
codegen_flags: <defaults>
</compile_context>

<pallas_src>
import jax
import jax.numpy as jnp
from jax.experimental import pallas as pl
from jax.experimental.pallas import tpu as pltpu

EPS = 1e-5
LANES = 128                          # pad channel dims to a full lane width
VMEM_LIMIT_BYTES = 32 * 1024 * 1024


def _round_up(x, m):
    return (x + m - 1) // m * m


# ---------------------------------------------------------------------------
# Kernels
# ---------------------------------------------------------------------------
def _make_conv_kernel(fuse_bn_relu):
    """3x3 stride-1 pad-1 conv on one image + per-channel (sum, sumsq) partials.

    If fuse_bn_relu: the folded BN affine + ReLU of the *previous* layer is
    applied to the input tile on the fly (a = relu(x*scale + shift)) before
    the conv, so the bn1+relu activation never round-trips HBM.
    """
    def body(x_ref, st_ref, w_ref, y_ref, stats_ref, apad_ref, acc_ref):
        # x_ref    : (1, H, W, Cpi)        input image tile (f32 or bf16)
        # st_ref   : (2, Cpi) f32          folded BN [scale; shift] of the input
        # w_ref    : (9, Cpi, Cpo) bf16    taps (dy*3+dx), each (Cin, Cout)
        # y_ref    : (1, H, W, Cpo) bf16   raw conv output
        # stats_ref: (1, 2, Cpo) f32       per-image (sum, sumsq) over H*W rows
        # apad_ref : (H+2, W+2, Cpi) f32   scratch: spatially padded activation
        # acc_ref  : (H*W, Cpo) f32        scratch: MXU accumulator
        h, w, cpo = y_ref.shape[1], y_ref.shape[2], y_ref.shape[3]
        cpi = x_ref.shape[3]

        xv = x_ref[...].reshape(h * w, cpi).astype(jnp.float32)
        if fuse_bn_relu:
            st = st_ref[...]
            xv = jnp.maximum(xv * st[0:1, :] + st[1:2, :], 0.0)

        # Zero-padded activation lives only in VMEM (no im2col, no HBM pad).
        apad_ref[...] = jnp.zeros_like(apad_ref)
        apad_ref[1:h + 1, 1:w + 1, :] = xv.reshape(h, w, cpi)

        acc_ref[...] = jnp.zeros_like(acc_ref)
        for tap in range(9):                       # statically unrolled taps
            dy, dx = divmod(tap, 3)
            xs = apad_ref[dy:dy + h, dx:dx + w, :].reshape(h * w, cpi)
            acc_ref[...] += jnp.dot(xs.astype(jnp.bfloat16), w_ref[tap],
                                    preferred_element_type=jnp.float32)

        acc = acc_ref[...]
        y_ref[...] = acc.reshape(1, h, w, cpo).astype(y_ref.dtype)
        stats_ref[...] = jnp.concatenate(
            [jnp.sum(acc, axis=0, keepdims=True),
             jnp.sum(acc * acc, axis=0, keepdims=True)], axis=0)[None]

    if fuse_bn_relu:
        return body
    return lambda x_ref, w_ref, y_ref, stats_ref, apad_ref, acc_ref: body(
        x_ref, None, w_ref, y_ref, stats_ref, apad_ref, acc_ref)


def _bn_add_relu_kernel(y_ref, st_ref, res_ref, o_ref):
    """out = relu(y*scale + shift + residual)   (bn2 + identity + relu)."""
    h, w, cp = y_ref.shape[1], y_ref.shape[2], y_ref.shape[3]
    y = y_ref[...].reshape(h * w, cp).astype(jnp.float32)
    r = res_ref[...].reshape(h * w, cp)
    st = st_ref[...]
    o = jnp.maximum(y * st[0:1, :] + st[1:2, :] + r, 0.0)
    o_ref[...] = o.reshape(1, h, w, cp)


# ---------------------------------------------------------------------------
# pallas_call wrappers
# ---------------------------------------------------------------------------
def _compiler_params():
    return pltpu.CompilerParams(
        dimension_semantics=("parallel",),      # batch axis -> both TCs on v7x
        vmem_limit_bytes=VMEM_LIMIT_BYTES)


def _conv3x3_stats(x, w_packed, scale_shift=None):
    """Raw 3x3 conv (bf16 MXU, f32 acc) + per-image BN stat partials."""
    n, h, w, cpi = x.shape
    cpo = w_packed.shape[2]
    fuse = scale_shift is not None
    kernel = _make_conv_kernel(fuse)

    in_specs = [pl.BlockSpec((1, h, w, cpi), lambda i: (i, 0, 0, 0))]
    args = [x]
    if fuse:
        in_specs.append(pl.BlockSpec((2, cpi), lambda i: (0, 0)))
        args.append(scale_shift)
    # Constant block index -> weights stay resident in VMEM across grid steps.
    in_specs.append(pl.BlockSpec((9, cpi, cpo), lambda i: (0, 0, 0)))
    args.append(w_packed)

    y, stats = pl.pallas_call(
        kernel,
        grid=(n,),
        in_specs=in_specs,
        out_specs=(
            pl.BlockSpec((1, h, w, cpo), lambda i: (i, 0, 0, 0)),
            pl.BlockSpec((1, 2, cpo), lambda i: (i, 0, 0)),
        ),
        out_shape=(
            jax.ShapeDtypeStruct((n, h, w, cpo), jnp.bfloat16),
            jax.ShapeDtypeStruct((n, 2, cpo), jnp.float32),
        ),
        scratch_shapes=[
            pltpu.VMEM((h + 2, w + 2, cpi), jnp.float32),   # padded activation
            pltpu.VMEM((h * w, cpo), jnp.float32),          # MXU accumulator
        ],
        compiler_params=_compiler_params(),
    )(*args)
    return y, stats


def _bn_add_relu(y, scale_shift, residual):
    n, h, w, cp = y.shape
    return pl.pallas_call(
        _bn_add_relu_kernel,
        grid=(n,),
        in_specs=[
            pl.BlockSpec((1, h, w, cp), lambda i: (i, 0, 0, 0)),
            pl.BlockSpec((2, cp), lambda i: (0, 0)),
            pl.BlockSpec((1, h, w, cp), lambda i: (i, 0, 0, 0)),
        ],
        out_specs=pl.BlockSpec((1, h, w, cp), lambda i: (i, 0, 0, 0)),
        out_shape=jax.ShapeDtypeStruct((n, h, w, cp), jnp.float32),
        compiler_params=_compiler_params(),
    )(y, scale_shift, residual)


# ---------------------------------------------------------------------------
# Glue (layout, weight packing, BN folding) in plain JAX — all tiny ops
# ---------------------------------------------------------------------------
def _pack_weight(w_oihw, cpi, cpo):
    """(Cout, Cin, 3, 3) OIHW -> (9, Cpi, Cpo) bf16, tap index = dy*3 + dx."""
    co, ci, _, _ = w_oihw.shape
    w = jnp.transpose(w_oihw, (2, 3, 1, 0)).reshape(9, ci, co)
    w = jnp.pad(w, ((0, 0), (0, cpi - ci), (0, cpo - co)))
    return w.astype(jnp.bfloat16)


def _fold_bn(stats, gamma, beta, count, cp):
    """Fold batch-norm (training-mode batch stats) into a [scale; shift] pair."""
    tot = jnp.sum(stats, axis=0)                  # (2, cp) across image tiles
    mean = tot[0] / count
    var = tot[1] / count - mean * mean            # biased batch variance
    g = jnp.pad(gamma.astype(jnp.float32), (0, cp - gamma.shape[0]))
    b = jnp.pad(beta.astype(jnp.float32), (0, cp - beta.shape[0]))
    scale = g * jax.lax.rsqrt(var + EPS)          # padded channels: g=0 -> 0
    shift = b - mean * scale
    return jnp.stack([scale, shift], axis=0)      # (2, cp)


def basic_block_forward(x_nchw, params):
    n, c, h, w = x_nchw.shape
    cout = params["w1"].shape[0]
    assert params["w1"].shape[1] == c and cout == c, \
        "default BasicBlock config: in_channel == out_channel, no downsample"
    cpi = _round_up(c, LANES)
    cpo = _round_up(cout, LANES)

    # NHWC, channels zero-padded to a full 128-lane width. This single f32
    # array is both the conv1 input and the residual identity (no extra copy).
    x_nhwc = jnp.transpose(x_nchw, (0, 2, 3, 1)).astype(jnp.float32)
    x_pad = jnp.pad(x_nhwc, ((0, 0), (0, 0), (0, 0), (0, cpi - c)))

    w1p = _pack_weight(params["w1"], cpi, cpo)
    w2p = _pack_weight(params["w2"], cpo, cpo)
    count = n * h * w

    # conv1 (raw) + batch-stat partials
    y1, st1 = _conv3x3_stats(x_pad, w1p)
    ss1 = _fold_bn(st1, params["g1"], params["b1"], count, cpo)

    # bn1 + relu fused into conv2 (raw) + batch-stat partials
    y2, st2 = _conv3x3_stats(y1, w2p, ss1)
    ss2 = _fold_bn(st2, params["g2"], params["b2"], count, cpo)

    # bn2 + residual add (f32 identity) + relu
    out_pad = _bn_add_relu(y2, ss2, x_pad)

    return jnp.transpose(out_pad[..., :c], (0, 3, 1, 2))     # back to NCHW


# ---------------------------------------------------------------------------
# Pure-JAX reference (mirrors the PyTorch forward, training-mode BN, f32)
# ---------------------------------------------------------------------------
def ref_forward(x, params):
    def conv(x, w):
        return jax.lax.conv_general_dilated(
            x, w, window_strides=(1, 1), padding=((1, 1), (1, 1)),
            dimension_numbers=("NCHW", "OIHW", "NCHW"))

    def bn(y, g, b):
        mean = jnp.mean(y, axis=(0, 2, 3), keepdims=True)
        var = jnp.mean(jnp.square(y - mean), axis=(0, 2, 3), keepdims=True)
        yn = (y - mean) * jax.lax.rsqrt(var + EPS)
        return yn * g.reshape(1, -1, 1, 1) + b.reshape(1, -1, 1, 1)

    out = jax.nn.relu(bn(conv(x, params["w1"]), params["g1"], params["b1"]))
    out = bn(conv(out, params["w2"]), params["g2"], params["b2"]) + x
    return jax.nn.relu(out)


# ---------------------------------------------------------------------------
if __name__ == "__main__":
    key = jax.random.PRNGKey(0)
    N, C, H, W = 2, 4, 16, 16   # in_channel == out_channel, stride=1
    k_x, k_w1, k_w2, k_g1, k_b1, k_g2, k_b2 = jax.random.split(key, 7)

    x = jax.random.normal(k_x, (N, C, H, W), dtype=jnp.float32)
    params = {
        "w1": 0.1 * jax.random.normal(k_w1, (C, C, 3, 3), dtype=jnp.float32),
        "w2": 0.1 * jax.random.normal(k_w2, (C, C, 3, 3), dtype=jnp.float32),
        "g1": 1.0 + 0.1 * jax.random.normal(k_g1, (C,), dtype=jnp.float32),
        "b1": 0.1 * jax.random.normal(k_b1, (C,), dtype=jnp.float32),
        "g2": 1.0 + 0.1 * jax.random.normal(k_g2, (C,), dtype=jnp.float32),
        "b2": 0.1 * jax.random.normal(k_b2, (C,), dtype=jnp.float32),
    }

    fwd = jax.jit(basic_block_forward)
    out = jax.block_until_ready(fwd(x, params))
    ref = jax.block_until_ready(ref_forward(x, params))

    assert out.shape == (N, C, H, W)
    max_err = float(jnp.max(jnp.abs(out - ref)))
    # tolerance sized for bf16 MXU operands (f32 accumulation / BN / residual)
    assert jnp.allclose(out, ref, rtol=5e-2, atol=5e-2), \
        f"mismatch vs reference (max abs err {max_err})"
    print("KERNEL_OK")
</pallas_src>

<mosaic_0001>
module attributes {stable_mosaic.version = 11 : i64} {
  func.func @_lambda_(%arg0: i32, %arg1: memref<1x16x16x128xf32, #tpu.memory_space<vmem>>, %arg2: memref<9x128x128xbf16, #tpu.memory_space<vmem>>, %arg3: memref<1x16x16x128xbf16, #tpu.memory_space<vmem>>, %arg4: memref<1x2x128xf32, #tpu.memory_space<vmem>>, %arg5: memref<18x18x128xf32, #tpu.memory_space<vmem>>, %arg6: memref<256x128xf32, #tpu.memory_space<vmem>>) attributes {dimension_semantics = [#tpu.dimension_semantics<parallel>], iteration_bounds = array<i64: 2>, scalar_prefetch = 0 : i64, scratch_operands = 2 : i64, tpu.core_type = #tpu.core_type<tc>, window_params = [{transform_indices = @transform_0, window_bounds = array<i64: 1, 16, 16, 128>}, {pipeline_mode = #tpu.pipeline_mode<synchronous>, transform_indices = @transform_1, window_bounds = array<i64: 9, 128, 128>}, {transform_indices = @transform_2, window_bounds = array<i64: 1, 16, 16, 128>}, {transform_indices = @transform_3, window_bounds = array<i64: 1, 2, 128>}]} {
    %c0 = arith.constant 0 : index
    %c0_0 = arith.constant 0 : index
    %c0_1 = arith.constant 0 : index
    %c0_2 = arith.constant 0 : index
    %0 = vector.load %arg1[%c0, %c0_0, %c0_1, %c0_2] : memref<1x16x16x128xf32, #tpu.memory_space<vmem>>, vector<1x16x16x128xf32>
    %1 = vector.shape_cast %0 : vector<1x16x16x128xf32> to vector<256x128xf32>
    %cst = arith.constant 0.000000e+00 : f32
    %2 = vector.broadcast %cst : f32 to vector<18x18x128xf32>
    %c0_3 = arith.constant 0 : index
    %c0_4 = arith.constant 0 : index
    %c0_5 = arith.constant 0 : index
    %3 = vector.load %arg5[%c0_3, %c0_4, %c0_5] : memref<18x18x128xf32, #tpu.memory_space<vmem>>, vector<18x18x128xf32>
    tpu.vector_store %arg5[%c0_3, %c0_4, %c0_5], %2 {strides = array<i32>} : memref<18x18x128xf32, #tpu.memory_space<vmem>>, vector<18x18x128xf32>,
    %4 = vector.shape_cast %1 : vector<256x128xf32> to vector<16x16x128xf32>
    %c1 = arith.constant 1 : index
    %c1_6 = arith.constant 1 : index
    %c0_7 = arith.constant 0 : index
    %5 = vector.load %arg5[%c1, %c1_6, %c0_7] : memref<18x18x128xf32, #tpu.memory_space<vmem>>, vector<16x16x128xf32>
    tpu.vector_store %arg5[%c1, %c1_6, %c0_7], %4 {strides = array<i32>} : memref<18x18x128xf32, #tpu.memory_space<vmem>>, vector<16x16x128xf32>,
    %cst_8 = arith.constant 0.000000e+00 : f32
    %6 = vector.broadcast %cst_8 : f32 to vector<256x128xf32>
    %c0_9 = arith.constant 0 : index
    %c0_10 = arith.constant 0 : index
    %7 = vector.load %arg6[%c0_9, %c0_10] : memref<256x128xf32, #tpu.memory_space<vmem>>, vector<256x128xf32>
    tpu.vector_store %arg6[%c0_9, %c0_10], %6 {strides = array<i32>} : memref<256x128xf32, #tpu.memory_space<vmem>>, vector<256x128xf32>,
    %c0_11 = arith.constant 0 : index
    %c0_12 = arith.constant 0 : index
    %c0_13 = arith.constant 0 : index
    %8 = vector.load %arg5[%c0_11, %c0_12, %c0_13] : memref<18x18x128xf32, #tpu.memory_space<vmem>>, vector<16x16x128xf32>
    %9 = vector.shape_cast %8 : vector<16x16x128xf32> to vector<256x128xf32>
    %c0_14 = arith.constant 0 : index
    %c0_15 = arith.constant 0 : index
    %10 = vector.load %arg6[%c0_14, %c0_15] : memref<256x128xf32, #tpu.memory_space<vmem>>, vector<256x128xf32>
    %11 = arith.truncf %9 : vector<256x128xf32> to vector<256x128xbf16>
    %c0_16 = arith.constant 0 : index
    %c0_17 = arith.constant 0 : index
    %c0_18 = arith.constant 0 : index
    %12 = vector.load %arg2[%c0_16, %c0_17, %c0_18] : memref<9x128x128xbf16, #tpu.memory_space<vmem>>, vector<1x128x128xbf16>
    %13 = vector.shape_cast %12 : vector<1x128x128xbf16> to vector<128x128xbf16>
    %cst_19 = arith.constant dense<0.000000e+00> : vector<256x128xf32>
    %14 = tpu.matmul %11, %13, %cst_19 {dimension_numbers = #tpu.dot_dimension_numbers<[1], [0], [0], [1], [0, 0, 1, 1], [], []>} : vector<256x128xbf16>, vector<128x128xbf16>, vector<256x128xf32> -> vector<256x128xf32>
    %15 = arith.addf %10, %14 : vector<256x128xf32>
    %c0_20 = arith.constant 0 : index
    %c0_21 = arith.constant 0 : index
    %16 = vector.load %arg6[%c0_20, %c0_21] : memref<256x128xf32, #tpu.memory_space<vmem>>, vector<256x128xf32>
    tpu.vector_store %arg6[%c0_20, %c0_21], %15 {strides = array<i32>} : memref<256x128xf32, #tpu.memory_space<vmem>>, vector<256x128xf32>,
    %c0_22 = arith.constant 0 : index
    %c1_23 = arith.constant 1 : index
    %c0_24 = arith.constant 0 : index
    %17 = vector.load %arg5[%c0_22, %c1_23, %c0_24] : memref<18x18x128xf32, #tpu.memory_space<vmem>>, vector<16x16x128xf32>
    %18 = vector.shape_cast %17 : vector<16x16x128xf32> to vector<256x128xf32>
    %c0_25 = arith.constant 0 : index
    %c0_26 = arith.constant 0 : index
    %19 = vector.load %arg6[%c0_25, %c0_26] : memref<256x128xf32, #tpu.memory_space<vmem>>, vector<256x128xf32>
    %20 = arith.truncf %18 : vector<256x128xf32> to vector<256x128xbf16>
    %c1_27 = arith.constant 1 : index
    %c0_28 = arith.constant 0 : index
    %c0_29 = arith.constant 0 : index
    %21 = vector.load %arg2[%c1_27, %c0_28, %c0_29] : memref<9x128x128xbf16, #tpu.memory_space<vmem>>, vector<1x128x128xbf16>
    %22 = vector.shape_cast %21 : vector<1x128x128xbf16> to vector<128x128xbf16>
    %cst_30 = arith.constant dense<0.000000e+00> : vector<256x128xf32>
    %23 = tpu.matmul %20, %22, %cst_30 {dimension_numbers = #tpu.dot_dimension_numbers<[1], [0], [0], [1], [0, 0, 1, 1], [], []>} : vector<256x128xbf16>, vector<128x128xbf16>, vector<256x128xf32> -> vector<256x128xf32>
    %24 = arith.addf %19, %23 : vector<256x128xf32>
    %c0_31 = arith.constant 0 : index
    %c0_32 = arith.constant 0 : index
    %25 = vector.load %arg6[%c0_31, %c0_32] : memref<256x128xf32, #tpu.memory_space<vmem>>, vector<256x128xf32>
    tpu.vector_store %arg6[%c0_31, %c0_32], %24 {strides = array<i32>} : memref<256x128xf32, #tpu.memory_space<vmem>>, vector<256x128xf32>,
    %c0_33 = arith.constant 0 : index
    %c2 = arith.constant 2 : index
    %c0_34 = arith.constant 0 : index
    %26 = vector.load %arg5[%c0_33, %c2, %c0_34] : memref<18x18x128xf32, #tpu.memory_space<vmem>>, vector<16x16x128xf32>
    %27 = vector.shape_cast %26 : vector<16x16x128xf32> to vector<256x128xf32>
    %c0_35 = arith.constant 0 : index
    %c0_36 = arith.constant 0 : index
    %28 = vector.load %arg6[%c0_35, %c0_36] : memref<256x128xf32, #tpu.memory_space<vmem>>, vector<256x128xf32>
    %29 = arith.truncf %27 : vector<256x128xf32> to vector<256x128xbf16>
    %c2_37 = arith.constant 2 : index
    %c0_38 = arith.constant 0 : index
    %c0_39 = arith.constant 0 : index
    %30 = vector.load %arg2[%c2_37, %c0_38, %c0_39] : memref<9x128x128xbf16, #tpu.memory_space<vmem>>, vector<1x128x128xbf16>
    %31 = vector.shape_cast %30 : vector<1x128x128xbf16> to vector<128x128xbf16>
    %cst_40 = arith.constant dense<0.000000e+00> : vector<256x128xf32>
    %32 = tpu.matmul %29, %31, %cst_40 {dimension_numbers = #tpu.dot_dimension_numbers<[1], [0], [0], [1], [0, 0, 1, 1], [], []>} : vector<256x128xbf16>, vector<128x128xbf16>, vector<256x128xf32> -> vector<256x128xf32>
    %33 = arith.addf %28, %32 : vector<256x128xf32>
    %c0_41 = arith.constant 0 : index
    %c0_42 = arith.constant 0 : index
    %34 = vector.load %arg6[%c0_41, %c0_42] : memref<256x128xf32, #tpu.memory_space<vmem>>, vector<256x128xf32>
    tpu.vector_store %arg6[%c0_41, %c0_42], %33 {strides = array<i32>} : memref<256x128xf32, #tpu.memory_space<vmem>>, vector<256x128xf32>,
    %c1_43 = arith.constant 1 : index
    %c0_44 = arith.constant 0 : index
    %c0_45 = arith.constant 0 : index
    %35 = vector.load %arg5[%c1_43, %c0_44, %c0_45] : memref<18x18x128xf32, #tpu.memory_space<vmem>>, vector<16x16x128xf32>
    %36 = vector.shape_cast %35 : vector<16x16x128xf32> to vector<256x128xf32>
    %c0_46 = arith.constant 0 : index
    %c0_47 = arith.constant 0 : index
    %37 = vector.load %arg6[%c0_46, %c0_47] : memref<256x128xf32, #tpu.memory_space<vmem>>, vector<256x128xf32>
    %38 = arith.truncf %36 : vector<256x128xf32> to vector<256x128xbf16>
    %c3 = arith.constant 3 : index
    %c0_48 = arith.constant 0 : index
    %c0_49 = arith.constant 0 : index
    %39 = vector.load %arg2[%c3, %c0_48, %c0_49] : memref<9x128x128xbf16, #tpu.memory_space<vmem>>, vector<1x128x128xbf16>
    %40 = vector.shape_cast %39 : vector<1x128x128xbf16> to vector<128x128xbf16>
    %cst_50 = arith.constant dense<0.000000e+00> : vector<256x128xf32>
    %41 = tpu.matmul %38, %40, %cst_50 {dimension_numbers = #tpu.dot_dimension_numbers<[1], [0], [0], [1], [0, 0, 1, 1], [], []>} : vector<256x128xbf16>, vector<128x128xbf16>, vector<256x128xf32> -> vector<256x128xf32>
    %42 = arith.addf %37, %41 : vector<256x128xf32>
    %c0_51 = arith.constant 0 : index
    %c0_52 = arith.constant 0 : index
    %43 = vector.load %arg6[%c0_51, %c0_52] : memref<256x128xf32, #tpu.memory_space<vmem>>, vector<256x128xf32>
    tpu.vector_store %arg6[%c0_51, %c0_52], %42 {strides = array<i32>} : memref<256x128xf32, #tpu.memory_space<vmem>>, vector<256x128xf32>,
    %c1_53 = arith.constant 1 : index
    %c1_54 = arith.constant 1 : index
    %c0_55 = arith.constant 0 : index
    %44 = vector.load %arg5[%c1_53, %c1_54, %c0_55] : memref<18x18x128xf32, #tpu.memory_space<vmem>>, vector<16x16x128xf32>
    %45 = vector.shape_cast %44 : vector<16x16x128xf32> to vector<256x128xf32>
    %c0_56 = arith.constant 0 : index
    %c0_57 = arith.constant 0 : index
    %46 = vector.load %arg6[%c0_56, %c0_57] : memref<256x128xf32, #tpu.memory_space<vmem>>, vector<256x128xf32>
    %47 = arith.truncf %45 : vector<256x128xf32> to vector<256x128xbf16>
    %c4 = arith.constant 4 : index
    %c0_58 = arith.constant 0 : index
    %c0_59 = arith.constant 0 : index
    %48 = vector.load %arg2[%c4, %c0_58, %c0_59] : memref<9x128x128xbf16, #tpu.memory_space<vmem>>, vector<1x128x128xbf16>
    %49 = vector.shape_cast %48 : vector<1x128x128xbf16> to vector<128x128xbf16>
    %cst_60 = arith.constant dense<0.000000e+00> : vector<256x128xf32>
    %50 = tpu.matmul %47, %49, %cst_60 {dimension_numbers = #tpu.dot_dimension_numbers<[1], [0], [0], [1], [0, 0, 1, 1], [], []>} : vector<256x128xbf16>, vector<128x128xbf16>, vector<256x128xf32> -> vector<256x128xf32>
    %51 = arith.addf %46, %50 : vector<256x128xf32>
    %c0_61 = arith.constant 0 : index
    %c0_62 = arith.constant 0 : index
    %52 = vector.load %arg6[%c0_61, %c0_62] : memref<256x128xf32, #tpu.memory_space<vmem>>, vector<256x128xf32>
    tpu.vector_store %arg6[%c0_61, %c0_62], %51 {strides = array<i32>} : memref<256x128xf32, #tpu.memory_space<vmem>>, vector<256x128xf32>,
    %c1_63 = arith.constant 1 : index
    %c2_64 = arith.constant 2 : index
    %c0_65 = arith.constant 0 : index
    %53 = vector.load %arg5[%c1_63, %c2_64, %c0_65] : memref<18x18x128xf32, #tpu.memory_space<vmem>>, vector<16x16x128xf32>
    %54 = vector.shape_cast %53 : vector<16x16x128xf32> to vector<256x128xf32>
    %c0_66 = arith.constant 0 : index
    %c0_67 = arith.constant 0 : index
    %55 = vector.load %arg6[%c0_66, %c0_67] : memref<256x128xf32, #tpu.memory_space<vmem>>, vector<256x128xf32>
    %56 = arith.truncf %54 : vector<256x128xf32> to vector<256x128xbf16>
    %c5 = arith.constant 5 : index
    %c0_68 = arith.constant 0 : index
    %c0_69 = arith.constant 0 : index
    %57 = vector.load %arg2[%c5, %c0_68, %c0_69] : memref<9x128x128xbf16, #tpu.memory_space<vmem>>, vector<1x128x128xbf16>
    %58 = vector.shape_cast %57 : vector<1x128x128xbf16> to vector<128x128xbf16>
    %cst_70 = arith.constant dense<0.000000e+00> : vector<256x128xf32>
    %59 = tpu.matmul %56, %58, %cst_70 {dimension_numbers = #tpu.dot_dimension_numbers<[1], [0], [0], [1], [0, 0, 1, 1], [], []>} : vector<256x128xbf16>, vector<128x128xbf16>, vector<256x128xf32> -> vector<256x128xf32>
    %60 = arith.addf %55, %59 : vector<256x128xf32>
    %c0_71 = arith.constant 0 : index
    %c0_72 = arith.constant 0 : index
    %61 = vector.load %arg6[%c0_71, %c0_72] : memref<256x128xf32, #tpu.memory_space<vmem>>, vector<256x128xf32>
    tpu.vector_store %arg6[%c0_71, %c0_72], %60 {strides = array<i32>} : memref<256x128xf32, #tpu.memory_space<vmem>>, vector<256x128xf32>,
    %c2_73 = arith.constant 2 : index
    %c0_74 = arith.constant 0 : index
    %c0_75 = arith.constant 0 : index
    %62 = vector.load %arg5[%c2_73, %c0_74, %c0_75] : memref<18x18x128xf32, #tpu.memory_space<vmem>>, vector<16x16x128xf32>
    %63 = vector.shape_cast %62 : vector<16x16x128xf32> to vector<256x128xf32>
    %c0_76 = arith.constant 0 : index
    %c0_77 = arith.constant 0 : index
    %64 = vector.load %arg6[%c0_76, %c0_77] : memref<256x128xf32, #tpu.memory_space<vmem>>, vector<256x128xf32>
    %65 = arith.truncf %63 : vector<256x128xf32> to vector<256x128xbf16>
    %c6 = arith.constant 6 : index
    %c0_78 = arith.constant 0 : index
    %c0_79 = arith.constant 0 : index
    %66 = vector.load %arg2[%c6, %c0_78, %c0_79] : memref<9x128x128xbf16, #tpu.memory_space<vmem>>, vector<1x128x128xbf16>
    %67 = vector.shape_cast %66 : vector<1x128x128xbf16> to vector<128x128xbf16>
    %cst_80 = arith.constant dense<0.000000e+00> : vector<256x128xf32>
    %68 = tpu.matmul %65, %67, %cst_80 {dimension_numbers = #tpu.dot_dimension_numbers<[1], [0], [0], [1], [0, 0, 1, 1], [], []>} : vector<256x128xbf16>, vector<128x128xbf16>, vector<256x128xf32> -> vector<256x128xf32>
    %69 = arith.addf %64, %68 : vector<256x128xf32>
    %c0_81 = arith.constant 0 : index
    %c0_82 = arith.constant 0 : index
    %70 = vector.load %arg6[%c0_81, %c0_82] : memref<256x128xf32, #tpu.memory_space<vmem>>, vector<256x128xf32>
    tpu.vector_store %arg6[%c0_81, %c0_82], %69 {strides = array<i32>} : memref<256x128xf32, #tpu.memory_space<vmem>>, vector<256x128xf32>,
    %c2_83 = arith.constant 2 : index
    %c1_84 = arith.constant 1 : index
    %c0_85 = arith.constant 0 : index
    %71 = vector.load %arg5[%c2_83, %c1_84, %c0_85] : memref<18x18x128xf32, #tpu.memory_space<vmem>>, vector<16x16x128xf32>
    %72 = vector.shape_cast %71 : vector<16x16x128xf32> to vector<256x128xf32>
    %c0_86 = arith.constant 0 : index
    %c0_87 = arith.constant 0 : index
    %73 = vector.load %arg6[%c0_86, %c0_87] : memref<256x128xf32, #tpu.memory_space<vmem>>, vector<256x128xf32>
    %74 = arith.truncf %72 : vector<256x128xf32> to vector<256x128xbf16>
    %c7 = arith.constant 7 : index
    %c0_88 = arith.constant 0 : index
    %c0_89 = arith.constant 0 : index
    %75 = vector.load %arg2[%c7, %c0_88, %c0_89] : memref<9x128x128xbf16, #tpu.memory_space<vmem>>, vector<1x128x128xbf16>
    %76 = vector.shape_cast %75 : vector<1x128x128xbf16> to vector<128x128xbf16>
    %cst_90 = arith.constant dense<0.000000e+00> : vector<256x128xf32>
    %77 = tpu.matmul %74, %76, %cst_90 {dimension_numbers = #tpu.dot_dimension_numbers<[1], [0], [0], [1], [0, 0, 1, 1], [], []>} : vector<256x128xbf16>, vector<128x128xbf16>, vector<256x128xf32> -> vector<256x128xf32>
    %78 = arith.addf %73, %77 : vector<256x128xf32>
    %c0_91 = arith.constant 0 : index
    %c0_92 = arith.constant 0 : index
    %79 = vector.load %arg6[%c0_91, %c0_92] : memref<256x128xf32, #tpu.memory_space<vmem>>, vector<256x128xf32>
    tpu.vector_store %arg6[%c0_91, %c0_92], %78 {strides = array<i32>} : memref<256x128xf32, #tpu.memory_space<vmem>>, vector<256x128xf32>,
    %c2_93 = arith.constant 2 : index
    %c2_94 = arith.constant 2 : index
    %c0_95 = arith.constant 0 : index
    %80 = vector.load %arg5[%c2_93, %c2_94, %c0_95] : memref<18x18x128xf32, #tpu.memory_space<vmem>>, vector<16x16x128xf32>
    %81 = vector.shape_cast %80 : vector<16x16x128xf32> to vector<256x128xf32>
    %c0_96 = arith.constant 0 : index
    %c0_97 = arith.constant 0 : index
    %82 = vector.load %arg6[%c0_96, %c0_97] : memref<256x128xf32, #tpu.memory_space<vmem>>, vector<256x128xf32>
    %83 = arith.truncf %81 : vector<256x128xf32> to vector<256x128xbf16>
    %c8 = arith.constant 8 : index
    %c0_98 = arith.constant 0 : index
    %c0_99 = arith.constant 0 : index
    %84 = vector.load %arg2[%c8, %c0_98, %c0_99] : memref<9x128x128xbf16, #tpu.memory_space<vmem>>, vector<1x128x128xbf16>
    %85 = vector.shape_cast %84 : vector<1x128x128xbf16> to vector<128x128xbf16>
    %cst_100 = arith.constant dense<0.000000e+00> : vector<256x128xf32>
    %86 = tpu.matmul %83, %85, %cst_100 {dimension_numbers = #tpu.dot_dimension_numbers<[1], [0], [0], [1], [0, 0, 1, 1], [], []>} : vector<256x128xbf16>, vector<128x128xbf16>, vector<256x128xf32> -> vector<256x128xf32>
    %87 = arith.addf %82, %86 : vector<256x128xf32>
    %c0_101 = arith.constant 0 : index
    %c0_102 = arith.constant 0 : index
    %88 = vector.load %arg6[%c0_101, %c0_102] : memref<256x128xf32, #tpu.memory_space<vmem>>, vector<256x128xf32>
    tpu.vector_store %arg6[%c0_101, %c0_102], %87 {strides = array<i32>} : memref<256x128xf32, #tpu.memory_space<vmem>>, vector<256x128xf32>,
    %c0_103 = arith.constant 0 : index
    %c0_104 = arith.constant 0 : index
    %89 = vector.load %arg6[%c0_103, %c0_104] : memref<256x128xf32, #tpu.memory_space<vmem>>, vector<256x128xf32>
    %90 = vector.shape_cast %89 : vector<256x128xf32> to vector<1x16x16x128xf32>
    %91 = arith.truncf %90 : vector<1x16x16x128xf32> to vector<1x16x16x128xbf16>
    %c0_105 = arith.constant 0 : index
    %c0_106 = arith.constant 0 : index
    %c0_107 = arith.constant 0 : index
    %c0_108 = arith.constant 0 : index
    %92 = vector.load %arg3[%c0_105, %c0_106, %c0_107, %c0_108] : memref<1x16x16x128xbf16, #tpu.memory_space<vmem>>, vector<1x16x16x128xbf16>
    tpu.vector_store %arg3[%c0_105, %c0_106, %c0_107, %c0_108], %91 {strides = array<i32>} : memref<1x16x16x128xbf16, #tpu.memory_space<vmem>>, vector<1x16x16x128xbf16>,
    %cst_109 = arith.constant dense<0.000000e+00> : vector<128xf32>
    %93 = vector.multi_reduction <add>, %89, %cst_109 [0] : vector<256x128xf32> to vector<128xf32>
    %94 = vector.shape_cast %93 : vector<128xf32> to vector<1x128xf32>
    %95 = arith.mulf %89, %89 : vector<256x128xf32>
    %cst_110 = arith.constant dense<0.000000e+00> : vector<128xf32>
    %96 = vector.multi_reduction <add>, %95, %cst_110 [0] : vector<256x128xf32> to vector<128xf32>
    %97 = vector.shape_cast %96 : vector<128xf32> to vector<1x128xf32>
    %98 = tpu.concatenate %94, %97 in 0 : vector<1x128xf32>, vector<1x128xf32> -> vector<2x128xf32>
    %99 = vector.shape_cast %98 : vector<2x128xf32> to vector<1x2x128xf32>
    %c0_111 = arith.constant 0 : index
    %c0_112 = arith.constant 0 : index
    %c0_113 = arith.constant 0 : index
    %100 = vector.load %arg4[%c0_111, %c0_112, %c0_113] : memref<1x2x128xf32, #tpu.memory_space<vmem>>, vector<1x2x128xf32>
    tpu.vector_store %arg4[%c0_111, %c0_112, %c0_113], %99 {strides = array<i32>} : memref<1x2x128xf32, #tpu.memory_space<vmem>>, vector<1x2x128xf32>,
    return
  }
  func.func @transform_0(%arg0: i32) -> (i32, i32, i32, i32) {
    %c0_i32 = arith.constant 0 : i32
    %c0_i32_0 = arith.constant 0 : i32
    %c0_i32_1 = arith.constant 0 : i32
    %c0_i32_2 = arith.constant 0 : i32
    return %arg0, %c0_i32, %c0_i32_0, %c0_i32_1 : i32, i32, i32, i32
  }
  func.func @transform_1(%arg0: i32) -> (i32, i32, i32) {
    %c0_i32 = arith.constant 0 : i32
    %c0_i32_0 = arith.constant 0 : i32
    %c0_i32_1 = arith.constant 0 : i32
    %c0_i32_2 = arith.constant 0 : i32
    return %c0_i32, %c0_i32_0, %c0_i32_1 : i32, i32, i32
  }
  func.func @transform_2(%arg0: i32) -> (i32, i32, i32, i32) {
    %c0_i32 = arith.constant 0 : i32
    %c0_i32_0 = arith.constant 0 : i32
    %c0_i32_1 = arith.constant 0 : i32
    %c0_i32_2 = arith.constant 0 : i32
    return %arg0, %c0_i32, %c0_i32_0, %c0_i32_1 : i32, i32, i32, i32
  }
  func.func @transform_3(%arg0: i32) -> (i32, i32, i32) {
    %c0_i32 = arith.constant 0 : i32
    %c0_i32_0 = arith.constant 0 : i32
    %c0_i32_1 = arith.constant 0 : i32
    return %arg0, %c0_i32, %c0_i32_0 : i32, i32, i32
  }
}

module attributes {stable_mosaic.version = 11 : i64} {
  func.func @_bn_add_relu_kernel(%arg0: i32, %arg1: memref<1x16x16x128xbf16, #tpu.memory_space<vmem>>, %arg2: memref<2x128xf32, #tpu.memory_space<vmem>>, %arg3: memref<1x16x16x128xf32, #tpu.memory_space<vmem>>, %arg4: memref<1x16x16x128xf32, #tpu.memory_space<vmem>>) attributes {dimension_semantics = [#tpu.dimension_semantics<parallel>], iteration_bounds = array<i64: 2>, scalar_prefetch = 0 : i64, scratch_operands = 0 : i64, tpu.core_type = #tpu.core_type<tc>, window_params = [{transform_indices = @transform_0, window_bounds = array<i64: 1, 16, 16, 128>}, {pipeline_mode = #tpu.pipeline_mode<synchronous>, transform_indices = @transform_1, window_bounds = array<i64: 2, 128>}, {transform_indices = @transform_2, window_bounds = array<i64: 1, 16, 16, 128>}, {transform_indices = @transform_3, window_bounds = array<i64: 1, 16, 16, 128>}]} {
    %c0 = arith.constant 0 : index
    %c0_0 = arith.constant 0 : index
    %c0_1 = arith.constant 0 : index
    %c0_2 = arith.constant 0 : index
    %0 = vector.load %arg1[%c0, %c0_0, %c0_1, %c0_2] : memref<1x16x16x128xbf16, #tpu.memory_space<vmem>>, vector<1x16x16x128xbf16>
    %1 = vector.shape_cast %0 : vector<1x16x16x128xbf16> to vector<256x128xbf16>
    %2 = arith.extf %1 : vector<256x128xbf16> to vector<256x128xf32>
    %c0_3 = arith.constant 0 : index
    %c0_4 = arith.constant 0 : index
    %c0_5 = arith.constant 0 : index
    %c0_6 = arith.constant 0 : index
    %3 = vector.load %arg3[%c0_3, %c0_4, %c0_5, %c0_6] : memref<1x16x16x128xf32, #tpu.memory_space<vmem>>, vector<1x16x16x128xf32>
    %4 = vector.shape_cast %3 : vector<1x16x16x128xf32> to vector<256x128xf32>
    %c0_7 = arith.constant 0 : index
    %c0_8 = arith.constant 0 : index
    %5 = vector.load %arg2[%c0_7, %c0_8] : memref<2x128xf32, #tpu.memory_space<vmem>>, vector<2x128xf32>
    %6 = vector.extract_strided_slice %5 {offsets = [0, 0], sizes = [1, 128], strides = [1, 1]} : vector<2x128xf32> to vector<1x128xf32>
    %7 = vector.broadcast %6 : vector<1x128xf32> to vector<256x128xf32>
    %8 = arith.mulf %2, %7 : vector<256x128xf32>
    %9 = vector.extract_strided_slice %5 {offsets = [1, 0], sizes = [1, 128], strides = [1, 1]} : vector<2x128xf32> to vector<1x128xf32>
    %10 = vector.broadcast %9 : vector<1x128xf32> to vector<256x128xf32>
    %11 = arith.addf %8, %10 : vector<256x128xf32>
    %12 = arith.addf %11, %4 : vector<256x128xf32>
    %cst = arith.constant 0.000000e+00 : f32
    %13 = vector.broadcast %cst : f32 to vector<256x128xf32>
    %14 = arith.maximumf %12, %13 : vector<256x128xf32>
    %15 = vector.shape_cast %14 : vector<256x128xf32> to vector<1x16x16x128xf32>
    %c0_9 = arith.constant 0 : index
    %c0_10 = arith.constant 0 : index
    %c0_11 = arith.constant 0 : index
    %c0_12 = arith.constant 0 : index
    %16 = vector.load %arg4[%c0_9, %c0_10, %c0_11, %c0_12] : memref<1x16x16x128xf32, #tpu.memory_space<vmem>>, vector<1x16x16x128xf32>
    tpu.vector_store %arg4[%c0_9, %c0_10, %c0_11, %c0_12], %15 {strides = array<i32>} : memref<1x16x16x128xf32, #tpu.memory_space<vmem>>, vector<1x16x16x128xf32>,
    return
  }
  func.func @transform_0(%arg0: i32) -> (i32, i32, i32, i32) {
    %c0_i32 = arith.constant 0 : i32
    %c0_i32_0 = arith.constant 0 : i32
    %c0_i32_1 = arith.constant 0 : i32
    %c0_i32_2 = arith.constant 0 : i32
    return %arg0, %c0_i32, %c0_i32_0, %c0_i32_1 : i32, i32, i32, i32
  }
  func.func @transform_1(%arg0: i32) -> (i32, i32) {
    %c0_i32 = arith.constant 0 : i32
    %c0_i32_0 = arith.constant 0 : i32
    %c0_i32_1 = arith.constant 0 : i32
    return %c0_i32, %c0_i32_0 : i32, i32
  }
  func.func @transform_2(%arg0: i32) -> (i32, i32, i32, i32) {
    %c0_i32 = arith.constant 0 : i32
    %c0_i32_0 = arith.constant 0 : i32
    %c0_i32_1 = arith.constant 0 : i32
    %c0_i32_2 = arith.constant 0 : i32
    return %arg0, %c0_i32, %c0_i32_0, %c0_i32_1 : i32, i32, i32, i32
  }
  func.func @transform_3(%arg0: i32) -> (i32, i32, i32, i32) {
    %c0_i32 = arith.constant 0 : i32
    %c0_i32_0 = arith.constant 0 : i32
    %c0_i32_1 = arith.constant 0 : i32
    %c0_i32_2 = arith.constant 0 : i32
    return %arg0, %c0_i32, %c0_i32_0, %c0_i32_1 : i32, i32, i32, i32
  }
}

module attributes {stable_mosaic.version = 11 : i64} {
  func.func @body(%arg0: i32, %arg1: memref<1x16x16x128xbf16, #tpu.memory_space<vmem>>, %arg2: memref<2x128xf32, #tpu.memory_space<vmem>>, %arg3: memref<9x128x128xbf16, #tpu.memory_space<vmem>>, %arg4: memref<1x16x16x128xbf16, #tpu.memory_space<vmem>>, %arg5: memref<1x2x128xf32, #tpu.memory_space<vmem>>, %arg6: memref<18x18x128xf32, #tpu.memory_space<vmem>>, %arg7: memref<256x128xf32, #tpu.memory_space<vmem>>) attributes {dimension_semantics = [#tpu.dimension_semantics<parallel>], iteration_bounds = array<i64: 2>, scalar_prefetch = 0 : i64, scratch_operands = 2 : i64, tpu.core_type = #tpu.core_type<tc>, window_params = [{transform_indices = @transform_0, window_bounds = array<i64: 1, 16, 16, 128>}, {pipeline_mode = #tpu.pipeline_mode<synchronous>, transform_indices = @transform_1, window_bounds = array<i64: 2, 128>}, {pipeline_mode = #tpu.pipeline_mode<synchronous>, transform_indices = @transform_2, window_bounds = array<i64: 9, 128, 128>}, {transform_indices = @transform_3, window_bounds = array<i64: 1, 16, 16, 128>}, {transform_indices = @transform_4, window_bounds = array<i64: 1, 2, 128>}]} {
    %c0 = arith.constant 0 : index
    %c0_0 = arith.constant 0 : index
    %c0_1 = arith.constant 0 : index
    %c0_2 = arith.constant 0 : index
    %0 = vector.load %arg1[%c0, %c0_0, %c0_1, %c0_2] : memref<1x16x16x128xbf16, #tpu.memory_space<vmem>>, vector<1x16x16x128xbf16>
    %1 = vector.shape_cast %0 : vector<1x16x16x128xbf16> to vector<256x128xbf16>
    %2 = arith.extf %1 : vector<256x128xbf16> to vector<256x128xf32>
    %c0_3 = arith.constant 0 : index
    %c0_4 = arith.constant 0 : index
    %3 = vector.load %arg2[%c0_3, %c0_4] : memref<2x128xf32, #tpu.memory_space<vmem>>, vector<2x128xf32>
    %4 = vector.extract_strided_slice %3 {offsets = [0, 0], sizes = [1, 128], strides = [1, 1]} : vector<2x128xf32> to vector<1x128xf32>
    %5 = vector.broadcast %4 : vector<1x128xf32> to vector<256x128xf32>
    %6 = arith.mulf %2, %5 : vector<256x128xf32>
    %7 = vector.extract_strided_slice %3 {offsets = [1, 0], sizes = [1, 128], strides = [1, 1]} : vector<2x128xf32> to vector<1x128xf32>
    %8 = vector.broadcast %7 : vector<1x128xf32> to vector<256x128xf32>
    %9 = arith.addf %6, %8 : vector<256x128xf32>
    %cst = arith.constant 0.000000e+00 : f32
    %10 = vector.broadcast %cst : f32 to vector<256x128xf32>
    %11 = arith.maximumf %9, %10 : vector<256x128xf32>
    %cst_5 = arith.constant 0.000000e+00 : f32
    %12 = vector.broadcast %cst_5 : f32 to vector<18x18x128xf32>
    %c0_6 = arith.constant 0 : index
    %c0_7 = arith.constant 0 : index
    %c0_8 = arith.constant 0 : index
    %13 = vector.load %arg6[%c0_6, %c0_7, %c0_8] : memref<18x18x128xf32, #tpu.memory_space<vmem>>, vector<18x18x128xf32>
    tpu.vector_store %arg6[%c0_6, %c0_7, %c0_8], %12 {strides = array<i32>} : memref<18x18x128xf32, #tpu.memory_space<vmem>>, vector<18x18x128xf32>,
    %14 = vector.shape_cast %11 : vector<256x128xf32> to vector<16x16x128xf32>
    %c1 = arith.constant 1 : index
    %c1_9 = arith.constant 1 : index
    %c0_10 = arith.constant 0 : index
    %15 = vector.load %arg6[%c1, %c1_9, %c0_10] : memref<18x18x128xf32, #tpu.memory_space<vmem>>, vector<16x16x128xf32>
    tpu.vector_store %arg6[%c1, %c1_9, %c0_10], %14 {strides = array<i32>} : memref<18x18x128xf32, #tpu.memory_space<vmem>>, vector<16x16x128xf32>,
    %cst_11 = arith.constant 0.000000e+00 : f32
    %16 = vector.broadcast %cst_11 : f32 to vector<256x128xf32>
    %c0_12 = arith.constant 0 : index
    %c0_13 = arith.constant 0 : index
    %17 = vector.load %arg7[%c0_12, %c0_13] : memref<256x128xf32, #tpu.memory_space<vmem>>, vector<256x128xf32>
    tpu.vector_store %arg7[%c0_12, %c0_13], %16 {strides = array<i32>} : memref<256x128xf32, #tpu.memory_space<vmem>>, vector<256x128xf32>,
    %c0_14 = arith.constant 0 : index
    %c0_15 = arith.constant 0 : index
    %c0_16 = arith.constant 0 : index
    %18 = vector.load %arg6[%c0_14, %c0_15, %c0_16] : memref<18x18x128xf32, #tpu.memory_space<vmem>>, vector<16x16x128xf32>
    %19 = vector.shape_cast %18 : vector<16x16x128xf32> to vector<256x128xf32>
    %c0_17 = arith.constant 0 : index
    %c0_18 = arith.constant 0 : index
    %20 = vector.load %arg7[%c0_17, %c0_18] : memref<256x128xf32, #tpu.memory_space<vmem>>, vector<256x128xf32>
    %21 = arith.truncf %19 : vector<256x128xf32> to vector<256x128xbf16>
    %c0_19 = arith.constant 0 : index
    %c0_20 = arith.constant 0 : index
    %c0_21 = arith.constant 0 : index
    %22 = vector.load %arg3[%c0_19, %c0_20, %c0_21] : memref<9x128x128xbf16, #tpu.memory_space<vmem>>, vector<1x128x128xbf16>
    %23 = vector.shape_cast %22 : vector<1x128x128xbf16> to vector<128x128xbf16>
    %cst_22 = arith.constant dense<0.000000e+00> : vector<256x128xf32>
    %24 = tpu.matmul %21, %23, %cst_22 {dimension_numbers = #tpu.dot_dimension_numbers<[1], [0], [0], [1], [0, 0, 1, 1], [], []>} : vector<256x128xbf16>, vector<128x128xbf16>, vector<256x128xf32> -> vector<256x128xf32>
    %25 = arith.addf %20, %24 : vector<256x128xf32>
    %c0_23 = arith.constant 0 : index
    %c0_24 = arith.constant 0 : index
    %26 = vector.load %arg7[%c0_23, %c0_24] : memref<256x128xf32, #tpu.memory_space<vmem>>, vector<256x128xf32>
    tpu.vector_store %arg7[%c0_23, %c0_24], %25 {strides = array<i32>} : memref<256x128xf32, #tpu.memory_space<vmem>>, vector<256x128xf32>,
    %c0_25 = arith.constant 0 : index
    %c1_26 = arith.constant 1 : index
    %c0_27 = arith.constant 0 : index
    %27 = vector.load %arg6[%c0_25, %c1_26, %c0_27] : memref<18x18x128xf32, #tpu.memory_space<vmem>>, vector<16x16x128xf32>
    %28 = vector.shape_cast %27 : vector<16x16x128xf32> to vector<256x128xf32>
    %c0_28 = arith.constant 0 : index
    %c0_29 = arith.constant 0 : index
    %29 = vector.load %arg7[%c0_28, %c0_29] : memref<256x128xf32, #tpu.memory_space<vmem>>, vector<256x128xf32>
    %30 = arith.truncf %28 : vector<256x128xf32> to vector<256x128xbf16>
    %c1_30 = arith.constant 1 : index
    %c0_31 = arith.constant 0 : index
    %c0_32 = arith.constant 0 : index
    %31 = vector.load %arg3[%c1_30, %c0_31, %c0_32] : memref<9x128x128xbf16, #tpu.memory_space<vmem>>, vector<1x128x128xbf16>
    %32 = vector.shape_cast %31 : vector<1x128x128xbf16> to vector<128x128xbf16>
    %cst_33 = arith.constant dense<0.000000e+00> : vector<256x128xf32>
    %33 = tpu.matmul %30, %32, %cst_33 {dimension_numbers = #tpu.dot_dimension_numbers<[1], [0], [0], [1], [0, 0, 1, 1], [], []>} : vector<256x128xbf16>, vector<128x128xbf16>, vector<256x128xf32> -> vector<256x128xf32>
    %34 = arith.addf %29, %33 : vector<256x128xf32>
    %c0_34 = arith.constant 0 : index
    %c0_35 = arith.constant 0 : index
    %35 = vector.load %arg7[%c0_34, %c0_35] : memref<256x128xf32, #tpu.memory_space<vmem>>, vector<256x128xf32>
    tpu.vector_store %arg7[%c0_34, %c0_35], %34 {strides = array<i32>} : memref<256x128xf32, #tpu.memory_space<vmem>>, vector<256x128xf32>,
    %c0_36 = arith.constant 0 : index
    %c2 = arith.constant 2 : index
    %c0_37 = arith.constant 0 : index
    %36 = vector.load %arg6[%c0_36, %c2, %c0_37] : memref<18x18x128xf32, #tpu.memory_space<vmem>>, vector<16x16x128xf32>
    %37 = vector.shape_cast %36 : vector<16x16x128xf32> to vector<256x128xf32>
    %c0_38 = arith.constant 0 : index
    %c0_39 = arith.constant 0 : index
    %38 = vector.load %arg7[%c0_38, %c0_39] : memref<256x128xf32, #tpu.memory_space<vmem>>, vector<256x128xf32>
    %39 = arith.truncf %37 : vector<256x128xf32> to vector<256x128xbf16>
    %c2_40 = arith.constant 2 : index
    %c0_41 = arith.constant 0 : index
    %c0_42 = arith.constant 0 : index
    %40 = vector.load %arg3[%c2_40, %c0_41, %c0_42] : memref<9x128x128xbf16, #tpu.memory_space<vmem>>, vector<1x128x128xbf16>
    %41 = vector.shape_cast %40 : vector<1x128x128xbf16> to vector<128x128xbf16>
    %cst_43 = arith.constant dense<0.000000e+00> : vector<256x128xf32>
    %42 = tpu.matmul %39, %41, %cst_43 {dimension_numbers = #tpu.dot_dimension_numbers<[1], [0], [0], [1], [0, 0, 1, 1], [], []>} : vector<256x128xbf16>, vector<128x128xbf16>, vector<256x128xf32> -> vector<256x128xf32>
    %43 = arith.addf %38, %42 : vector<256x128xf32>
    %c0_44 = arith.constant 0 : index
    %c0_45 = arith.constant 0 : index
    %44 = vector.load %arg7[%c0_44, %c0_45] : memref<256x128xf32, #tpu.memory_space<vmem>>, vector<256x128xf32>
    tpu.vector_store %arg7[%c0_44, %c0_45], %43 {strides = array<i32>} : memref<256x128xf32, #tpu.memory_space<vmem>>, vector<256x128xf32>,
    %c1_46 = arith.constant 1 : index
    %c0_47 = arith.constant 0 : index
    %c0_48 = arith.constant 0 : index
    %45 = vector.load %arg6[%c1_46, %c0_47, %c0_48] : memref<18x18x128xf32, #tpu.memory_space<vmem>>, vector<16x16x128xf32>
    %46 = vector.shape_cast %45 : vector<16x16x128xf32> to vector<256x128xf32>
    %c0_49 = arith.constant 0 : index
    %c0_50 = arith.constant 0 : index
    %47 = vector.load %arg7[%c0_49, %c0_50] : memref<256x128xf32, #tpu.memory_space<vmem>>, vector<256x128xf32>
    %48 = arith.truncf %46 : vector<256x128xf32> to vector<256x128xbf16>
    %c3 = arith.constant 3 : index
    %c0_51 = arith.constant 0 : index
    %c0_52 = arith.constant 0 : index
    %49 = vector.load %arg3[%c3, %c0_51, %c0_52] : memref<9x128x128xbf16, #tpu.memory_space<vmem>>, vector<1x128x128xbf16>
    %50 = vector.shape_cast %49 : vector<1x128x128xbf16> to vector<128x128xbf16>
    %cst_53 = arith.constant dense<0.000000e+00> : vector<256x128xf32>
    %51 = tpu.matmul %48, %50, %cst_53 {dimension_numbers = #tpu.dot_dimension_numbers<[1], [0], [0], [1], [0, 0, 1, 1], [], []>} : vector<256x128xbf16>, vector<128x128xbf16>, vector<256x128xf32> -> vector<256x128xf32>
    %52 = arith.addf %47, %51 : vector<256x128xf32>
    %c0_54 = arith.constant 0 : index
    %c0_55 = arith.constant 0 : index
    %53 = vector.load %arg7[%c0_54, %c0_55] : memref<256x128xf32, #tpu.memory_space<vmem>>, vector<256x128xf32>
    tpu.vector_store %arg7[%c0_54, %c0_55], %52 {strides = array<i32>} : memref<256x128xf32, #tpu.memory_space<vmem>>, vector<256x128xf32>,
    %c1_56 = arith.constant 1 : index
    %c1_57 = arith.constant 1 : index
    %c0_58 = arith.constant 0 : index
    %54 = vector.load %arg6[%c1_56, %c1_57, %c0_58] : memref<18x18x128xf32, #tpu.memory_space<vmem>>, vector<16x16x128xf32>
    %55 = vector.shape_cast %54 : vector<16x16x128xf32> to vector<256x128xf32>
    %c0_59 = arith.constant 0 : index
    %c0_60 = arith.constant 0 : index
    %56 = vector.load %arg7[%c0_59, %c0_60] : memref<256x128xf32, #tpu.memory_space<vmem>>, vector<256x128xf32>
    %57 = arith.truncf %55 : vector<256x128xf32> to vector<256x128xbf16>
    %c4 = arith.constant 4 : index
    %c0_61 = arith.constant 0 : index
    %c0_62 = arith.constant 0 : index
    %58 = vector.load %arg3[%c4, %c0_61, %c0_62] : memref<9x128x128xbf16, #tpu.memory_space<vmem>>, vector<1x128x128xbf16>
    %59 = vector.shape_cast %58 : vector<1x128x128xbf16> to vector<128x128xbf16>
    %cst_63 = arith.constant dense<0.000000e+00> : vector<256x128xf32>
    %60 = tpu.matmul %57, %59, %cst_63 {dimension_numbers = #tpu.dot_dimension_numbers<[1], [0], [0], [1], [0, 0, 1, 1], [], []>} : vector<256x128xbf16>, vector<128x128xbf16>, vector<256x128xf32> -> vector<256x128xf32>
    %61 = arith.addf %56, %60 : vector<256x128xf32>
    %c0_64 = arith.constant 0 : index
    %c0_65 = arith.constant 0 : index
    %62 = vector.load %arg7[%c0_64, %c0_65] : memref<256x128xf32, #tpu.memory_space<vmem>>, vector<256x128xf32>
    tpu.vector_store %arg7[%c0_64, %c0_65], %61 {strides = array<i32>} : memref<256x128xf32, #tpu.memory_space<vmem>>, vector<256x128xf32>,
    %c1_66 = arith.constant 1 : index
    %c2_67 = arith.constant 2 : index
    %c0_68 = arith.constant 0 : index
    %63 = vector.load %arg6[%c1_66, %c2_67, %c0_68] : memref<18x18x128xf32, #tpu.memory_space<vmem>>, vector<16x16x128xf32>
    %64 = vector.shape_cast %63 : vector<16x16x128xf32> to vector<256x128xf32>
    %c0_69 = arith.constant 0 : index
    %c0_70 = arith.constant 0 : index
    %65 = vector.load %arg7[%c0_69, %c0_70] : memref<256x128xf32, #tpu.memory_space<vmem>>, vector<256x128xf32>
    %66 = arith.truncf %64 : vector<256x128xf32> to vector<256x128xbf16>
    %c5 = arith.constant 5 : index
    %c0_71 = arith.constant 0 : index
    %c0_72 = arith.constant 0 : index
    %67 = vector.load %arg3[%c5, %c0_71, %c0_72] : memref<9x128x128xbf16, #tpu.memory_space<vmem>>, vector<1x128x128xbf16>
    %68 = vector.shape_cast %67 : vector<1x128x128xbf16> to vector<128x128xbf16>
    %cst_73 = arith.constant dense<0.000000e+00> : vector<256x128xf32>
    %69 = tpu.matmul %66, %68, %cst_73 {dimension_numbers = #tpu.dot_dimension_numbers<[1], [0], [0], [1], [0, 0, 1, 1], [], []>} : vector<256x128xbf16>, vector<128x128xbf16>, vector<256x128xf32> -> vector<256x128xf32>
    %70 = arith.addf %65, %69 : vector<256x128xf32>
    %c0_74 = arith.constant 0 : index
    %c0_75 = arith.constant 0 : index
    %71 = vector.load %arg7[%c0_74, %c0_75] : memref<256x128xf32, #tpu.memory_space<vmem>>, vector<256x128xf32>
    tpu.vector_store %arg7[%c0_74, %c0_75], %70 {strides = array<i32>} : memref<256x128xf32, #tpu.memory_space<vmem>>, vector<256x128xf32>,
    %c2_76 = arith.constant 2 : index
    %c0_77 = arith.constant 0 : index
    %c0_78 = arith.constant 0 : index
    %72 = vector.load %arg6[%c2_76, %c0_77, %c0_78] : memref<18x18x128xf32, #tpu.memory_space<vmem>>, vector<16x16x128xf32>
    %73 = vector.shape_cast %72 : vector<16x16x128xf32> to vector<256x128xf32>
    %c0_79 = arith.constant 0 : index
    %c0_80 = arith.constant 0 : index
    %74 = vector.load %arg7[%c0_79, %c0_80] : memref<256x128xf32, #tpu.memory_space<vmem>>, vector<256x128xf32>
    %75 = arith.truncf %73 : vector<256x128xf32> to vector<256x128xbf16>
    %c6 = arith.constant 6 : index
    %c0_81 = arith.constant 0 : index
    %c0_82 = arith.constant 0 : index
    %76 = vector.load %arg3[%c6, %c0_81, %c0_82] : memref<9x128x128xbf16, #tpu.memory_space<vmem>>, vector<1x128x128xbf16>
    %77 = vector.shape_cast %76 : vector<1x128x128xbf16> to vector<128x128xbf16>
    %cst_83 = arith.constant dense<0.000000e+00> : vector<256x128xf32>
    %78 = tpu.matmul %75, %77, %cst_83 {dimension_numbers = #tpu.dot_dimension_numbers<[1], [0], [0], [1], [0, 0, 1, 1], [], []>} : vector<256x128xbf16>, vector<128x128xbf16>, vector<256x128xf32> -> vector<256x128xf32>
    %79 = arith.addf %74, %78 : vector<256x128xf32>
    %c0_84 = arith.constant 0 : index
    %c0_85 = arith.constant 0 : index
    %80 = vector.load %arg7[%c0_84, %c0_85] : memref<256x128xf32, #tpu.memory_space<vmem>>, vector<256x128xf32>
    tpu.vector_store %arg7[%c0_84, %c0_85], %79 {strides = array<i32>} : memref<256x128xf32, #tpu.memory_space<vmem>>, vector<256x128xf32>,
    %c2_86 = arith.constant 2 : index
    %c1_87 = arith.constant 1 : index
    %c0_88 = arith.constant 0 : index
    %81 = vector.load %arg6[%c2_86, %c1_87, %c0_88] : memref<18x18x128xf32, #tpu.memory_space<vmem>>, vector<16x16x128xf32>
    %82 = vector.shape_cast %81 : vector<16x16x128xf32> to vector<256x128xf32>
    %c0_89 = arith.constant 0 : index
    %c0_90 = arith.constant 0 : index
    %83 = vector.load %arg7[%c0_89, %c0_90] : memref<256x128xf32, #tpu.memory_space<vmem>>, vector<256x128xf32>
    %84 = arith.truncf %82 : vector<256x128xf32> to vector<256x128xbf16>
    %c7 = arith.constant 7 : index
    %c0_91 = arith.constant 0 : index
    %c0_92 = arith.constant 0 : index
    %85 = vector.load %arg3[%c7, %c0_91, %c0_92] : memref<9x128x128xbf16, #tpu.memory_space<vmem>>, vector<1x128x128xbf16>
    %86 = vector.shape_cast %85 : vector<1x128x128xbf16> to vector<128x128xbf16>
    %cst_93 = arith.constant dense<0.000000e+00> : vector<256x128xf32>
    %87 = tpu.matmul %84, %86, %cst_93 {dimension_numbers = #tpu.dot_dimension_numbers<[1], [0], [0], [1], [0, 0, 1, 1], [], []>} : vector<256x128xbf16>, vector<128x128xbf16>, vector<256x128xf32> -> vector<256x128xf32>
    %88 = arith.addf %83, %87 : vector<256x128xf32>
    %c0_94 = arith.constant 0 : index
    %c0_95 = arith.constant 0 : index
    %89 = vector.load %arg7[%c0_94, %c0_95] : memref<256x128xf32, #tpu.memory_space<vmem>>, vector<256x128xf32>
    tpu.vector_store %arg7[%c0_94, %c0_95], %88 {strides = array<i32>} : memref<256x128xf32, #tpu.memory_space<vmem>>, vector<256x128xf32>,
    %c2_96 = arith.constant 2 : index
    %c2_97 = arith.constant 2 : index
    %c0_98 = arith.constant 0 : index
    %90 = vector.load %arg6[%c2_96, %c2_97, %c0_98] : memref<18x18x128xf32, #tpu.memory_space<vmem>>, vector<16x16x128xf32>
    %91 = vector.shape_cast %90 : vector<16x16x128xf32> to vector<256x128xf32>
    %c0_99 = arith.constant 0 : index
    %c0_100 = arith.constant 0 : index
    %92 = vector.load %arg7[%c0_99, %c0_100] : memref<256x128xf32, #tpu.memory_space<vmem>>, vector<256x128xf32>
    %93 = arith.truncf %91 : vector<256x128xf32> to vector<256x128xbf16>
    %c8 = arith.constant 8 : index
    %c0_101 = arith.constant 0 : index
    %c0_102 = arith.constant 0 : index
    %94 = vector.load %arg3[%c8, %c0_101, %c0_102] : memref<9x128x128xbf16, #tpu.memory_space<vmem>>, vector<1x128x128xbf16>
    %95 = vector.shape_cast %94 : vector<1x128x128xbf16> to vector<128x128xbf16>
    %cst_103 = arith.constant dense<0.000000e+00> : vector<256x128xf32>
    %96 = tpu.matmul %93, %95, %cst_103 {dimension_numbers = #tpu.dot_dimension_numbers<[1], [0], [0], [1], [0, 0, 1, 1], [], []>} : vector<256x128xbf16>, vector<128x128xbf16>, vector<256x128xf32> -> vector<256x128xf32>
    %97 = arith.addf %92, %96 : vector<256x128xf32>
    %c0_104 = arith.constant 0 : index
    %c0_105 = arith.constant 0 : index
    %98 = vector.load %arg7[%c0_104, %c0_105] : memref<256x128xf32, #tpu.memory_space<vmem>>, vector<256x128xf32>
    tpu.vector_store %arg7[%c0_104, %c0_105], %97 {strides = array<i32>} : memref<256x128xf32, #tpu.memory_space<vmem>>, vector<256x128xf32>,
    %c0_106 = arith.constant 0 : index
    %c0_107 = arith.constant 0 : index
    %99 = vector.load %arg7[%c0_106, %c0_107] : memref<256x128xf32, #tpu.memory_space<vmem>>, vector<256x128xf32>
    %100 = vector.shape_cast %99 : vector<256x128xf32> to vector<1x16x16x128xf32>
    %101 = arith.truncf %100 : vector<1x16x16x128xf32> to vector<1x16x16x128xbf16>
    %c0_108 = arith.constant 0 : index
    %c0_109 = arith.constant 0 : index
    %c0_110 = arith.constant 0 : index
    %c0_111 = arith.constant 0 : index
    %102 = vector.load %arg4[%c0_108, %c0_109, %c0_110, %c0_111] : memref<1x16x16x128xbf16, #tpu.memory_space<vmem>>, vector<1x16x16x128xbf16>
    tpu.vector_store %arg4[%c0_108, %c0_109, %c0_110, %c0_111], %101 {strides = array<i32>} : memref<1x16x16x128xbf16, #tpu.memory_space<vmem>>, vector<1x16x16x128xbf16>,
    %cst_112 = arith.constant dense<0.000000e+00> : vector<128xf32>
    %103 = vector.multi_reduction <add>, %99, %cst_112 [0] : vector<256x128xf32> to vector<128xf32>
    %104 = vector.shape_cast %103 : vector<128xf32> to vector<1x128xf32>
    %105 = arith.mulf %99, %99 : vector<256x128xf32>
    %cst_113 = arith.constant dense<0.000000e+00> : vector<128xf32>
    %106 = vector.multi_reduction <add>, %105, %cst_113 [0] : vector<256x128xf32> to vector<128xf32>
    %107 = vector.shape_cast %106 : vector<128xf32> to vector<1x128xf32>
    %108 = tpu.concatenate %104, %107 in 0 : vector<1x128xf32>, vector<1x128xf32> -> vector<2x128xf32>
    %109 = vector.shape_cast %108 : vector<2x128xf32> to vector<1x2x128xf32>
    %c0_114 = arith.constant 0 : index
    %c0_115 = arith.constant 0 : index
    %c0_116 = arith.constant 0 : index
    %110 = vector.load %arg5[%c0_114, %c0_115, %c0_116] : memref<1x2x128xf32, #tpu.memory_space<vmem>>, vector<1x2x128xf32>
    tpu.vector_store %arg5[%c0_114, %c0_115, %c0_116], %109 {strides = array<i32>} : memref<1x2x128xf32, #tpu.memory_space<vmem>>, vector<1x2x128xf32>,
    return
  }
  func.func @transform_0(%arg0: i32) -> (i32, i32, i32, i32) {
    %c0_i32 = arith.constant 0 : i32
    %c0_i32_0 = arith.constant 0 : i32
    %c0_i32_1 = arith.constant 0 : i32
    %c0_i32_2 = arith.constant 0 : i32
    return %arg0, %c0_i32, %c0_i32_0, %c0_i32_1 : i32, i32, i32, i32
  }
  func.func @transform_1(%arg0: i32) -> (i32, i32) {
    %c0_i32 = arith.constant 0 : i32
    %c0_i32_0 = arith.constant 0 : i32
    %c0_i32_1 = arith.constant 0 : i32
    return %c0_i32, %c0_i32_0 : i32, i32
  }
  func.func @transform_2(%arg0: i32) -> (i32, i32, i32) {
    %c0_i32 = arith.constant 0 : i32
    %c0_i32_0 = arith.constant 0 : i32
    %c0_i32_1 = arith.constant 0 : i32
    %c0_i32_2 = arith.constant 0 : i32
    return %c0_i32, %c0_i32_0, %c0_i32_1 : i32, i32, i32
  }
  func.func @transform_3(%arg0: i32) -> (i32, i32, i32, i32) {
    %c0_i32 = arith.constant 0 : i32
    %c0_i32_0 = arith.constant 0 : i32
    %c0_i32_1 = arith.constant 0 : i32
    %c0_i32_2 = arith.constant 0 : i32
    return %arg0, %c0_i32, %c0_i32_0, %c0_i32_1 : i32, i32, i32, i32
  }
  func.func @transform_4(%arg0: i32) -> (i32, i32, i32) {
    %c0_i32 = arith.constant 0 : i32
    %c0_i32_0 = arith.constant 0 : i32
    %c0_i32_1 = arith.constant 0 : i32
    return %arg0, %c0_i32, %c0_i32_0 : i32, i32, i32
  }
}

</mosaic_0001>

<bundles_post_ra>
// kernel: basic_block_forward.5
= control target key start
LH: loop header
LB: loop body
LE: loop exit
PB: predicated region body
PF: predicated region fallthrough
CT: control target
= control target key end

     0   :  { %s648_s12 = smov 0   ;;  %s833_s0 = inlined_call_operand.vmem [shape: bf16[2,16,16,128], index: 0, kind: input, shape index: {}]   ;;  %s834_s1 = inlined_call_operand.vmem [shape: f32[2,128], index: 1, kind: input, shape index: {}]   ;;  %s835_s2 = inlined_call_operand.vmem [shape: f32[2,16,16,128], index: 2, kind: input, shape index: {}]   ;;  %s836_s3 = inlined_call_operand.vmem [shape: f32[2,16,16,128], index: 3, kind: output, shape index: {}]  }
   0x1 LB: > { %s517_s13 = sadd.s32 4294967295, %s626_s12   ;;  %p521_p0 = scmp.ge.s32.totalorder %s626_s12, 1  ;;  %s626_s12 = sphi %s648_s12, %s13_s12  }
   0x2   : > { %p147_p1 = scmp.lt.s32.totalorder %s626_s12, 3 }
   0x4   : > { %p148_p2 = pnand %p521_p0, %p147_p1 }
   0x5   : > { %p176_p3 = scmp.lt.s32.totalorder (!%p148_p2), %s517_s13, 1 }
   0x6   : > { %151 = sbr.rel (%p148_p2) target bundleno = 62 (0x3e), region = 32 }
   0xb   : > { %s838_s13 = smov (!%p176_p3, %s517_s13), 1  ;;  %v287_v0 = vld [vmem:[%s834_s1] sm:$0x3] }
   0xc   : > { %s530_s16 = sshll.u32 %s838_s13, 7  ;;  %s531_s17 = sshll.u32 %s838_s13, 8  ;;  %v668_v1 = vperm.slane %v287_v0, 0  ;;  %v678_v4 = vperm.slane %v287_v0, 1 }
   0xd   : > { %s666_s20 = scalar_lea.vmem %s833_s0, %s530_s16  ;;  %s676_s23 = scalar_lea.vmem %s835_s2, %s531_s17 }
   0xe   : > { %v534_v2 = vld [vmem:[%s666_s20] sm:$0xff]   ;;  %v597_v6 = vld [vmem:[%s666_s20 + $0x8] sm:$0xff]   ;;  %v598_v9 = vld [vmem:[%s666_s20 + $0x10] sm:$0xff]   ;;  %s710_s26 = scalar_lea.vmem %s836_s3, %s531_s17 }
   0xf   : > { %v535_v3 = vunpack.c.l.bf16 %v534_v2  ;;  %v536_v5 = vunpack.c.h.bf16 %v534_v2  ;;  %v539_v7 = vunpack.c.l.bf16 %v597_v6  ;;  %v540_v8 = vunpack.c.h.bf16 %v597_v6  ;;  %v599_v14 = vld [vmem:[%s666_s20 + $0x18] sm:$0xff]   ;;  %v255_v15 = vld [vmem:[%s676_s23] sm:$0xff]  ;;  %v256_v16 = vld [vmem:[%s676_s23 + $0x8] sm:$0xff] }
  0x10   : > { %v543_v12 = vunpack.c.l.bf16 %v598_v9  ;;  %v544_v13 = vunpack.c.h.bf16 %v598_v9  ;;  %v547_v19 = vunpack.c.l.bf16 %v599_v14  ;;  %v548_v20 = vunpack.c.h.bf16 %v599_v14  ;;  %v257_v23 = vld [vmem:[%s676_s23 + $0x10] sm:$0xff]  ;;  %v258_v24 = vld [vmem:[%s676_s23 + $0x18] sm:$0xff]  ;;  %v259_v29 = vld [vmem:[%s676_s23 + $0x20] sm:$0xff] }
  0x11   : > { %v289_v10 = vmul.f32 %v535_v3, %v668_v1  ;;  %v290_v11 = vmul.f32 %v536_v5, %v668_v1  ;;  %v291_v17 = vmul.f32 %v539_v7, %v668_v1  ;;  %v292_v18 = vmul.f32 %v540_v8, %v668_v1  ;;  %v260_v30 = vld [vmem:[%s676_s23 + $0x28] sm:$0xff]  ;;  %v261_v37 = vld [vmem:[%s676_s23 + $0x30] sm:$0xff]  ;;  %v262_v38 = vld [vmem:[%s676_s23 + $0x38] sm:$0xff] }
  0x12   : > { %v293_v25 = vmul.f32 %v543_v12, %v668_v1  ;;  %v294_v26 = vmul.f32 %v544_v13, %v668_v1  ;;  %v295_v31 = vmul.f32 %v547_v19, %v668_v1  ;;  %v296_v32 = vmul.f32 %v548_v20, %v668_v1  ;;  %v600_v43 = vld [vmem:[%s666_s20 + $0x20] sm:$0xff]   ;;  %v601_v48 = vld [vmem:[%s666_s20 + $0x28] sm:$0xff]   ;;  %v602_v53 = vld [vmem:[%s666_s20 + $0x30] sm:$0xff]  }
  0x13   : > { %v322_v21 = vadd.f32 %v678_v4, %v289_v10  ;;  %v323_v22 = vadd.f32 %v678_v4, %v290_v11  ;;  %v324_v27 = vadd.f32 %v678_v4, %v291_v17  ;;  %v325_v28 = vadd.f32 %v678_v4, %v292_v18  ;;  %v603_v58 = vld [vmem:[%s666_s20 + $0x38] sm:$0xff]   ;;  %v263_v5 = vld [vmem:[%s676_s23 + $0x40] sm:$0xff]  ;;  %v264_v6 = vld [vmem:[%s676_s23 + $0x48] sm:$0xff] }
  0x14   : > { %v326_v35 = vadd.f32 %v678_v4, %v293_v25  ;;  %v327_v36 = vadd.f32 %v678_v4, %v294_v26  ;;  %v328_v41 = vadd.f32 %v678_v4, %v295_v31  ;;  %v329_v42 = vadd.f32 %v678_v4, %v296_v32  ;;  %v265_v13 = vld [vmem:[%s676_s23 + $0x50] sm:$0xff]  ;;  %v266_v14 = vld [vmem:[%s676_s23 + $0x58] sm:$0xff]  ;;  %v267_v19 = vld [vmem:[%s676_s23 + $0x60] sm:$0xff] }
  0x15   : > { %v354_v33 = vadd.f32 %v322_v21, %v255_v15  ;;  %v355_v34 = vadd.f32 %v323_v22, %v256_v16  ;;  %v356_v39 = vadd.f32 %v324_v27, %v257_v23  ;;  %v357_v40 = vadd.f32 %v325_v28, %v258_v24  ;;  %v268_v20 = vld [vmem:[%s676_s23 + $0x68] sm:$0xff]  ;;  %v269_v27 = vld [vmem:[%s676_s23 + $0x70] sm:$0xff]  ;;  %v270_v28 = vld [vmem:[%s676_s23 + $0x78] sm:$0xff] }
  0x16   : > { %v358_v46 = vadd.f32 %v326_v35, %v259_v29  ;;  %v359_v47 = vadd.f32 %v327_v36, %v260_v30  ;;  %v360_v51 = vadd.f32 %v328_v41, %v261_v37  ;;  %v361_v52 = vadd.f32 %v329_v42, %v262_v38  ;;  %v605_v38 = vld [vmem:[%s666_s20 + $0x48] sm:$0xff]  }
  0x17   : > { %v386_v44 = vmax.f32 %v354_v33, 0.0  ;;  %v387_v45 = vmax.f32 %v355_v34, 0.0  ;;  %v388_v49 = vmax.f32 %v356_v39, 0.0  ;;  %v389_v50 = vmax.f32 %v357_v40, 0.0  ;;  %v604_v33 = vld [vmem:[%s666_s20 + $0x40] sm:$0xff]  }
  0x18   : > { %v390_v54 = vmax.f32 %v358_v46, 0.0  ;;  %v391_v55 = vmax.f32 %v359_v47, 0.0  ;;  %v551_v56 = vunpack.c.l.bf16 %v600_v43  ;;  %v552_v57 = vunpack.c.h.bf16 %v600_v43  ;;  %v606_v43 = vld [vmem:[%s666_s20 + $0x50] sm:$0xff]  }
  0x19   : > { %418 = vst [vmem:[%s710_s26] sm:$0xff] %v386_v44  ;;  %v392_v59 = vmax.f32 %v360_v51, 0.0  ;;  %v393_v60 = vmax.f32 %v361_v52, 0.0  ;;  %v555_v61 = vunpack.c.l.bf16 %v601_v48  ;;  %v556_v62 = vunpack.c.h.bf16 %v601_v48  ;;  %v607_v48 = vld [vmem:[%s666_s20 + $0x58] sm:$0xff]  }
  0x1a   : > { %419 = vst [vmem:[%s710_s26 + $0x8] sm:$0xff] %v387_v45  ;;  %v297_v63 = vmul.f32 %v551_v56, %v668_v1  ;;  %v298_v0 = vmul.f32 %v552_v57, %v668_v1  ;;  %v559_v2 = vunpack.c.l.bf16 %v602_v53  ;;  %v560_v3 = vunpack.c.h.bf16 %v602_v53  ;;  %v271_v57 = vld [vmem:[%s676_s23 + $0x80] sm:$0xff] }
  0x1b   : > { %420 = vst [vmem:[%s710_s26 + $0x10] sm:$0xff] %v388_v49  ;;  %v299_v7 = vmul.f32 %v555_v61, %v668_v1  ;;  %v300_v8 = vmul.f32 %v556_v62, %v668_v1  ;;  %v563_v9 = vunpack.c.l.bf16 %v603_v58  ;;  %v564_v10 = vunpack.c.h.bf16 %v603_v58  ;;  %v272_v58 = vld [vmem:[%s676_s23 + $0x88] sm:$0xff] }
  0x1c   : > { %421 = vst [vmem:[%s710_s26 + $0x18] sm:$0xff] %v389_v50  ;;  %v330_v11 = vadd.f32 %v678_v4, %v297_v63  ;;  %v331_v12 = vadd.f32 %v678_v4, %v298_v0  ;;  %v301_v15 = vmul.f32 %v559_v2, %v668_v1  ;;  %v302_v16 = vmul.f32 %v560_v3, %v668_v1  ;;  %v273_v2 = vld [vmem:[%s676_s23 + $0x90] sm:$0xff]  ;;  %v274_v3 = vld [vmem:[%s676_s23 + $0x98] sm:$0xff] }
  0x1d   : > { %422 = vst [vmem:[%s710_s26 + $0x20] sm:$0xff] %v390_v54  ;;  %v332_v17 = vadd.f32 %v678_v4, %v299_v7  ;;  %v333_v18 = vadd.f32 %v678_v4, %v300_v8  ;;  %v303_v21 = vmul.f32 %v563_v9, %v668_v1  ;;  %v304_v22 = vmul.f32 %v564_v10, %v668_v1  ;;  %v275_v9 = vld [vmem:[%s676_s23 + $0xa0] sm:$0xff]  ;;  %v276_v10 = vld [vmem:[%s676_s23 + $0xa8] sm:$0xff] }
  0x1e   : > { %423 = vst [vmem:[%s710_s26 + $0x28] sm:$0xff] %v391_v55  ;;  %v362_v23 = vadd.f32 %v330_v11, %v263_v5  ;;  %v363_v24 = vadd.f32 %v331_v12, %v264_v6  ;;  %v334_v25 = vadd.f32 %v678_v4, %v301_v15  ;;  %v335_v26 = vadd.f32 %v678_v4, %v302_v16 }
  0x1f   : > { %424 = vst [vmem:[%s710_s26 + $0x30] sm:$0xff] %v392_v59  ;;  %v364_v29 = vadd.f32 %v332_v17, %v265_v13  ;;  %v365_v30 = vadd.f32 %v333_v18, %v266_v14  ;;  %v336_v31 = vadd.f32 %v678_v4, %v303_v21  ;;  %v337_v32 = vadd.f32 %v678_v4, %v304_v22  ;;  %v277_v17 = vld [vmem:[%s676_s23 + $0xb0] sm:$0xff]  ;;  %v278_v18 = vld [vmem:[%s676_s23 + $0xb8] sm:$0xff] }
  0x20   : > { %425 = vst [vmem:[%s710_s26 + $0x38] sm:$0xff] %v393_v60  ;;  %v394_v34 = vmax.f32 %v362_v23, 0.0  ;;  %v395_v35 = vmax.f32 %v363_v24, 0.0  ;;  %v366_v36 = vadd.f32 %v334_v25, %v267_v19  ;;  %v367_v37 = vadd.f32 %v335_v26, %v268_v20  ;;  %v608_v23 = vld [vmem:[%s666_s20 + $0x60] sm:$0xff]  }
  0x21   : > { %v396_v39 = vmax.f32 %v364_v29, 0.0  ;;  %v397_v40 = vmax.f32 %v365_v30, 0.0  ;;  %v368_v41 = vadd.f32 %v336_v31, %v269_v27  ;;  %v369_v42 = vadd.f32 %v337_v32, %v270_v28  ;;  %v609_v28 = vld [vmem:[%s666_s20 + $0x68] sm:$0xff]  }
  0x22   : > { %426 = vst [vmem:[%s710_s26 + $0x40] sm:$0xff] %v394_v34  ;;  %v398_v44 = vmax.f32 %v366_v36, 0.0  ;;  %v399_v45 = vmax.f32 %v367_v37, 0.0  ;;  %v567_v46 = vunpack.c.l.bf16 %v604_v33  ;;  %v568_v47 = vunpack.c.h.bf16 %v604_v33  ;;  %v610_v33 = vld [vmem:[%s666_s20 + $0x70] sm:$0xff]  }
  0x23   : > { %427 = vst [vmem:[%s710_s26 + $0x48] sm:$0xff] %v395_v35  ;;  %v400_v49 = vmax.f32 %v368_v41, 0.0  ;;  %v401_v50 = vmax.f32 %v369_v42, 0.0  ;;  %v571_v51 = vunpack.c.l.bf16 %v605_v38  ;;  %v572_v52 = vunpack.c.h.bf16 %v605_v38  ;;  %v611_v38 = vld [vmem:[%s666_s20 + $0x78] sm:$0xff]  }
  0x24   : > { %428 = vst [vmem:[%s710_s26 + $0x50] sm:$0xff] %v396_v39  ;;  %v305_v53 = vmul.f32 %v567_v46, %v668_v1  ;;  %v306_v54 = vmul.f32 %v568_v47, %v668_v1  ;;  %v575_v55 = vunpack.c.l.bf16 %v606_v43  ;;  %v576_v56 = vunpack.c.h.bf16 %v606_v43  ;;  %v279_v47 = vld [vmem:[%s676_s23 + $0xc0] sm:$0xff] }
  0x25   : > { %429 = vst [vmem:[%s710_s26 + $0x58] sm:$0xff] %v397_v40  ;;  %v307_v59 = vmul.f32 %v571_v51, %v668_v1  ;;  %v308_v60 = vmul.f32 %v572_v52, %v668_v1  ;;  %v579_v61 = vunpack.c.l.bf16 %v607_v48  ;;  %v580_v62 = vunpack.c.h.bf16 %v607_v48  ;;  %v280_v48 = vld [vmem:[%s676_s23 + $0xc8] sm:$0xff] }
  0x26   : > { %430 = vst [vmem:[%s710_s26 + $0x60] sm:$0xff] %v398_v44  ;;  %v338_v63 = vadd.f32 %v678_v4, %v305_v53  ;;  %v339_v0 = vadd.f32 %v678_v4, %v306_v54  ;;  %v309_v5 = vmul.f32 %v575_v55, %v668_v1  ;;  %v310_v6 = vmul.f32 %v576_v56, %v668_v1  ;;  %v281_v55 = vld [vmem:[%s676_s23 + $0xd0] sm:$0xff]  ;;  %v282_v56 = vld [vmem:[%s676_s23 + $0xd8] sm:$0xff] }
  0x27   : > { %431 = vst [vmem:[%s710_s26 + $0x68] sm:$0xff] %v399_v45  ;;  %v340_v7 = vadd.f32 %v678_v4, %v307_v59  ;;  %v341_v8 = vadd.f32 %v678_v4, %v308_v60  ;;  %v311_v11 = vmul.f32 %v579_v61, %v668_v1  ;;  %v312_v12 = vmul.f32 %v580_v62, %v668_v1  ;;  %v283_v61 = vld [vmem:[%s676_s23 + $0xe0] sm:$0xff]  ;;  %v284_v62 = vld [vmem:[%s676_s23 + $0xe8] sm:$0xff] }
  0x28   : > { %432 = vst [vmem:[%s710_s26 + $0x70] sm:$0xff] %v400_v49  ;;  %v370_v13 = vadd.f32 %v338_v63, %v271_v57  ;;  %v371_v14 = vadd.f32 %v339_v0, %v272_v58  ;;  %v342_v15 = vadd.f32 %v678_v4, %v309_v5  ;;  %v343_v16 = vadd.f32 %v678_v4, %v310_v6 }
  0x29   : > { %433 = vst [vmem:[%s710_s26 + $0x78] sm:$0xff] %v401_v50  ;;  %v372_v19 = vadd.f32 %v340_v7, %v273_v2  ;;  %v373_v20 = vadd.f32 %v341_v8, %v274_v3  ;;  %v344_v21 = vadd.f32 %v678_v4, %v311_v11  ;;  %v345_v22 = vadd.f32 %v678_v4, %v312_v12  ;;  %v285_v7 = vld [vmem:[%s676_s23 + $0xf0] sm:$0xff]  ;;  %v286_v8 = vld [vmem:[%s676_s23 + $0xf8] sm:$0xff] }
  0x2a   : > { %v402_v24 = vmax.f32 %v370_v13, 0.0  ;;  %v403_v25 = vmax.f32 %v371_v14, 0.0  ;;  %v374_v26 = vadd.f32 %v342_v15, %v275_v9  ;;  %v375_v27 = vadd.f32 %v343_v16, %v276_v10 }
  0x2b   : > { %v404_v29 = vmax.f32 %v372_v19, 0.0  ;;  %v405_v30 = vmax.f32 %v373_v20, 0.0  ;;  %v376_v31 = vadd.f32 %v344_v21, %v277_v17  ;;  %v377_v32 = vadd.f32 %v345_v22, %v278_v18 }
  0x2c   : > { %434 = vst [vmem:[%s710_s26 + $0x80] sm:$0xff] %v402_v24  ;;  %v406_v34 = vmax.f32 %v374_v26, 0.0  ;;  %v407_v35 = vmax.f32 %v375_v27, 0.0  ;;  %v583_v36 = vunpack.c.l.bf16 %v608_v23  ;;  %v584_v37 = vunpack.c.h.bf16 %v608_v23 }
  0x2d   : > { %435 = vst [vmem:[%s710_s26 + $0x88] sm:$0xff] %v403_v25  ;;  %v408_v39 = vmax.f32 %v376_v31, 0.0  ;;  %v409_v40 = vmax.f32 %v377_v32, 0.0  ;;  %v587_v41 = vunpack.c.l.bf16 %v609_v28  ;;  %v588_v42 = vunpack.c.h.bf16 %v609_v28 }
  0x2e   : > { %436 = vst [vmem:[%s710_s26 + $0x90] sm:$0xff] %v404_v29  ;;  %v313_v43 = vmul.f32 %v583_v36, %v668_v1  ;;  %v314_v44 = vmul.f32 %v584_v37, %v668_v1  ;;  %v591_v45 = vunpack.c.l.bf16 %v610_v33  ;;  %v592_v46 = vunpack.c.h.bf16 %v610_v33 }
  0x2f   : > { %437 = vst [vmem:[%s710_s26 + $0x98] sm:$0xff] %v405_v30  ;;  %v315_v49 = vmul.f32 %v587_v41, %v668_v1  ;;  %v316_v50 = vmul.f32 %v588_v42, %v668_v1  ;;  %v595_v51 = vunpack.c.l.bf16 %v611_v38  ;;  %v596_v52 = vunpack.c.h.bf16 %v611_v38 }
  0x30   : > { %438 = vst [vmem:[%s710_s26 + $0xa0] sm:$0xff] %v406_v34  ;;  %v346_v53 = vadd.f32 %v678_v4, %v313_v43  ;;  %v347_v54 = vadd.f32 %v678_v4, %v314_v44  ;;  %v317_v57 = vmul.f32 %v591_v45, %v668_v1  ;;  %v318_v58 = vmul.f32 %v592_v46, %v668_v1 }
  0x31   : > { %439 = vst [vmem:[%s710_s26 + $0xa8] sm:$0xff] %v407_v35  ;;  %v348_v59 = vadd.f32 %v678_v4, %v315_v49  ;;  %v349_v60 = vadd.f32 %v678_v4, %v316_v50  ;;  %v319_v63 = vmul.f32 %v595_v51, %v668_v1  ;;  %v320_v0 = vmul.f32 %v596_v52, %v668_v1 }
  0x32   : > { %440 = vst [vmem:[%s710_s26 + $0xb0] sm:$0xff] %v408_v39  ;;  %v378_v2 = vadd.f32 %v346_v53, %v279_v47  ;;  %v379_v3 = vadd.f32 %v347_v54, %v280_v48  ;;  %v350_v5 = vadd.f32 %v678_v4, %v317_v57  ;;  %v351_v6 = vadd.f32 %v678_v4, %v318_v58 }
  0x33   : > { %441 = vst [vmem:[%s710_s26 + $0xb8] sm:$0xff] %v409_v40  ;;  %v380_v9 = vadd.f32 %v348_v59, %v281_v55  ;;  %v381_v10 = vadd.f32 %v349_v60, %v282_v56  ;;  %v352_v11 = vadd.f32 %v678_v4, %v319_v63  ;;  %v353_v1 = vadd.f32 %v678_v4, %v320_v0 }
  0x34   : > { %v410_v12 = vmax.f32 %v378_v2, 0.0  ;;  %v411_v13 = vmax.f32 %v379_v3, 0.0  ;;  %v382_v14 = vadd.f32 %v350_v5, %v283_v61  ;;  %v383_v15 = vadd.f32 %v351_v6, %v284_v62 }
  0x35   : > { %v412_v16 = vmax.f32 %v380_v9, 0.0  ;;  %v413_v17 = vmax.f32 %v381_v10, 0.0  ;;  %v384_v18 = vadd.f32 %v352_v11, %v285_v7  ;;  %v385_v19 = vadd.f32 %v353_v1, %v286_v8 }
  0x36   : > { %442 = vst [vmem:[%s710_s26 + $0xc0] sm:$0xff] %v410_v12  ;;  %v414_v20 = vmax.f32 %v382_v14, 0.0  ;;  %v415_v21 = vmax.f32 %v383_v15, 0.0 }
  0x37   : > { %443 = vst [vmem:[%s710_s26 + $0xc8] sm:$0xff] %v411_v13  ;;  %v416_v22 = vmax.f32 %v384_v18, 0.0  ;;  %v417_v4 = vmax.f32 %v385_v19, 0.0 }
  0x38   : > { %444 = vst [vmem:[%s710_s26 + $0xd0] sm:$0xff] %v412_v16 }
  0x39   : > { %445 = vst [vmem:[%s710_s26 + $0xd8] sm:$0xff] %v413_v17 }
  0x3a   : > { %446 = vst [vmem:[%s710_s26 + $0xe0] sm:$0xff] %v414_v20 }
  0x3b   : > { %447 = vst [vmem:[%s710_s26 + $0xe8] sm:$0xff] %v415_v21 }
  0x3c   : > { %448 = vst [vmem:[%s710_s26 + $0xf0] sm:$0xff] %v416_v22 }
  0x3d   : > { %449 = vst [vmem:[%s710_s26 + $0xf8] sm:$0xff] %v417_v4 }
  0x3e PF: > { %s13_s12 = sadd.s32 1, %s626_s12  }
  0x3f   : > { %p10_p4 = scmp.ge.s32.totalorder %s13_s12, 4  }
  0x41   :  { %12 = sbr.rel (!%p10_p4) target bundleno = 1 (0x1), region = 65 }

// kernel: basic_block_forward.4
= control target key start
LH: loop header
LB: loop body
LE: loop exit
PB: predicated region body
PF: predicated region fallthrough
CT: control target
= control target key end

     0   :  { %s4209_s15 = smov 0   ;;  %s5053_s0 = inlined_call_operand.vmem [shape: bf16[2,16,16,128], index: 0, kind: input, shape index: {}]   ;;  %s5054_s1 = inlined_call_operand.vmem [shape: f32[2,128], index: 1, kind: input, shape index: {}]   ;;  %s5055_s2 = inlined_call_operand.vmem [shape: bf16[9,128,128], index: 2, kind: input, shape index: {}]   ;;  %s5056_s3 = inlined_call_operand.vmem [shape: bf16[2,16,16,128], index: 3, kind: output, shape index: {0}]   ;;  %s5057_s4 = inlined_call_operand.vmem [shape: f32[2,2,128], index: 4, kind: output, shape index: {1}]  }
   0x1 LB: > { %s3464_s16 = sadd.s32 4294967295, %s4180_s15   ;;  %p3468_p0 = scmp.ge.s32.totalorder %s4180_s15, 1  ;;  %s4180_s15 = sphi %s4209_s15, %s15_s15  }
   0x2   : > { %p165_p1 = scmp.lt.s32.totalorder %s4180_s15, 3 }
   0x4   : > { %p166_p2 = pnand %p3468_p0, %p165_p1 }
   0x6   : > { %169 = sbr.rel (%p166_p2) target bundleno = 803 (0x323), region = 32 }
   0xb   : > { %v3901_v0 = vld [vmem:[%s5055_s2 + $0x38] sm:$0xff]  ;;  %p195_p3 = scmp.lt.s32.totalorder %s3464_s16, 1  ;;  %v4182_v1 = vmov 0.0   ;;  %v3900_v2 = vld [vmem:[%s5055_s2 + $0x30] sm:$0xff]  ;;  %v273_v3 = vld [vmem:[%s5054_s1] sm:$0x3] }
   0xc   : > { %384 = vst [vmem:[#allocation2 + $0x60] sm:$0xff] %v4182_v1  ;;  %4140 = vmatpush.bf16.msra.mxu1 %v3901_v0  ;;  %4141 = vmatpush.bf16.msra.mxu2 %v3901_v0  ;;  %v4240_v4 = vperm.slane %v273_v3, 0  ;;  %v3899_v5 = vld [vmem:[%s5055_s2 + $0x28] sm:$0xff]  ;;  %v4248_v9 = vperm.slane %v273_v3, 1  ;;  %v3898_v12 = vld [vmem:[%s5055_s2 + $0x20] sm:$0xff]  ;;  %v3897_v17 = vld [vmem:[%s5055_s2 + $0x18] sm:$0xff] }
   0xd   : > { %s5079_s16 = smov (!%p195_p3, %s3464_s16), 1  ;;  %385 = vst [vmem:[#allocation2 + $0x68] sm:$0xff] %v4182_v1  ;;  %4142 = vmatpush.bf16.msra.mxu3 %v3901_v0  ;;  %635 = vmatpush.bf16.msra.mxu0 %v3901_v0  ;;  %v3896_v18 = vld [vmem:[%s5055_s2 + $0x10] sm:$0xff]  ;;  %v3895_v19 = vld [vmem:[%s5055_s2 + $0x8] sm:$0xff]  ;;  %v3894_v20 = vld [vmem:[%s5055_s2] sm:$0xff]  ;;  %v4183_v32 = vmov 0.0|0.0  }
   0xe   : > { %386 = vst [vmem:[#allocation2 + $0x70] sm:$0x3] %v4182_v1  ;;  %s3892_s23 = sshll.u32 %s5079_s16, 7  ;;  %v3917_v26 = vld [vmem:[%s5055_s2 + $0xb8] sm:$0xff]  ;;  %v3916_v33 = vld [vmem:[%s5055_s2 + $0xb0] sm:$0xff]  ;;  %vm3375_vm0 = vcmask 1040384  }
   0xf   : > { %372 = vst [vmem:[#allocation2] sm:$0xff] %v4182_v1  ;;  %s4238_s26 = scalar_lea.vmem %s5053_s0, %s3892_s23  ;;  %v3925_v27 = vld [vmem:[%s5055_s2 + $0xf8] sm:$0xff]  ;;  %v3924_v35 = vld [vmem:[%s5055_s2 + $0xf0] sm:$0xff]  ;;  %s4994_s10 = scalar_lea.vmem %s5056_s3, %s3892_s23 }
  0x10   : > { %373 = vst [vmem:[#allocation2 + $0x8] sm:$0xff] %v4182_v1  ;;  %4143 = vmatpush.bf16.msra.mxu1 %v3900_v2  ;;  %4144 = vmatpush.bf16.msra.mxu2 %v3900_v2  ;;  %v4112_v6 = vld [vmem:[%s4238_s26 + $0x18] sm:$0xff]   ;;  %v3908_v36 = vld [vmem:[%s5055_s2 + $0x70] sm:$0xff]  ;;  %v4113_v38 = vld [vmem:[%s4238_s26 + $0x20] sm:$0xff]   ;;  %s3473_s23 = sshll.u32 %s5079_s16, 1 }
  0x11   : > { %374 = vst [vmem:[#allocation2 + $0x10] sm:$0x3] %v4182_v1  ;;  %4145 = vmatpush.bf16.msra.mxu3 %v3900_v2  ;;  %636 = vmatpush.bf16.msra.mxu0 %v3900_v2  ;;  %v3980_v7 = vunpack.c.l.bf16 %v4112_v6  ;;  %v3981_v8 = vunpack.c.h.bf16 %v4112_v6  ;;  %v4116_v24 = vld [vmem:[%s4238_s26 + $0x38] sm:$0xff]   ;;  %v4117_v40 = vld [vmem:[%s4238_s26 + $0x40] sm:$0xff]   ;;  %v3984_v43 = vunpack.c.l.bf16 %v4113_v38  ;;  %v3985_v44 = vunpack.c.h.bf16 %v4113_v38  ;;  %v4114_v62 = vld [vmem:[%s4238_s26 + $0x28] sm:$0xff]   ;;  %s208_s13 = scalar_lea.vmem %s5057_s4, %s3473_s23 }
  0x12   : > { %375 = vst [vmem:[#allocation2 + $0x18] sm:$0xff] %v4182_v1  ;;  %v4120_v25 = vld [vmem:[%s4238_s26 + $0x58] sm:$0xff]   ;;  %v3996_v29 = vunpack.c.l.bf16 %v4116_v24  ;;  %v3997_v31 = vunpack.c.h.bf16 %v4116_v24  ;;  %v4121_v45 = vld [vmem:[%s4238_s26 + $0x60] sm:$0xff]   ;;  %v4000_v47 = vunpack.c.l.bf16 %v4117_v40  ;;  %v4001_v49 = vunpack.c.h.bf16 %v4117_v40  ;;  %v4118_v63 = vld [vmem:[%s4238_s26 + $0x48] sm:$0xff]  }
  0x13   : > { %376 = vst [vmem:[#allocation2 + $0x20] sm:$0xff] %v4182_v1  ;;  %v281_v10 = vmul.f32 %v3980_v7, %v4240_v4  ;;  %v282_v11 = vmul.f32 %v3981_v8, %v4240_v4  ;;  %v3909_v28 = vld [vmem:[%s5055_s2 + $0x78] sm:$0xff]  ;;  %v4012_v34 = vunpack.c.l.bf16 %v4120_v25  ;;  %v4013_v37 = vunpack.c.h.bf16 %v4120_v25  ;;  %v3967_v53 = vld [vmem:[%s4238_s26] sm:$0xff]   ;;  %v4122_v6 = vld [vmem:[%s4238_s26 + $0x68] sm:$0xff]  }
  0x14   : > { %377 = vst [vmem:[#allocation2 + $0x28] sm:$0x3] %v4182_v1  ;;  %4146 = vmatpush.bf16.msra.mxu1 %v3899_v5  ;;  %4147 = vmatpush.bf16.msra.mxu2 %v3899_v5  ;;  %v3933_v30 = vld [vmem:[%s5055_s2 + $0x138] sm:$0xff]  ;;  %v289_v39 = vmul.f32 %v3996_v29, %v4240_v4  ;;  %v290_v41 = vmul.f32 %v3997_v31, %v4240_v4  ;;  %v4016_v51 = vunpack.c.l.bf16 %v4121_v45  ;;  %v4017_v52 = vunpack.c.h.bf16 %v4121_v45  ;;  %v4110_v29 = vld [vmem:[%s4238_s26 + $0x8] sm:$0xff]  }
  0x15   : > { %378 = vst [vmem:[#allocation2 + $0x30] sm:$0xff] %v4182_v1  ;;  %4148 = vmatpush.bf16.msra.mxu3 %v3899_v5  ;;  %637 = vmatpush.bf16.msra.mxu0 %v3899_v5  ;;  %v4260_v13 = vadd.f32 %v4248_v9, %v281_v10  ;;  %v4263_v14 = vadd.f32 %v4248_v9, %v282_v11  ;;  %v3968_v61 = vunpack.c.l.bf16 %v3967_v53  ;;  %v3969_v5 = vunpack.c.h.bf16 %v3967_v53 }
  0x16   : > { %379 = vst [vmem:[#allocation2 + $0x38] sm:$0xff] %v4182_v1  ;;  %v297_v42 = vmul.f32 %v4012_v34, %v4240_v4  ;;  %v298_v46 = vmul.f32 %v4013_v37, %v4240_v4  ;;  %v322_v48 = vadd.f32 %v4248_v9, %v289_v39  ;;  %v323_v50 = vadd.f32 %v4248_v9, %v290_v41  ;;  %v3922_v34 = vld [vmem:[%s5055_s2 + $0xe0] sm:$0xff] }
  0x17   : > { %380 = vst [vmem:[#allocation2 + $0x40] sm:$0x3] %v4182_v1  ;;  %v346_v15 = vmax.f32 %v4260_v13, 0.0  ;;  %v347_v16 = vmax.f32 %v4263_v14, 0.0  ;;  %v283_v55 = vmul.f32 %v3984_v43, %v4240_v4  ;;  %v284_v56 = vmul.f32 %v3985_v44, %v4240_v4  ;;  %v3906_v37 = vld [vmem:[%s5055_s2 + $0x60] sm:$0xff] }
  0x18   : > { %381 = vst [vmem:[#allocation2 + $0x48] sm:$0xff] %v4182_v1  ;;  %4149 = vmatpush.bf16.msra.mxu1 %v3898_v12  ;;  %4150 = vmatpush.bf16.msra.mxu2 %v3898_v12  ;;  %v330_v54 = vadd.f32 %v4248_v9, %v297_v42  ;;  %v331_v57 = vadd.f32 %v4248_v9, %v298_v46  ;;  %v354_v59 = vmax.f32 %v322_v48, 0.0  ;;  %v355_v0 = vmax.f32 %v323_v50, 0.0 }
  0x19   : > { %382 = vst [vmem:[#allocation2 + $0x50] sm:$0xff] %v4182_v1  ;;  %4151 = vmatpush.bf16.msra.mxu3 %v3898_v12  ;;  %638 = vmatpush.bf16.msra.mxu0 %v3898_v12  ;;  %v291_v58 = vmul.f32 %v4000_v47, %v4240_v4  ;;  %v292_v60 = vmul.f32 %v4001_v49, %v4240_v4  ;;  %v3988_v11 = vunpack.c.l.bf16 %v4114_v62  ;;  %v4021_v39 = vunpack.c.h.bf16 %v4122_v6 }
  0x1a   : > { %433 = vst [vmem:[#allocation2 + $0x61] sm:$0xff] %v346_v15  ;;  %v299_v2 = vmul.f32 %v4016_v51, %v4240_v4  ;;  %v300_v3 = vmul.f32 %v4017_v52, %v4240_v4  ;;  %v362_v7 = vmax.f32 %v330_v54, 0.0  ;;  %v4372_v8 = vadd.f32 %v4248_v9, %v283_v55 }
  0x1b   : > { %434 = vst [vmem:[#allocation2 + $0x69] sm:$0xff] %v347_v16  ;;  %v4375_v10 = vadd.f32 %v4248_v9, %v284_v56  ;;  %v363_v12 = vmax.f32 %v331_v57, 0.0  ;;  %v4392_v24 = vadd.f32 %v4248_v9, %v292_v60  ;;  %v275_v25 = vmul.f32 %v3968_v61, %v4240_v4 }
  0x1c   : > { %383 = vst [vmem:[#allocation2 + $0x58] sm:$0x3] %v4182_v1  ;;  %4152 = vmatpush.bf16.msra.mxu1 %v3897_v17  ;;  %4153 = vmatpush.bf16.msra.mxu2 %v3897_v17  ;;  %v333_v31 = vadd.f32 %v4248_v9, %v300_v3  ;;  %v285_v38 = vmul.f32 %v3988_v11, %v4240_v4  ;;  %v3972_v43 = vunpack.c.l.bf16 %v4110_v29  ;;  %v3973_v47 = vunpack.c.h.bf16 %v4110_v29 }
  0x1d   : > { %387 = vst [vmem:[#allocation2 + $0x78] sm:$0xff] %v4182_v1  ;;  %4154 = vmatpush.bf16.msra.mxu3 %v3897_v17  ;;  %639 = vmatpush.bf16.msra.mxu0 %v3897_v17  ;;  %v4379_v17 = vadd.f32 %v4248_v9, %v291_v58  ;;  %v4422_v44 = vadd.f32 %v4248_v9, %v275_v25  ;;  %v357_v48 = vmax.f32 %v4392_v24, 0.0 }
  0x1e   : > { %388 = vst [vmem:[#allocation2 + $0x80] sm:$0xff] %v4182_v1  ;;  %v4433_v51 = vadd.f32 %v4248_v9, %v285_v38  ;;  %v302_v52 = vmul.f32 %v4021_v39, %v4240_v4  ;;  %v365_v53 = vmax.f32 %v333_v31, 0.0  ;;  %v277_v56 = vmul.f32 %v3972_v43, %v4240_v4  ;;  %v3913_v39 = vld [vmem:[%s5055_s2 + $0x98] sm:$0xff] }
  0x1f   : > { %389 = vst [vmem:[#allocation2 + $0x88] sm:$0x3] %v4182_v1  ;;  %v356_v40 = vmax.f32 %v4379_v17, 0.0  ;;  %v340_v57 = vmax.f32 %v4422_v44, 0.0  ;;  %v278_v60 = vmul.f32 %v3973_v47, %v4240_v4  ;;  %v3905_v47 = vld [vmem:[%s5055_s2 + $0x58] sm:$0xff]  ;;  %v3956_v44 = vld [vmem:[%s5055_s2 + $0x1f0] sm:$0xff] }
  0x20   : > { %390 = vst [vmem:[#allocation2 + $0x90] sm:$0xff] %v4182_v1  ;;  %4155 = vmatpush.bf16.msra.mxu1 %v3896_v18  ;;  %4156 = vmatpush.bf16.msra.mxu2 %v3896_v18  ;;  %v4461_v11 = vadd.f32 %v4248_v9, %v277_v56 }
  0x21   : > { %391 = vst [vmem:[#allocation2 + $0x98] sm:$0xff] %v4182_v1  ;;  %4157 = vmatpush.bf16.msra.mxu3 %v3896_v18  ;;  %640 = vmatpush.bf16.msra.mxu0 %v3896_v18  ;;  %v499_v21 = vld [vmem:[#allocation2 + $0x60] sm:$0xff]  ;;  %v3915_v18 = vld [vmem:[%s5055_s2 + $0xa8] sm:$0xff] }
  0x22   : > { %392 = vst [vmem:[#allocation2 + $0xa0] sm:$0x3] %v4182_v1  ;;  %v500_v22 = vld [vmem:[#allocation2 + $0x68] sm:$0xff] }
  0x23   : > { %393 = vst [vmem:[#allocation2 + $0xa8] sm:$0xff] %v4182_v1  ;;  %v4299_v23 = vpack.c.bf16 %v500_v22, %v499_v21  ;;  %v3989_v21 = vunpack.c.h.bf16 %v4114_v62  ;;  %v4004_v22 = vunpack.c.l.bf16 %v4118_v63 }
  0x24   : > { %394 = vst [vmem:[#allocation2 + $0xb0] sm:$0xff] %v4182_v1  ;;  %4158 = vmatpush.bf16.msra.mxu1 %v3895_v19  ;;  %4159 = vmatpush.bf16.msra.mxu2 %v3895_v19 }
  0x25   : > { %395 = vst [vmem:[#allocation2 + $0xb8] sm:$0x3] %v4182_v1  ;;  %4160 = vmatpush.bf16.msra.mxu3 %v3895_v19  ;;  %641 = vmatpush.bf16.msra.mxu0 %v3895_v19  ;;  %v3923_v19 = vld [vmem:[%s5055_s2 + $0xe8] sm:$0xff]  ;;  %v286_v41 = vmul.f32 %v3989_v21, %v4240_v4  ;;  %v293_v42 = vmul.f32 %v4004_v22, %v4240_v4  ;;  %v4115_v21 = vld [vmem:[%s4238_s26 + $0x30] sm:$0xff]  }
  0x26   : > { %396 = vst [vmem:[#allocation2 + $0xc0] sm:$0xff] %v4182_v1  ;;  %v4119_v22 = vld [vmem:[%s4238_s26 + $0x50] sm:$0xff]  }
  0x27   : > { %397 = vst [vmem:[#allocation2 + $0xc8] sm:$0xff] %v4182_v1  ;;  %v4439_v54 = vadd.f32 %v4248_v9, %v286_v41  ;;  %v4442_v55 = vadd.f32 %v4248_v9, %v293_v42  ;;  %v4008_v29 = vunpack.c.l.bf16 %v4119_v22  ;;  %v342_v41 = vmax.f32 %v4461_v11, 0.0  ;;  %v3921_v42 = vld [vmem:[%s5055_s2 + $0xd8] sm:$0xff]  ;;  %v3948_v11 = vld [vmem:[%s5055_s2 + $0x1b0] sm:$0xff] }
  0x28   : > { %398 = vst [vmem:[#allocation2 + $0xd0] sm:$0x3] %v4182_v1  ;;  %4161 = vmatpush.bf16.msra.mxu1 %v3894_v20  ;;  %4162 = vmatpush.bf16.msra.mxu2 %v3894_v20 }
  0x29   : > { %399 = vst [vmem:[#allocation2 + $0xd8] sm:$0xff] %v4182_v1  ;;  %4163 = vmatpush.bf16.msra.mxu3 %v3894_v20  ;;  %642 = vmatpush.bf16.msra.mxu0 %v3894_v20  ;;  %v3932_v20 = vld [vmem:[%s5055_s2 + $0x130] sm:$0xff] }
  0x2a   : > { %400 = vst [vmem:[#allocation2 + $0xe0] sm:$0xff] %v4182_v1 }
  0x2b   : > { %401 = vst [vmem:[#allocation2 + $0xe8] sm:$0x3] %v4182_v1  ;;  %663 = vmatmul.bf16.vlgmr.msra.gmra.mxu1 %v4299_v23 }
  0x2c   : > { %402 = vst [vmem:[#allocation2 + $0xf0] sm:$0xff] %v4182_v1  ;;  %1231 = vmatpush.bf16.msrb.mxu2 %v3917_v26  ;;  %643 = vmatmul.bf16.vlgmr.msra.gmra.mxu0 %v4183_v32  ;;  %v3907_v26 = vld [vmem:[%s5055_s2 + $0x68] sm:$0xff]  ;;  %v276_v32 = vmul.f32 %v3969_v5, %v4240_v4 }
  0x2d   : > { %403 = vst [vmem:[#allocation2 + $0xf8] sm:$0xff] %v4182_v1  ;;  %1529 = vmatpush.bf16.msrb.mxu3 %v3925_v27  ;;  %933 = vmatpush.bf16.msrb.mxu1 %v3909_v28  ;;  %v4005_v27 = vunpack.c.h.bf16 %v4118_v63  ;;  %v4020_v28 = vunpack.c.l.bf16 %v4122_v6  ;;  %v351_v6 = vmax.f32 %v4439_v54, 0.0 }
  0x2e   : > { %404 = vst [vmem:[#allocation2 + $0x100] sm:$0x3] %v4182_v1  ;;  %1827 = vmatpush.bf16.msrb.mxu0 %v3933_v30  ;;  %v332_v30 = vadd.f32 %v4248_v9, %v299_v2  ;;  %v4428_v49 = vadd.f32 %v4248_v9, %v276_v32  ;;  %v335_v2 = vadd.f32 %v4248_v9, %v302_v52 }
  0x2f   : > { %405 = vst [vmem:[#allocation2 + $0x108] sm:$0xff] %v4182_v1  ;;  %v294_v45 = vmul.f32 %v4005_v27, %v4240_v4  ;;  %v301_v46 = vmul.f32 %v4020_v28, %v4240_v4  ;;  %v3992_v27 = vunpack.c.l.bf16 %v4115_v21  ;;  %v3993_v28 = vunpack.c.h.bf16 %v4115_v21 }
  0x30   : > { %406 = vst [vmem:[#allocation2 + $0x110] sm:$0xff] %v4182_v1  ;;  %1232 = vmatpush.bf16.msrb.mxu2 %v3916_v33  ;;  %v3914_v33 = vld [vmem:[%s5055_s2 + $0xa0] sm:$0xff]  ;;  %v364_v50 = vmax.f32 %v332_v30, 0.0  ;;  %v341_v62 = vmax.f32 %v4428_v49, 0.0  ;;  %v4123_v30 = vld [vmem:[%s4238_s26 + $0x70] sm:$0xff]   ;;  %v367_v32 = vmax.f32 %v335_v2, 0.0 }
  0x31   : > { %407 = vst [vmem:[#allocation2 + $0x118] sm:$0x3] %v4182_v1  ;;  %1530 = vmatpush.bf16.msrb.mxu3 %v3924_v35  ;;  %934 = vmatpush.bf16.msrb.mxu1 %v3908_v36  ;;  %v348_v35 = vmax.f32 %v4372_v8, 0.0  ;;  %v3931_v36 = vld [vmem:[%s5055_s2 + $0x128] sm:$0xff]  ;;  %v4449_v58 = vadd.f32 %v4248_v9, %v294_v45  ;;  %v287_v43 = vmul.f32 %v3992_v27, %v4240_v4  ;;  %v3940_v49 = vld [vmem:[%s5055_s2 + $0x170] sm:$0xff]  ;;  %v3946_v8 = vld [vmem:[%s5055_s2 + $0x1a0] sm:$0xff] }
  0x32   : > { %408 = vst [vmem:[#allocation2 + $0x120] sm:$0xff] %v4182_v1  ;;  %1828 = vmatpush.bf16.msrb.mxu0 %v3932_v20  ;;  %v4467_v20 = vadd.f32 %v4248_v9, %v278_v60  ;;  %v288_v45 = vmul.f32 %v3993_v28, %v4240_v4  ;;  %v3912_v60 = vld [vmem:[%s5055_s2 + $0x90] sm:$0xff] }
  0x33   : > { %409 = vst [vmem:[#allocation2 + $0x128] sm:$0xff] %v4182_v1 }
  0x34   : > { %410 = vst [vmem:[#allocation2 + $0x130] sm:$0x3] %v4182_v1  ;;  %1233 = vmatpush.bf16.msrb.mxu2 %v3915_v18  ;;  %v5060_v18 = vmax.f32 %v4449_v58, 0.0 }
  0x35   : > { %411 = vst [vmem:[#allocation2 + $0x138] sm:$0xff] %v4182_v1  ;;  %1531 = vmatpush.bf16.msrb.mxu3 %v3923_v19  ;;  %935 = vmatpush.bf16.msrb.mxu1 %v3907_v26 }
  0x36   : > { %412 = vst [vmem:[#allocation2 + $0x140] sm:$0xff] %v4182_v1  ;;  %1829 = vmatpush.bf16.msrb.mxu0 %v3931_v36  ;;  %v4025_v36 = vunpack.c.h.bf16 %v4123_v30 }
  0x37   : > { %413 = vst [vmem:[#allocation2 + $0x148] sm:$0x3] %v4182_v1 }
  0x38   : > { %414 = vst [vmem:[#allocation2 + $0x150] sm:$0xff] %v4182_v1  ;;  %1234 = vmatpush.bf16.msrb.mxu2 %v3914_v33  ;;  %v4009_v33 = vunpack.c.h.bf16 %v4119_v22  ;;  %v304_v56 = vmul.f32 %v4025_v36, %v4240_v4 }
  0x39   : > { %415 = vst [vmem:[#allocation2 + $0x158] sm:$0xff] %v4182_v1  ;;  %1532 = vmatpush.bf16.msrb.mxu3 %v3922_v34  ;;  %936 = vmatpush.bf16.msrb.mxu1 %v3906_v37  ;;  %v4024_v34 = vunpack.c.l.bf16 %v4123_v30  ;;  %v4111_v37 = vld [vmem:[%s4238_s26 + $0x10] sm:$0xff]  }
  0x3a   : > { %416 = vst [vmem:[#allocation2 + $0x160] sm:$0x3] %v4182_v1  ;;  %v296_v52 = vmul.f32 %v4009_v33, %v4240_v4  ;;  %v3976_v2 = vunpack.c.l.bf16 %v4111_v37  ;;  %v337_v28 = vadd.f32 %v4248_v9, %v304_v56 }
  0x3b   : > { %417 = vst [vmem:[#allocation2 + $0x168] sm:$0xff] %v4182_v1 }
  0x3c   : > { %418 = vst [vmem:[#allocation2 + $0x170] sm:$0xff] %v4182_v1  ;;  %1235 = vmatpush.bf16.msrb.mxu2 %v3913_v39  ;;  %v4525_v21 = vadd.f32 %v4248_v9, %v296_v52 }
  0x3d   : > { %419 = vst [vmem:[#allocation2 + $0x178] sm:$0x3] %v4182_v1  ;;  %1533 = vmatpush.bf16.msrb.mxu3 %v3921_v42  ;;  %937 = vmatpush.bf16.msrb.mxu1 %v3905_v47 }
  0x3e   : > { %420 = vst [vmem:[#allocation2 + $0x180] sm:$0xff] %v4182_v1 }
  0x3f   : > { %421 = vst [vmem:[#allocation2 + $0x188] sm:$0xff] %v4182_v1 }
  0x40   : > { %422 = vst [vmem:[#allocation2 + $0x190] sm:$0x3] %v4182_v1  ;;  %1236 = vmatpush.bf16.msrb.mxu2 %v3912_v60 }
  0x41   : > { %423 = vst [vmem:[#allocation2 + $0x198] sm:$0xff] %v4182_v1 }
  0x42   : > { %424 = vst [vmem:[#allocation2 + $0x1a0] sm:$0xff] %v4182_v1 }
  0x43   : > { %425 = vst [vmem:[#allocation2 + $0x1a8] sm:$0x3] %v4182_v1  ;;  %v349_v1 = vmax.f32 %v4375_v10, 0.0  ;;  %v3954_v10 = vld [vmem:[%s5055_s2 + $0x1e0] sm:$0xff] }
  0x44   : > { %441 = vst [vmem:[#allocation2 + $0xc1] sm:$0xff] %v354_v59  ;;  %v334_v59 = vadd.f32 %v4248_v9, %v301_v46  ;;  %v3930_v46 = vld [vmem:[%s5055_s2 + $0x120] sm:$0xff] }
  0x45   : > { %442 = vst [vmem:[#allocation2 + $0xc9] sm:$0xff] %v355_v0  ;;  %v350_v0 = vmax.f32 %v4433_v51, 0.0  ;;  %1830 = vmatpush.bf16.msrb.mxu0 %v3930_v46  ;;  %v1750_v13 = vpack.c.bf16 %v349_v1, %v348_v35 }
  0x46   : > { %449 = vst [vmem:[#allocation2 + $0x121] sm:$0xff] %v362_v7  ;;  %v358_v7 = vmax.f32 %v4442_v55, 0.0  ;;  %v366_v19 = vmax.f32 %v334_v59, 0.0  ;;  %v343_v59 = vmax.f32 %v4467_v20, 0.0 }
  0x47   : > { %450 = vst [vmem:[#allocation2 + $0x129] sm:$0xff] %v363_v12 }
  0x48   : > { %435 = vst [vmem:[#allocation2 + $0x79] sm:$0xff] %v348_v35 }
  0x49   : > { %436 = vst [vmem:[#allocation2 + $0x81] sm:$0xff] %v349_v1 }
  0x4a   : > { %443 = vst [vmem:[#allocation2 + $0xd9] sm:$0xff] %v356_v40 }
  0x4b   : > { %v507_v61 = vld [vmem:[#allocation2 + $0xc0] sm:$0xff]  ;;  %444 = vst [vmem:[#allocation2 + $0xe1] sm:$0xff] %v357_v48 }
  0x4c   : > { %v508_v63 = vld [vmem:[#allocation2 + $0xc8] sm:$0xff]  ;;  %451 = vst [vmem:[#allocation2 + $0x139] sm:$0xff] %v364_v50  ;;  %v295_v50 = vmul.f32 %v4008_v29, %v4240_v4 }
  0x4d   : > { %v563_v3 = vpack.c.bf16 %v508_v63, %v507_v61  ;;  %v515_v5 = vld [vmem:[#allocation2 + $0x120] sm:$0xff]  ;;  %452 = vst [vmem:[#allocation2 + $0x141] sm:$0xff] %v365_v53  ;;  %v303_v53 = vmul.f32 %v4024_v34, %v4240_v4  ;;  %v4510_v61 = vadd.f32 %v4248_v9, %v287_v43  ;;  %v4513_v63 = vadd.f32 %v4248_v9, %v288_v45 }
  0x4e   : > { %v516_v12 = vld [vmem:[#allocation2 + $0x128] sm:$0xff]  ;;  %427 = vst [vmem:[#allocation2 + $0x19] sm:$0xff] %v340_v57  ;;  %v279_v34 = vmul.f32 %v3976_v2, %v4240_v4  ;;  %v369_v43 = vmax.f32 %v337_v28, 0.0 }
  0x4f   : > { %683 = vmatmul.bf16.vlgmr.msra.gmra.mxu2 %v563_v3  ;;  %v567_v25 = vpack.c.bf16 %v516_v12, %v515_v5  ;;  %v501_v26 = vld [vmem:[#allocation2 + $0x78] sm:$0xff]  ;;  %428 = vst [vmem:[#allocation2 + $0x21] sm:$0xff] %v341_v62  ;;  %v3920_v3 = vld [vmem:[%s5055_s2 + $0xd0] sm:$0xff]  ;;  %v4522_v12 = vadd.f32 %v4248_v9, %v295_v50  ;;  %v336_v22 = vadd.f32 %v4248_v9, %v303_v53  ;;  %v353_v27 = vmax.f32 %v4513_v63, 0.0 }
  0x50   : > { %v502_v31 = vld [vmem:[#allocation2 + $0x80] sm:$0xff]  ;;  %437 = vst [vmem:[#allocation2 + $0x91] sm:$0xff] %v350_v0  ;;  %v3929_v5 = vld [vmem:[%s5055_s2 + $0x118] sm:$0xff]  ;;  %1534 = vmatpush.bf16.msrb.mxu3 %v3920_v3  ;;  %v4550_v45 = vadd.f32 %v4248_v9, %v279_v34 }
  0x51   : > { %703 = vmatmul.bf16.vlgmr.msra.gmra.mxu3 %v567_v25  ;;  %v4477_v38 = vpack.c.bf16 %v502_v31, %v501_v26  ;;  %438 = vst [vmem:[#allocation2 + $0x99] sm:$0xff] %v351_v6  ;;  %v352_v26 = vmax.f32 %v4510_v61, 0.0  ;;  %v5059_v30 = vmax.f32 %v4522_v12, 0.0  ;;  %v3977_v31 = vunpack.c.h.bf16 %v4111_v37  ;;  %v509_v36 = vld [vmem:[#allocation2 + $0xd8] sm:$0xff]  ;;  %1831 = vmatpush.bf16.msrb.mxu0 %v3929_v5  ;;  %v3910_v34 = vld [vmem:[%s5055_s2 + $0x80] sm:$0xff] }
  0x52   : > { %445 = vst [vmem:[#allocation2 + $0xf1] sm:$0xff] %v358_v7  ;;  %v510_v39 = vld [vmem:[#allocation2 + $0xe0] sm:$0xff]  ;;  %v368_v42 = vmax.f32 %v336_v22, 0.0  ;;  %v344_v53 = vmax.f32 %v4550_v45, 0.0  ;;  %v3947_v45 = vld [vmem:[%s5055_s2 + $0x1a8] sm:$0xff]  ;;  %v3945_v63 = vld [vmem:[%s5055_s2 + $0x198] sm:$0xff] }
  0x53   : > { %668 = vmatmul.bf16.gmra.mxu1 %v4477_v38  ;;  %446 = vst [vmem:[#allocation2 + $0xf9] sm:$0xff] %v5060_v18  ;;  %v280_v37 = vmul.f32 %v3977_v31, %v4240_v4  ;;  %v517_v46 = vld [vmem:[#allocation2 + $0x138] sm:$0xff]  ;;  %v4557_v52 = vpack.c.bf16 %v510_v39, %v509_v36  ;;  %v3903_v31 = vld [vmem:[%s5055_s2 + $0x48] sm:$0xff]  ;;  %v3918_v36 = vld [vmem:[%s5055_s2 + $0xc0] sm:$0xff] }
  0x54   : > { %453 = vst [vmem:[#allocation2 + $0x151] sm:$0xff] %v366_v19  ;;  %v3904_v19 = vld [vmem:[%s5055_s2 + $0x50] sm:$0xff]  ;;  %v518_v47 = vld [vmem:[#allocation2 + $0x140] sm:$0xff]  ;;  %v3927_v39 = vld [vmem:[%s5055_s2 + $0x108] sm:$0xff] }
  0x55   : > { %v493_v25 = vld [vmem:[#allocation2 + $0x18] sm:$0xff]  ;;  %454 = vst [vmem:[#allocation2 + $0x159] sm:$0xff] %v367_v32  ;;  %v5058_v32 = vmax.f32 %v4525_v21, 0.0  ;;  %938 = vmatpush.bf16.msrb.mxu1 %v3904_v19  ;;  %v4555_v50 = vadd.f32 %v4248_v9, %v280_v37  ;;  %v568_v3 = vpack.c.bf16 %v518_v47, %v517_v46  ;;  %v3919_v19 = vld [vmem:[%s5055_s2 + $0xc8] sm:$0xff]  ;;  %v3902_v37 = vld [vmem:[%s5055_s2 + $0x40] sm:$0xff] }
  0x56   : > { %v494_v29 = vld [vmem:[#allocation2 + $0x20] sm:$0xff]  ;;  %429 = vst [vmem:[#allocation2 + $0x31] sm:$0xff] %v342_v41  ;;  %1535 = vmatpush.bf16.msrb.mxu3 %v3919_v19 }
  0x57   : > { %v4537_v33 = vpack.c.bf16 %v494_v29, %v493_v25  ;;  %430 = vst [vmem:[#allocation2 + $0x39] sm:$0xff] %v343_v59  ;;  %v503_v56 = vld [vmem:[#allocation2 + $0x90] sm:$0xff]  ;;  %v345_v2 = vmax.f32 %v4555_v50, 0.0  ;;  %v3911_v25 = vld [vmem:[%s5055_s2 + $0x88] sm:$0xff]  ;;  %v3926_v47 = vld [vmem:[%s5055_s2 + $0x100] sm:$0xff] }
  0x58   : > { %439 = vst [vmem:[#allocation2 + $0xa9] sm:$0xff] %v352_v26  ;;  %v504_v60 = vld [vmem:[#allocation2 + $0x98] sm:$0xff]  ;;  %v3928_v29 = vld [vmem:[%s5055_s2 + $0x110] sm:$0xff]  ;;  %1237 = vmatpush.bf16.msrb.mxu2 %v3911_v25  ;;  %v3955_v50 = vld [vmem:[%s5055_s2 + $0x1e8] sm:$0xff] }
  0x59   : > { %648 = vmatmul.bf16.gmra.mxu0 %v4537_v33  ;;  %440 = vst [vmem:[#allocation2 + $0xb1] sm:$0xff] %v353_v27  ;;  %v4566_v5 = vpack.c.bf16 %v504_v60, %v503_v56  ;;  %939 = vmatpush.bf16.msrb.mxu1 %v3903_v31  ;;  %v3957_v31 = vld [vmem:[%s5055_s2 + $0x1f8] sm:$0xff]  ;;  %v1748_v20 = vpack.c.bf16 %v345_v2, %v344_v53 }
  0x5a   : > { %447 = vst [vmem:[#allocation2 + $0x109] sm:$0xff] %v5059_v30  ;;  %1832 = vmatpush.bf16.msrb.mxu0 %v3928_v29  ;;  %v512_v46 = vld [vmem:[#allocation2 + $0xf8] sm:$0xff]  ;;  %1536 = vmatpush.bf16.msrb.mxu3 %v3918_v36 }
  0x5b   : > { %448 = vst [vmem:[#allocation2 + $0x111] sm:$0xff] %v5058_v32  ;;  %v519_v56 = vld [vmem:[#allocation2 + $0x150] sm:$0xff]  ;;  %v3949_v29 = vld [vmem:[%s5055_s2 + $0x1b8] sm:$0xff] }
  0x5c   : > { %455 = vst [vmem:[#allocation2 + $0x169] sm:$0xff] %v368_v42  ;;  %1238 = vmatpush.bf16.msrb.mxu2 %v3910_v34  ;;  %v520_v60 = vld [vmem:[#allocation2 + $0x158] sm:$0xff] }
  0x5d   : > { %456 = vst [vmem:[#allocation2 + $0x171] sm:$0xff] %v369_v43  ;;  %v495_v22 = vld [vmem:[#allocation2 + $0x30] sm:$0xff]  ;;  %940 = vmatpush.bf16.msrb.mxu1 %v3902_v37  ;;  %v569_v19 = vpack.c.bf16 %v520_v60, %v519_v56  ;;  %v3941_v34 = vld [vmem:[%s5055_s2 + $0x178] sm:$0xff] }
  0x5e   : > { %431 = vst [vmem:[#allocation2 + $0x49] sm:$0xff] %v344_v53  ;;  %v496_v28 = vld [vmem:[#allocation2 + $0x38] sm:$0xff]  ;;  %v511_v43 = vld [vmem:[#allocation2 + $0xf0] sm:$0xff]  ;;  %1833 = vmatpush.bf16.msrb.mxu0 %v3927_v39  ;;  %2722 = vmatpush.bf16.msra.mxu3 %v3957_v31  ;;  %v1746_v31 = vpack.c.bf16 %v341_v62, %v340_v57  ;;  %v3939_v53 = vld [vmem:[%s5055_s2 + $0x168] sm:$0xff] }
  0x5f   : > { %688 = vmatmul.bf16.gmra.mxu2 %v4557_v52  ;;  %432 = vst [vmem:[#allocation2 + $0x51] sm:$0xff] %v345_v2  ;;  %v4592_v42 = vpack.c.bf16 %v496_v28, %v495_v22  ;;  %v505_v22 = vld [vmem:[#allocation2 + $0xa8] sm:$0xff]  ;;  %v3965_v37 = vld [vmem:[%s5055_s2 + $0x238] sm:$0xff]  ;;  %v3964_v57 = vld [vmem:[%s5055_s2 + $0x230] sm:$0xff] }
  0x60   : > { %v506_v25 = vld [vmem:[#allocation2 + $0xb0] sm:$0xff]  ;;  %2424 = vmatpush.bf16.msra.mxu2 %v3949_v29  ;;  %v1747_v29 = vpack.c.bf16 %v343_v59, %v342_v41  ;;  %v1088_v62 = vld [vmem:[#allocation2 + $0x1a] sm:$0xff]  ;;  %v1089_v41 = vld [vmem:[#allocation2 + $0x22] sm:$0xff] }
  0x61   : > { %708 = vmatmul.bf16.gmra.mxu3 %v568_v3  ;;  %v4601_v3 = vpack.c.bf16 %v512_v46, %v511_v43  ;;  %v4604_v28 = vpack.c.bf16 %v506_v25, %v505_v22  ;;  %2125 = vmatpush.bf16.msra.mxu1 %v3941_v34  ;;  %v513_v46 = vld [vmem:[#allocation2 + $0x108] sm:$0xff]  ;;  %v4647_v59 = vpack.c.bf16 %v1089_v41, %v1088_v62  ;;  %v1098_v62 = vld [vmem:[#allocation2 + $0x92] sm:$0xff]  ;;  %v1099_v41 = vld [vmem:[#allocation2 + $0x9a] sm:$0xff] }
  0x62   : > { %1834 = vmatpush.bf16.msrb.mxu0 %v3926_v47  ;;  %v514_v47 = vld [vmem:[#allocation2 + $0x110] sm:$0xff]  ;;  %v788_v25 = vld [vmem:[#allocation2 + $0x1] sm:$0xff]  ;;  %2723 = vmatpush.bf16.msra.mxu3 %v3956_v44 }
  0x63   : > { %673 = vmatmul.bf16.gmra.mxu1 %v4566_v5  ;;  %v521_v56 = vld [vmem:[#allocation2 + $0x168] sm:$0xff]  ;;  %v4619_v22 = vpack.c.bf16 %v514_v47, %v513_v46 }
  0x64   : > { %v522_v60 = vld [vmem:[#allocation2 + $0x170] sm:$0xff]  ;;  %v1086_v34 = vld [vmem:[#allocation2 + $0x2] sm:$0xff]  ;;  %2425 = vmatpush.bf16.msra.mxu2 %v3948_v11 }
  0x65   : > { %v497_v36 = vld [vmem:[#allocation2 + $0x48] sm:$0xff]  ;;  %v570_v32 = vpack.c.bf16 %v522_v60, %v521_v56  ;;  %2126 = vmatpush.bf16.msra.mxu1 %v3940_v49 }
  0x66   : > { %v498_v39 = vld [vmem:[#allocation2 + $0x50] sm:$0xff]  ;;  %3020 = vmatpush.bf16.msra.mxu0 %v3965_v37  ;;  %2724 = vmatpush.bf16.msra.mxu3 %v3955_v50  ;;  %v3963_v2 = vld [vmem:[%s5055_s2 + $0x228] sm:$0xff] }
  0x67   : > { %v558_v43 = vpack.c.bf16 %v498_v39, %v497_v36  ;;  %v1087_v36 = vld [vmem:[#allocation2 + $0xa] sm:$0xff] }
  0x68   : > { %v1150_v39 = vpack.c.bf16 %v1087_v36, %v1086_v34  ;;  %2426 = vmatpush.bf16.msra.mxu2 %v3947_v45  ;;  %v1092_v37 = vld [vmem:[#allocation2 + $0x4a] sm:$0xff]  ;;  %v1096_v34 = vld [vmem:[#allocation2 + $0x7a] sm:$0xff]  ;;  %v1097_v36 = vld [vmem:[#allocation2 + $0x82] sm:$0xff] }
  0x69   : > { %653 = vmatmul.bf16.gmra.mxu0 %v4592_v42  ;;  %2127 = vmatpush.bf16.msra.mxu1 %v3939_v53  ;;  %v1696_v53 = vld [vmem:[#allocation2 + $0xc1] sm:$0xff] }
  0x6a   : > { %3021 = vmatpush.bf16.msra.mxu0 %v3964_v57  ;;  %2725 = vmatpush.bf16.msra.mxu3 %v3954_v10 }
  0x6c   : > { %2427 = vmatpush.bf16.msra.mxu2 %v3946_v8 }
  0x6e   : > { %3022 = vmatpush.bf16.msra.mxu0 %v3963_v2  ;;  %v1697_v2 = vld [vmem:[#allocation2 + $0xc9] sm:$0xff] }
  0x6f   : > { %693 = vmatmul.bf16.gmra.mxu2 %v4601_v3 }
  0x70   : > { %2428 = vmatpush.bf16.msra.mxu2 %v3945_v63 }
  0x71   : > { %713 = vmatmul.bf16.gmra.mxu3 %v569_v19  ;;  %v789_v19 = vld [vmem:[#allocation2 + $0x9] sm:$0xff] }
  0x72   : > { %v852_v30 = vpack.c.bf16 %v789_v19, %v788_v25  ;;  %v3938_v19 = vld [vmem:[%s5055_s2 + $0x160] sm:$0xff] }
  0x73   : > { %678 = vmatmul.bf16.gmra.mxu1 %v4604_v28 }
  0x74   : > { %2128 = vmatpush.bf16.msra.mxu1 %v3938_v19  ;;  %v1398_v19 = vld [vmem:[#allocation2 + $0xc0] sm:$0xff] }
  0x79   : > { %658 = vmatmul.bf16.gmra.mxu0 %v558_v43 }
  0x7f   : > { %698 = vmatmul.bf16.gmra.mxu2 %v4619_v22 }
  0x81   : > { %718 = vmatmul.bf16.gmra.mxu3 %v570_v32 }
  0x83   : > { %941 = vmatmul.bf16.vlgmr.msrb.gmra.mxu1 %v852_v30  ;;  %v1090_v30 = vld [vmem:[#allocation2 + $0x32] sm:$0xff] }
  0x89   : > { %1835 = vmatmul.bf16.vlgmr.msrb.gmra.mxu0 %v1746_v31 }
  0x8f   : > { %1239 = vmatmul.bf16.vlgmr.msrb.gmra.mxu2 %v1150_v39 }
  0x91   : > { %1537 = vmatmul.bf16.vlgmr.msrb.gmra.mxu3 %v4537_v33  ;;  %v1091_v33 = vld [vmem:[#allocation2 + $0x3a] sm:$0xff] }
  0x92   : > { %v4651_v32 = vpack.c.bf16 %v1091_v33, %v1090_v30 }
  0x93   : > { %946 = vmatmul.bf16.gmra.mxu1 %v1746_v31 }
  0x99   : > { %1840 = vmatmul.bf16.gmra.mxu0 %v1747_v29 }
  0x9f   : > { %1244 = vmatmul.bf16.gmra.mxu2 %v4647_v59 }
  0xa1   : > { %1542 = vmatmul.bf16.gmra.mxu3 %v4592_v42  ;;  %v1749_v42 = vpack.c.bf16 %v347_v16, %v346_v15  ;;  %v1094_v15 = vld [vmem:[#allocation2 + $0x62] sm:$0xff]  ;;  %v1095_v16 = vld [vmem:[#allocation2 + $0x6a] sm:$0xff] }
  0xa2   : > { %v4684_v60 = vpack.c.bf16 %v1095_v16, %v1094_v15  ;;  %v1100_v15 = vld [vmem:[#allocation2 + $0xaa] sm:$0xff]  ;;  %v1101_v16 = vld [vmem:[#allocation2 + $0xb2] sm:$0xff] }
  0xa3   : > { %951 = vmatmul.bf16.gmra.mxu1 %v1747_v29  ;;  %v1751_v29 = vpack.c.bf16 %v351_v6, %v350_v0  ;;  %v1752_v6 = vpack.c.bf16 %v353_v27, %v352_v26  ;;  %v3953_v26 = vld [vmem:[%s5055_s2 + $0x1d8] sm:$0xff] }
  0xa4   : > { %2726 = vmatpush.bf16.msra.mxu3 %v3953_v26  ;;  %v1754_v26 = vpack.c.bf16 %v357_v48, %v356_v40 }
  0xa8   : > { %v4672_v47 = vpop.f32.mrf.mxu1 }
  0xa9   : > { %1845 = vmatmul.bf16.gmra.mxu0 %v1748_v20  ;;  %v4676_v56 = vpop.f32.mrf.mxu0 }
  0xaf   : > { %1249 = vmatmul.bf16.gmra.mxu2 %v4651_v32 }
  0xb0   : > { %v4682_v14 = vpop.f32.mrf.mxu1 }
  0xb1   : > { %1547 = vmatmul.bf16.gmra.mxu3 %v558_v43  ;;  %v1093_v43 = vld [vmem:[#allocation2 + $0x52] sm:$0xff]  ;;  %v4686_v25 = vpop.f32.mrf.mxu0 }
  0xb2   : > { %v4670_v46 = vpack.c.bf16 %v1093_v43, %v1092_v37  ;;  %v1753_v37 = vpack.c.bf16 %v1697_v2, %v1696_v53  ;;  %v3961_v43 = vld [vmem:[%s5055_s2 + $0x218] sm:$0xff]  ;;  %v1102_v2 = vld [vmem:[#allocation2 + $0xc2] sm:$0xff] }
  0xb3   : > { %956 = vmatmul.bf16.gmra.mxu1 %v1748_v20  ;;  %v4718_v20 = vpack.c.bf16 %v1097_v36, %v1096_v34 }
  0xb9   : > { %1850 = vmatmul.bf16.gmra.mxu0 %v1749_v42 }
  0xbf   : > { %1254 = vmatmul.bf16.gmra.mxu2 %v4670_v46 }
  0xc1   : > { %1552 = vmatmul.bf16.gmra.mxu3 %v4299_v23 }
  0xc3   : > { %961 = vmatmul.bf16.gmra.mxu1 %v1749_v42 }
  0xc9   : > { %1855 = vmatmul.bf16.gmra.mxu0 %v1750_v13 }
  0xcf   : > { %1259 = vmatmul.bf16.gmra.mxu2 %v4684_v60 }
  0xd0   : > { %v4689_v23 = vpop.f32.mrf.mxu1 }
  0xd1   : > { %1557 = vmatmul.bf16.gmra.mxu3 %v4477_v38  ;;  %v3962_v38 = vld [vmem:[%s5055_s2 + $0x220] sm:$0xff] }
  0xd2   : > { %v4698_v35 = vpop.f32.mrf.mxu2  ;;  %3023 = vmatpush.bf16.msra.mxu0 %v3962_v38  ;;  %v1399_v38 = vld [vmem:[#allocation2 + $0xc8] sm:$0xff] }
  0xd3   : > { %966 = vmatmul.bf16.gmra.mxu1 %v1750_v13  ;;  %v1455_v36 = vpack.c.bf16 %v1399_v38, %v1398_v19 }
  0xd4   : > { %v4700_v1 = vpop.f32.mrf.mxu3 }
  0xd6   : > { %v4712_v31 = vpop.f32.mrf.mxu0  ;;  %3024 = vmatpush.bf16.msra.mxu0 %v3961_v43 }
  0xd8   : > { %v4714_v39 = vpop.f32.mrf.mxu1 }
  0xd9   : > { %1860 = vmatmul.bf16.gmra.mxu0 %v1751_v29 }
  0xda   : > { %v4716_v11 = vpop.f32.mrf.mxu2 }
  0xdc   : > { %v4720_v44 = vpop.f32.mrf.mxu3 }
  0xde   : > { %v4722_v49 = vpop.f32.mrf.mxu0 }
  0xdf   : > { %1264 = vmatmul.bf16.gmra.mxu2 %v4718_v20 }
  0xe0   : > { %v4725_v51 = vpop.f32.mrf.mxu1 }
  0xe1   : > { %1562 = vmatmul.bf16.gmra.mxu3 %v4566_v5  ;;  %v4742_v5 = vpack.c.bf16 %v1099_v41, %v1098_v62 }
  0xe2   : > { %v4728_v54 = vpop.f32.mrf.mxu2 }
  0xe3   : > { %971 = vmatmul.bf16.gmra.mxu1 %v1751_v29  ;;  %v4774_v29 = vpack.c.bf16 %v1101_v16, %v1100_v15 }
  0xe4   : > { %v4730_v0 = vpop.f32.mrf.mxu3 }
  0xe6   : > { %v4736_v57 = vpop.f32.mrf.mxu0 }
  0xe8   : > { %v4738_v30 = vpop.f32.mrf.mxu1 }
  0xe9   : > { %1865 = vmatmul.bf16.gmra.mxu0 %v1752_v6 }
  0xea   : > { %v4740_v33 = vpop.f32.mrf.mxu2 }
  0xec   : > { %v4744_v45 = vpop.f32.mrf.mxu3 }
  0xee   : > { %v4746_v50 = vpop.f32.mrf.mxu0 }
  0xef   : > { %1269 = vmatmul.bf16.gmra.mxu2 %v4742_v5 }
  0xf0   : > { %v4749_v61 = vpop.f32.mrf.mxu1 }
  0xf1   : > { %1567 = vmatmul.bf16.gmra.mxu3 %v4604_v28  ;;  %v3937_v28 = vld [vmem:[%s5055_s2 + $0x158] sm:$0xff] }
  0xf2   : > { %v4758_v27 = vpop.f32.mrf.mxu2  ;;  %2129 = vmatpush.bf16.msra.mxu1 %v3937_v28  ;;  %v1103_v28 = vld [vmem:[#allocation2 + $0xca] sm:$0xff] }
  0xf3   : > { %976 = vmatmul.bf16.gmra.mxu1 %v1752_v6  ;;  %v4792_v19 = vpack.c.bf16 %v1103_v28, %v1102_v2 }
  0xf4   : > { %v4760_v42 = vpop.f32.mrf.mxu3 }
  0xf6   : > { %v4768_v13 = vpop.f32.mrf.mxu0 }
  0xf8   : > { %v4770_v8 = vpop.f32.mrf.mxu1 }
  0xf9   : > { %1870 = vmatmul.bf16.gmra.mxu0 %v1753_v37 }
  0xfa   : > { %v4772_v10 = vpop.f32.mrf.mxu2 }
  0xfc   : > { %v4776_v34 = vpop.f32.mrf.mxu3 }
  0xfe   : > { %v4778_v6 = vpop.f32.mrf.mxu0 }
  0xff   : > { %1274 = vmatmul.bf16.gmra.mxu2 %v4774_v29 }
 0x100   : > { %v942_v62 = vpop.f32.mrf.mxu1 }
 0x101   : > { %1572 = vmatmul.bf16.gmra.mxu3 %v1455_v36  ;;  %v807_v36 = vld [vmem:[#allocation2 + $0xe1] sm:$0xff]  ;;  %v1022_v40 = vadd.f32 %v942_v62, %v4676_v56  ;;  %v3936_v62 = vld [vmem:[%s5055_s2 + $0x150] sm:$0xff] }
 0x102   : > { %v4781_v41 = vpop.f32.mrf.mxu2  ;;  %2130 = vmatpush.bf16.msra.mxu1 %v3936_v62 }
 0x103   : > { %981 = vmatmul.bf16.gmra.mxu1 %v1753_v37  ;;  %v806_v37 = vld [vmem:[#allocation2 + $0xd9] sm:$0xff] }
 0x104   : > { %v4783_v63 = vpop.f32.mrf.mxu3  ;;  %v4797_v17 = vpack.c.bf16 %v807_v36, %v806_v37  ;;  %v3960_v37 = vld [vmem:[%s5055_s2 + $0x210] sm:$0xff] }
 0x105   : > { %3025 = vmatpush.bf16.msra.mxu0 %v3960_v37 }
 0x106   : > { %v1836_v53 = vpop.f32.mrf.mxu0 }
 0x108   : > { %v944_v43 = vpop.f32.mrf.mxu1 }
 0x109   : > { %1875 = vmatmul.bf16.gmra.mxu0 %v1754_v26  ;;  %v1023_v15 = vadd.f32 %v944_v43, %v4686_v25  ;;  %v3944_v25 = vld [vmem:[%s5055_s2 + $0x190] sm:$0xff] }
 0x10a   : > { %v4790_v16 = vpop.f32.mrf.mxu2  ;;  %v3952_v26 = vld [vmem:[%s5055_s2 + $0x1d0] sm:$0xff]  ;;  %2429 = vmatpush.bf16.msra.mxu2 %v3944_v25  ;;  %v1105_v25 = vld [vmem:[#allocation2 + $0xe2] sm:$0xff] }
 0x10b   : > { %2727 = vmatpush.bf16.msra.mxu3 %v3952_v26 }
 0x10c   : > { %v4794_v38 = vpop.f32.mrf.mxu3 }
 0x10d   : > { %5061 = vst [vmem:[#allocation4_spill] sm:$0xff] %v4794_v38 }
 0x10e   : > { %v1838_v18 = vpop.f32.mrf.mxu0 }
 0x10f   : > { %1279 = vmatmul.bf16.gmra.mxu2 %v4792_v19 }
 0x110   : > { %v947_v24 = vpop.f32.mrf.mxu1 }
 0x111   : > { %1577 = vmatmul.bf16.gmra.mxu3 %v4557_v52  ;;  %v1024_v48 = vadd.f32 %v947_v24, %v4712_v31  ;;  %v5062_v52 = vmax.f32 %v4449_v58, 0.0 }
 0x112   : > { %v1240_v2 = vpop.f32.mrf.mxu2 }
 0x113   : > { %v1320_v28 = vadd.f32 %v1240_v2, %v1022_v40  ;;  %986 = vmatmul.bf16.gmra.mxu1 %v4797_v17  ;;  %v1755_v31 = vpack.c.bf16 %v5062_v52, %v358_v7  ;;  %v1104_v40 = vld [vmem:[#allocation2 + $0xda] sm:$0xff] }
 0x114   : > { %v1538_v43 = vpop.f32.mrf.mxu3  ;;  %v4822_v2 = vpack.c.bf16 %v1105_v25, %v1104_v40  ;;  %v5064_v40 = vmax.f32 %v4525_v21, 0.0 }
 0x115   : > { %v1618_v56 = vadd.f32 %v1538_v43, %v1320_v28 }
 0x116   : > { %v1841_v36 = vpop.f32.mrf.mxu0 }
 0x117   : > { %v4819_v24 = vadd.f32 %v1836_v53, %v1618_v56 }
 0x118   : > { %v949_v26 = vpop.f32.mrf.mxu1 }
 0x119   : > { %1880 = vmatmul.bf16.gmra.mxu0 %v1755_v31  ;;  %v1025_v55 = vadd.f32 %v949_v26, %v4722_v49 }
 0x11a   : > { %v1242_v58 = vpop.f32.mrf.mxu2 }
 0x11b   : > { %v1321_v7 = vadd.f32 %v1242_v58, %v1023_v15  ;;  %v5063_v15 = vmax.f32 %v4522_v12, 0.0 }
 0x11c   : > { %v1540_v28 = vpop.f32.mrf.mxu3 }
 0x11d   : > { %v1619_v43 = vadd.f32 %v1540_v28, %v1321_v7  ;;  %v1756_v25 = vpack.c.bf16 %v5064_v40, %v5063_v15  ;;  %v1107_v28 = vld [vmem:[#allocation2 + $0xfa] sm:$0xff]  ;;  %v1705_v15 = vld [vmem:[#allocation2 + $0x129] sm:$0xff] }
 0x11e   : > { %v1843_v52 = vpop.f32.mrf.mxu0 }
 0x11f   : > { %1284 = vmatmul.bf16.gmra.mxu2 %v4822_v2  ;;  %v4825_v38 = vadd.f32 %v1838_v18, %v1619_v43  ;;  %v1106_v18 = vld [vmem:[#allocation2 + $0xf2] sm:$0xff] }
 0x120   : > { %v952_v62 = vpop.f32.mrf.mxu1 }
 0x121   : > { %1582 = vmatmul.bf16.gmra.mxu3 %v4601_v3  ;;  %v1026_v53 = vadd.f32 %v952_v62, %v4736_v57 }
 0x122   : > { %v1245_v56 = vpop.f32.mrf.mxu2 }
 0x123   : > { %v1322_v37 = vadd.f32 %v1245_v56, %v1024_v48  ;;  %991 = vmatmul.bf16.gmra.mxu1 %v1755_v31  ;;  %v4836_v48 = vpack.c.bf16 %v1107_v28, %v1106_v18  ;;  %v3959_v28 = vld [vmem:[%s5055_s2 + $0x208] sm:$0xff] }
 0x124   : > { %v1543_v49 = vpop.f32.mrf.mxu3  ;;  %3026 = vmatpush.bf16.msra.mxu0 %v3959_v28  ;;  %v1706_v28 = vld [vmem:[#allocation2 + $0x139] sm:$0xff] }
 0x125   : > { %v1620_v26 = vadd.f32 %v1543_v49, %v1322_v37 }
 0x126   : > { %v1846_v58 = vpop.f32.mrf.mxu0 }
 0x127   : > { %v4833_v7 = vadd.f32 %v1841_v36, %v1620_v26  ;;  %v1704_v26 = vld [vmem:[#allocation2 + $0x121] sm:$0xff] }
 0x128   : > { %v954_v43 = vpop.f32.mrf.mxu1 }
 0x129   : > { %1885 = vmatmul.bf16.gmra.mxu0 %v1756_v25  ;;  %v1027_v3 = vadd.f32 %v954_v43, %v4746_v50  ;;  %v3943_v50 = vld [vmem:[%s5055_s2 + $0x188] sm:$0xff] }
 0x12a   : > { %v1247_v57 = vpop.f32.mrf.mxu2  ;;  %2430 = vmatpush.bf16.msra.mxu2 %v3943_v50  ;;  %v1407_v50 = vld [vmem:[#allocation2 + $0x128] sm:$0xff] }
 0x12b   : > { %v1323_v62 = vadd.f32 %v1247_v57, %v1025_v55  ;;  %v3951_v55 = vld [vmem:[%s5055_s2 + $0x1c8] sm:$0xff] }
 0x12c   : > { %v1545_v31 = vpop.f32.mrf.mxu3  ;;  %2728 = vmatpush.bf16.msra.mxu3 %v3951_v55 }
 0x12d   : > { %v1621_v56 = vadd.f32 %v1545_v31, %v1323_v62 }
 0x12e   : > { %v1848_v37 = vpop.f32.mrf.mxu0 }
 0x12f   : > { %1289 = vmatmul.bf16.gmra.mxu2 %v4836_v48  ;;  %v4839_v12 = vadd.f32 %v1843_v52, %v1621_v56 }
 0x130   : > { %v957_v21 = vpop.f32.mrf.mxu1 }
 0x131   : > { %5065 = vst [vmem:[#allocation5_spill] sm:$0xff] %v4839_v12  ;;  %1587 = vmatmul.bf16.gmra.mxu3 %v4619_v22  ;;  %v1028_v36 = vadd.f32 %v957_v21, %v4768_v13  ;;  %v1757_v22 = vpack.c.bf16 %v1705_v15, %v1704_v26  ;;  %v3935_v13 = vld [vmem:[%s5055_s2 + $0x148] sm:$0xff]  ;;  %v1406_v21 = vld [vmem:[#allocation2 + $0x120] sm:$0xff] }
 0x132   : > { %v1250_v49 = vpop.f32.mrf.mxu2  ;;  %2131 = vmatpush.bf16.msra.mxu1 %v3935_v13 }
 0x133   : > { %v1324_v40 = vadd.f32 %v1250_v49, %v1026_v53  ;;  %996 = vmatmul.bf16.gmra.mxu1 %v1756_v25  ;;  %v1108_v53 = vld [vmem:[#allocation2 + $0x10a] sm:$0xff]  ;;  %v1109_v25 = vld [vmem:[#allocation2 + $0x112] sm:$0xff] }
 0x134   : > { %v1548_v52 = vpop.f32.mrf.mxu3  ;;  %v4858_v49 = vpack.c.bf16 %v1109_v25, %v1108_v53 }
 0x135   : > { %v1622_v18 = vadd.f32 %v1548_v52, %v1324_v40  ;;  %v1459_v40 = vpack.c.bf16 %v1407_v50, %v1406_v21  ;;  %v1111_v21 = vld [vmem:[#allocation2 + $0x12a] sm:$0xff] }
 0x136   : > { %v1851_v43 = vpop.f32.mrf.mxu0 }
 0x137   : > { %v4855_v57 = vadd.f32 %v1846_v58, %v1622_v18 }
 0x138   : > { %v959_v62 = vpop.f32.mrf.mxu1 }
 0x139   : > { %5066 = vst [vmem:[#allocation6_spill] sm:$0xff] %v4855_v57  ;;  %1890 = vmatmul.bf16.gmra.mxu0 %v1757_v22  ;;  %v1029_v31 = vadd.f32 %v959_v62, %v4778_v6  ;;  %v1707_v57 = vld [vmem:[#allocation2 + $0x141] sm:$0xff] }
 0x13a   : > { %v1252_v56 = vpop.f32.mrf.mxu2 }
 0x13b   : > { %v1325_v55 = vadd.f32 %v1252_v56, %v1027_v3  ;;  %v1758_v3 = vpack.c.bf16 %v1707_v57, %v1706_v28  ;;  %v1110_v56 = vld [vmem:[#allocation2 + $0x122] sm:$0xff] }
 0x13c   : > { %v1550_v26 = vpop.f32.mrf.mxu3 }
 0x13d   : > { %v1623_v15 = vadd.f32 %v1550_v26, %v1325_v55  ;;  %v1408_v55 = vld [vmem:[#allocation2 + $0x138] sm:$0xff]  ;;  %v1409_v26 = vld [vmem:[#allocation2 + $0x140] sm:$0xff] }
 0x13e   : > { %v1853_v52 = vpop.f32.mrf.mxu0 }
 0x13f   : > { %1294 = vmatmul.bf16.gmra.mxu2 %v4858_v49  ;;  %v4861_v58 = vadd.f32 %v1848_v37, %v1623_v15 }
 0x140   : > { %v962_v18 = vpop.f32.mrf.mxu1 }
 0x141   : > { %5067 = vst [vmem:[#allocation7_spill] sm:$0xff] %v4861_v58  ;;  %1592 = vmatmul.bf16.gmra.mxu3 %v1459_v40  ;;  %v4865_v40 = vpack.c.bf16 %v1111_v21, %v1110_v56 }
 0x142   : > { %v1255_v13 = vpop.f32.mrf.mxu2 }
 0x143   : > { %v1326_v6 = vadd.f32 %v1255_v13, %v1028_v36  ;;  %1001 = vmatmul.bf16.gmra.mxu1 %v1757_v22  ;;  %v1460_v22 = vpack.c.bf16 %v1409_v26, %v1408_v55  ;;  %v1708_v55 = vld [vmem:[#allocation2 + $0x151] sm:$0xff] }
 0x144   : > { %v1553_v62 = vpop.f32.mrf.mxu3 }
 0x145   : > { %v1624_v12 = vadd.f32 %v1553_v62, %v1326_v6  ;;  %v4124_v6 = vld [vmem:[%s4238_s26 + $0x78] sm:$0xff]   ;;  %v1030_v62 = vadd.f32 %v962_v18, %v4672_v47 }
 0x146   : > { %v1856_v53 = vpop.f32.mrf.mxu0  ;;  %v4028_v57 = vunpack.c.l.bf16 %v4124_v6 }
 0x147   : > { %v4863_v25 = vadd.f32 %v1851_v43, %v1624_v12  ;;  %v4029_v12 = vunpack.c.h.bf16 %v4124_v6  ;;  %v3958_v6 = vld [vmem:[%s5055_s2 + $0x200] sm:$0xff] }
 0x148   : > { %v964_v50 = vpop.f32.mrf.mxu1  ;;  %v305_v56 = vmul.f32 %v4028_v57, %v4240_v4  ;;  %3027 = vmatpush.bf16.msra.mxu0 %v3958_v6 }
 0x149   : > { %1895 = vmatmul.bf16.gmra.mxu0 %v1758_v3  ;;  %v306_v21 = vmul.f32 %v4029_v12, %v4240_v4  ;;  %v3934_v4 = vld [vmem:[%s5055_s2 + $0x140] sm:$0xff] }
 0x14a   : > { %v1257_v37 = vpop.f32.mrf.mxu2  ;;  %v4881_v47 = vadd.f32 %v4248_v9, %v305_v56  ;;  %2132 = vmatpush.bf16.msra.mxu1 %v3934_v4  ;;  %v1031_v56 = vadd.f32 %v964_v50, %v4682_v14  ;;  %v1710_v50 = vld [vmem:[#allocation2 + $0x169] sm:$0xff] }
 0x14b   : > { %v1327_v15 = vadd.f32 %v1257_v37, %v1029_v31  ;;  %v3942_v31 = vld [vmem:[%s5055_s2 + $0x180] sm:$0xff]  ;;  %v4884_v18 = vadd.f32 %v4248_v9, %v306_v21 }
 0x14c   : > { %v1555_v58 = vpop.f32.mrf.mxu3  ;;  %2431 = vmatpush.bf16.msra.mxu2 %v3942_v31  ;;  %v1113_v31 = vld [vmem:[#allocation2 + $0x142] sm:$0xff] }
 0x14d   : > { %v1625_v36 = vadd.f32 %v1555_v58, %v1327_v15  ;;  %v3950_v58 = vld [vmem:[%s5055_s2 + $0x1c0] sm:$0xff]  ;;  %v371_v57 = vmax.f32 %v4884_v18, 0.0 }
 0x14e   : > { %v1858_v13 = vpop.f32.mrf.mxu0  ;;  %2729 = vmatpush.bf16.msra.mxu3 %v3950_v58 }
 0x14f   : > { %1299 = vmatmul.bf16.gmra.mxu2 %v4865_v40  ;;  %v4869_v43 = vadd.f32 %v1853_v52, %v1625_v36  ;;  %v1709_v52 = vld [vmem:[#allocation2 + $0x159] sm:$0xff]  ;;  %458 = vst [vmem:[#allocation2 + $0x189] sm:$0xff] %v371_v57 }
 0x150   : > { %v967_v28 = vpop.f32.mrf.mxu1 }
 0x151   : > { %5068 = vst [vmem:[#allocation8_spill] sm:$0xff] %v4869_v43  ;;  %1597 = vmatmul.bf16.gmra.mxu3 %v1460_v22  ;;  %v1759_v22 = vpack.c.bf16 %v1709_v52, %v1708_v55  ;;  %v1411_v55 = vld [vmem:[#allocation2 + $0x158] sm:$0xff]  ;;  %v1032_v6 = vadd.f32 %v967_v28, %v4689_v23  ;;  %v1412_v23 = vld [vmem:[#allocation2 + $0x168] sm:$0xff]  ;;  %v1413_v28 = vld [vmem:[#allocation2 + $0x170] sm:$0xff] }
 0x152   : > { %v1260_v37 = vpop.f32.mrf.mxu2 }
 0x153   : > { %v1328_v26 = vadd.f32 %v1260_v37, %v1030_v62  ;;  %1006 = vmatmul.bf16.gmra.mxu1 %v1758_v3  ;;  %v370_v3 = vmax.f32 %v4881_v47, 0.0  ;;  %v1112_v62 = vld [vmem:[#allocation2 + $0x13a] sm:$0xff]  ;;  %v1410_v37 = vld [vmem:[#allocation2 + $0x150] sm:$0xff] }
 0x154   : > { %v1558_v15 = vpop.f32.mrf.mxu3 }
 0x155   : > { %v1626_v36 = vadd.f32 %v1558_v15, %v1328_v26  ;;  %457 = vst [vmem:[#allocation2 + $0x181] sm:$0xff] %v370_v3  ;;  %v4897_v26 = vpack.c.bf16 %v1113_v31, %v1112_v62  ;;  %v1461_v15 = vpack.c.bf16 %v1411_v55, %v1410_v37  ;;  %v1114_v37 = vld [vmem:[#allocation2 + $0x152] sm:$0xff]  ;;  %v1115_v55 = vld [vmem:[#allocation2 + $0x15a] sm:$0xff] }
 0x156   : > { %v1861_v12 = vpop.f32.mrf.mxu0 }
 0x157   : > { %v4894_v9 = vadd.f32 %v1856_v53, %v1626_v36 }
 0x158   : > { %v969_v58 = vpop.f32.mrf.mxu1 }
 0x159   : > { %5069 = vst [vmem:[#allocation9_spill] sm:$0xff] %v4894_v9  ;;  %1900 = vmatmul.bf16.gmra.mxu0 %v1759_v22  ;;  %v1711_v9 = vld [vmem:[#allocation2 + $0x171] sm:$0xff] }
 0x15a   : > { %v1262_v21 = vpop.f32.mrf.mxu2  ;;  %v1760_v31 = vpack.c.bf16 %v1711_v9, %v1710_v50 }
 0x15b   : > { %v1329_v52 = vadd.f32 %v1262_v21, %v1031_v56 }
 0x15c   : > { %v1560_v47 = vpop.f32.mrf.mxu3 }
 0x15d   : > { %v1627_v18 = vadd.f32 %v1560_v47, %v1329_v52 }
 0x15e   : > { %v1863_v4 = vpop.f32.mrf.mxu0 }
 0x15f   : > { %1304 = vmatmul.bf16.gmra.mxu2 %v4897_v26  ;;  %v4900_v53 = vadd.f32 %v1858_v13, %v1627_v18  ;;  %v1033_v13 = vadd.f32 %v969_v58, %v4714_v39 }
 0x160   : > { %v972_v36 = vpop.f32.mrf.mxu1 }
 0x161   : > { %5070 = vst [vmem:[#allocation10_spill] sm:$0xff] %v4900_v53  ;;  %1602 = vmatmul.bf16.gmra.mxu3 %v1461_v15  ;;  %v4906_v53 = vpack.c.bf16 %v1115_v55, %v1114_v37  ;;  %v1034_v50 = vadd.f32 %v972_v36, %v4725_v51 }
 0x162   : > { %v1265_v14 = vpop.f32.mrf.mxu2 }
 0x163   : > { %v1330_v43 = vadd.f32 %v1265_v14, %v1032_v6  ;;  %1011 = vmatmul.bf16.gmra.mxu1 %v1759_v22  ;;  %v1462_v14 = vpack.c.bf16 %v1413_v28, %v1412_v23  ;;  %v1117_v23 = vld [vmem:[#allocation2 + $0x172] sm:$0xff] }
 0x164   : > { %v1563_v56 = vpop.f32.mrf.mxu3 }
 0x165   : > { %v1628_v62 = vadd.f32 %v1563_v56, %v1330_v43 }
 0x166   : > { %v1866_v21 = vpop.f32.mrf.mxu0 }
 0x167   : > { %v4903_v52 = vadd.f32 %v1861_v12, %v1628_v62 }
 0x168   : > { %v974_v47 = vpop.f32.mrf.mxu1 }
 0x169   : > { %1905 = vmatmul.bf16.gmra.mxu0 %v1760_v31 }
 0x16a   : > { %v1267_v18 = vpop.f32.mrf.mxu2 }
 0x16b   : > { %v1331_v15 = vadd.f32 %v1267_v18, %v1033_v13  ;;  %v1761_v13 = vpack.c.bf16 %v371_v57, %v370_v3  ;;  %v1116_v18 = vld [vmem:[#allocation2 + $0x16a] sm:$0xff] }
 0x16c   : > { %v1565_v6 = vpop.f32.mrf.mxu3  ;;  %v4915_v36 = vpack.c.bf16 %v1117_v23, %v1116_v18  ;;  %v2279_v18 = vld [vmem:[#allocation2 + $0x30] sm:$0xff]  ;;  %v2280_v23 = vld [vmem:[#allocation2 + $0x38] sm:$0xff] }
 0x16d   : > { %v1629_v22 = vadd.f32 %v1565_v6, %v1331_v15  ;;  %v1035_v15 = vadd.f32 %v974_v47, %v4738_v30  ;;  %v1414_v6 = vld [vmem:[#allocation2 + $0x180] sm:$0xff] }
 0x16e   : > { %v1868_v43 = vpop.f32.mrf.mxu0 }
 0x16f   : > { %1309 = vmatmul.bf16.gmra.mxu2 %v4906_v53  ;;  %v4909_v12 = vadd.f32 %v1863_v4, %v1629_v22  ;;  %v1415_v22 = vld [vmem:[#allocation2 + $0x188] sm:$0xff] }
 0x170   : > { %v977_v9 = vpop.f32.mrf.mxu1 }
 0x171   : > { %1607 = vmatmul.bf16.gmra.mxu3 %v1462_v14 }
 0x172   : > { %v1270_v39 = vpop.f32.mrf.mxu2 }
 0x173   : > { %v1332_v58 = vadd.f32 %v1270_v39, %v1034_v50  ;;  %1016 = vmatmul.bf16.gmra.mxu1 %v1760_v31  ;;  %v1463_v50 = vpack.c.bf16 %v1415_v22, %v1414_v6  ;;  %v2577_v6 = vld [vmem:[#allocation2 + $0x31] sm:$0xff]  ;;  %v2343_v22 = vpack.c.bf16 %v2280_v23, %v2279_v18 }
 0x174   : > { %v1568_v56 = vpop.f32.mrf.mxu3 }
 0x175   : > { %v1630_v62 = vadd.f32 %v1568_v56, %v1332_v58 }
 0x176   : > { %v1871_v37 = vpop.f32.mrf.mxu0 }
 0x177   : > { %v4912_v55 = vadd.f32 %v1866_v21, %v1630_v62  ;;  %v1036_v21 = vadd.f32 %v977_v9, %v4749_v61  ;;  %v2578_v61 = vld [vmem:[#allocation2 + $0x39] sm:$0xff] }
 0x178   : > { %v979_v28 = vpop.f32.mrf.mxu1 }
 0x179   : > { %1910 = vmatmul.bf16.gmra.mxu0 %v1761_v13 }
 0x17a   : > { %v1272_v4 = vpop.f32.mrf.mxu2 }
 0x17b   : > { %v1333_v51 = vadd.f32 %v1272_v4, %v1035_v15  ;;  %v1037_v4 = vadd.f32 %v979_v28, %v4770_v8 }
 0x17c   : > { %v1570_v14 = vpop.f32.mrf.mxu3 }
 0x17d   : > { %v1631_v31 = vadd.f32 %v1570_v14, %v1333_v51  ;;  %v1982_v14 = vld [vmem:[#allocation2 + $0x32] sm:$0xff] }
 0x17e   : > { %v1873_v39 = vpop.f32.mrf.mxu0 }
 0x17f   : > { %1314 = vmatmul.bf16.gmra.mxu2 %v4915_v36  ;;  %v4918_v3 = vadd.f32 %v1868_v43, %v1631_v31 }
 0x180   : > { %v982_v57 = vpop.f32.mrf.mxu1 }
 0x181   : > { %1612 = vmatmul.bf16.gmra.mxu3 %v1463_v50  ;;  %v2641_v50 = vpack.c.bf16 %v2578_v61, %v2577_v6  ;;  %v1038_v8 = vadd.f32 %v982_v57, %v4698_v35 }
 0x182   : > { %v1275_v30 = vpop.f32.mrf.mxu2 }
 0x183   : > { %v1334_v47 = vadd.f32 %v1275_v30, %v1036_v21  ;;  %2133 = vmatmul.bf16.vlgmr.msra.gmra.mxu1 %v4647_v59  ;;  %v1983_v59 = vld [vmem:[#allocation2 + $0x3a] sm:$0xff] }
 0x184   : > { %v1573_v58 = vpop.f32.mrf.mxu3 }
 0x185   : > { %v1632_v56 = vadd.f32 %v1573_v58, %v1334_v47 }
 0x186   : > { %v1876_v62 = vpop.f32.mrf.mxu0 }
 0x187   : > { %v4922_v13 = vadd.f32 %v1871_v37, %v1632_v56  ;;  %v2045_v37 = vpack.c.bf16 %v1983_v59, %v1982_v14  ;;  %v1984_v14 = vld [vmem:[#allocation2 + $0x4a] sm:$0xff]  ;;  %v1985_v59 = vld [vmem:[#allocation2 + $0x52] sm:$0xff] }
 0x188   : > { %v984_v15 = vpop.f32.mrf.mxu1 }
 0x189   : > { %3028 = vmatmul.bf16.vlgmr.msra.gmra.mxu0 %v4651_v32  ;;  %v1039_v61 = vadd.f32 %v984_v15, %v4716_v11 }
 0x18a   : > { %v1277_v43 = vpop.f32.mrf.mxu2 }
 0x18b   : > { %v1335_v9 = vadd.f32 %v1277_v43, %v1037_v4  ;;  %v2281_v4 = vld [vmem:[#allocation2 + $0x48] sm:$0xff]  ;;  %v2282_v43 = vld [vmem:[#allocation2 + $0x50] sm:$0xff] }
 0x18c   : > { %v1575_v51 = vpop.f32.mrf.mxu3  ;;  %v2344_v57 = vpack.c.bf16 %v2282_v43, %v2281_v4  ;;  %v2283_v43 = vld [vmem:[#allocation2 + $0x60] sm:$0xff] }
 0x18d   : > { %v1633_v31 = vadd.f32 %v1575_v51, %v1335_v9  ;;  %v2579_v9 = vld [vmem:[#allocation2 + $0x49] sm:$0xff] }
 0x18e   : > { %v1878_v21 = vpop.f32.mrf.mxu0 }
 0x18f   : > { %2432 = vmatmul.bf16.vlgmr.msra.gmra.mxu2 %v2343_v22  ;;  %v4926_v30 = vadd.f32 %v1873_v39, %v1633_v31  ;;  %v2580_v22 = vld [vmem:[#allocation2 + $0x51] sm:$0xff] }
 0x190   : > { %v987_v47 = vpop.f32.mrf.mxu1 }
 0x191   : > { %2730 = vmatmul.bf16.vlgmr.msra.gmra.mxu3 %v2641_v50  ;;  %v2642_v50 = vpack.c.bf16 %v2580_v22, %v2579_v9  ;;  %v1040_v11 = vadd.f32 %v987_v47, %v4728_v54  ;;  %v2581_v22 = vld [vmem:[#allocation2 + $0x61] sm:$0xff] }
 0x192   : > { %v1280_v32 = vpop.f32.mrf.mxu2 }
 0x193   : > { %v1336_v28 = vadd.f32 %v1280_v32, %v1038_v8  ;;  %2138 = vmatmul.bf16.gmra.mxu1 %v2045_v37 }
 0x194   : > { %v1578_v58 = vpop.f32.mrf.mxu3 }
 0x195   : > { %v1634_v56 = vadd.f32 %v1578_v58, %v1336_v28 }
 0x196   : > { %v1881_v18 = vpop.f32.mrf.mxu0 }
 0x197   : > { %v4929_v23 = vadd.f32 %v1876_v62, %v1634_v56  ;;  %v2046_v62 = vpack.c.bf16 %v1985_v59, %v1984_v14  ;;  %v1987_v14 = vld [vmem:[#allocation2 + $0x6a] sm:$0xff] }
 0x198   : > { %v989_v6 = vpop.f32.mrf.mxu1 }
 0x199   : > { %3033 = vmatmul.bf16.gmra.mxu0 %v4670_v46  ;;  %v1041_v9 = vadd.f32 %v989_v6, %v4740_v33 }
 0x19a   : > { %v1282_v39 = vpop.f32.mrf.mxu2 }
 0x19b   : > { %v1337_v35 = vadd.f32 %v1282_v39, %v1039_v61  ;;  %v2284_v61 = vld [vmem:[#allocation2 + $0x68] sm:$0xff] }
 0x19c   : > { %v1580_v51 = vpop.f32.mrf.mxu3  ;;  %v2345_v47 = vpack.c.bf16 %v2284_v61, %v2283_v43  ;;  %v2285_v43 = vld [vmem:[#allocation2 + $0x78] sm:$0xff]  ;;  %v2286_v61 = vld [vmem:[#allocation2 + $0x80] sm:$0xff] }
 0x19d   : > { %v1635_v31 = vadd.f32 %v1580_v51, %v1337_v35  ;;  %v2582_v35 = vld [vmem:[#allocation2 + $0x69] sm:$0xff] }
 0x19e   : > { %v1883_v37 = vpop.f32.mrf.mxu0  ;;  %v1986_v51 = vld [vmem:[#allocation2 + $0x62] sm:$0xff] }
 0x19f   : > { %2437 = vmatmul.bf16.gmra.mxu2 %v2344_v57  ;;  %v4933_v8 = vadd.f32 %v1878_v21, %v1635_v31  ;;  %v2643_v31 = vpack.c.bf16 %v2582_v35, %v2581_v22  ;;  %v2583_v22 = vld [vmem:[#allocation2 + $0x79] sm:$0xff]  ;;  %v2584_v35 = vld [vmem:[#allocation2 + $0x81] sm:$0xff] }
 0x1a0   : > { %v992_v32 = vpop.f32.mrf.mxu1 }
 0x1a1   : > { %2735 = vmatmul.bf16.gmra.mxu3 %v2642_v50  ;;  %v1042_v33 = vadd.f32 %v992_v32, %v4758_v27  ;;  %v2346_v32 = vpack.c.bf16 %v2286_v61, %v2285_v43  ;;  %v2288_v43 = vld [vmem:[#allocation2 + $0x98] sm:$0xff] }
 0x1a2   : > { %v1285_v46 = vpop.f32.mrf.mxu2 }
 0x1a3   : > { %v1338_v15 = vadd.f32 %v1285_v46, %v1040_v11  ;;  %2143 = vmatmul.bf16.gmra.mxu1 %v2046_v62 }
 0x1a4   : > { %v1583_v28 = vpop.f32.mrf.mxu3 }
 0x1a5   : > { %v1636_v58 = vadd.f32 %v1583_v28, %v1338_v15 }
 0x1a6   : > { %v1886_v56 = vpop.f32.mrf.mxu0 }
 0x1a7   : > { %v4936_v4 = vadd.f32 %v1881_v18, %v1636_v58  ;;  %v2047_v18 = vpack.c.bf16 %v1987_v14, %v1986_v51  ;;  %v2644_v14 = vpack.c.bf16 %v2584_v35, %v2583_v22  ;;  %v2586_v22 = vld [vmem:[#allocation2 + $0x99] sm:$0xff] }
 0x1a8   : > { %v994_v39 = vpop.f32.mrf.mxu1 }
 0x1a9   : > { %3038 = vmatmul.bf16.gmra.mxu0 %v4684_v60 }
 0x1aa   : > { %v1287_v21 = vpop.f32.mrf.mxu2 }
 0x1ab   : > { %v1339_v54 = vadd.f32 %v1287_v21, %v1041_v9  ;;  %v1043_v21 = vadd.f32 %v994_v39, %v4772_v10 }
 0x1ac   : > { %v1585_v57 = vpop.f32.mrf.mxu3 }
 0x1ad   : > { %v1637_v59 = vadd.f32 %v1585_v57, %v1339_v54  ;;  %v1989_v57 = vld [vmem:[#allocation2 + $0x82] sm:$0xff] }
 0x1ae   : > { %v1888_v50 = vpop.f32.mrf.mxu0 }
 0x1af   : > { %2442 = vmatmul.bf16.gmra.mxu2 %v2345_v47  ;;  %v4940_v62 = vadd.f32 %v1883_v37, %v1637_v59  ;;  %v1988_v47 = vld [vmem:[#allocation2 + $0x7a] sm:$0xff] }
 0x1b0   : > { %v997_v11 = vpop.f32.mrf.mxu1 }
 0x1b1   : > { %2740 = vmatmul.bf16.gmra.mxu3 %v2643_v31  ;;  %v1044_v10 = vadd.f32 %v997_v11, %v4781_v41 }
 0x1b2   : > { %v1290_v60 = vpop.f32.mrf.mxu2 }
 0x1b3   : > { %v1340_v6 = vadd.f32 %v1290_v60, %v1042_v33  ;;  %2148 = vmatmul.bf16.gmra.mxu1 %v2047_v18 }
 0x1b4   : > { %v1588_v46 = vpop.f32.mrf.mxu3 }
 0x1b5   : > { %v1638_v15 = vadd.f32 %v1588_v46, %v1340_v6 }
 0x1b6   : > { %v1891_v28 = vpop.f32.mrf.mxu0 }
 0x1b7   : > { %v4943_v58 = vadd.f32 %v1886_v56, %v1638_v15  ;;  %v2048_v56 = vpack.c.bf16 %v1989_v57, %v1988_v47  ;;  %v2287_v15 = vld [vmem:[#allocation2 + $0x90] sm:$0xff] }
 0x1b8   : > { %v999_v9 = vpop.f32.mrf.mxu1  ;;  %v2347_v11 = vpack.c.bf16 %v2288_v43, %v2287_v15 }
 0x1b9   : > { %3043 = vmatmul.bf16.gmra.mxu0 %v4718_v20 }
 0x1ba   : > { %v1292_v37 = vpop.f32.mrf.mxu2 }
 0x1bb   : > { %v1341_v27 = vadd.f32 %v1292_v37, %v1043_v21  ;;  %v1045_v21 = vadd.f32 %v999_v9, %v4790_v16  ;;  %v2585_v37 = vld [vmem:[#allocation2 + $0x91] sm:$0xff] }
 0x1bc   : > { %v1590_v54 = vpop.f32.mrf.mxu3  ;;  %v2645_v47 = vpack.c.bf16 %v2586_v22, %v2585_v37  ;;  %v1992_v22 = vld [vmem:[#allocation2 + $0xaa] sm:$0xff] }
 0x1bd   : > { %v1639_v51 = vadd.f32 %v1590_v54, %v1341_v27  ;;  %v1990_v27 = vld [vmem:[#allocation2 + $0x92] sm:$0xff] }
 0x1be   : > { %v1893_v59 = vpop.f32.mrf.mxu0 }
 0x1bf   : > { %2447 = vmatmul.bf16.gmra.mxu2 %v2346_v32  ;;  %v4947_v31 = vadd.f32 %v1888_v50, %v1639_v51  ;;  %v1991_v32 = vld [vmem:[#allocation2 + $0x9a] sm:$0xff] }
 0x1c0   : > { %v1002_v18 = vpop.f32.mrf.mxu1 }
 0x1c1   : > { %2745 = vmatmul.bf16.gmra.mxu3 %v2644_v14  ;;  %v1046_v16 = vadd.f32 %v1002_v18, %v4700_v1 }
 0x1c2   : > { %v1295_v20 = vpop.f32.mrf.mxu2 }
 0x1c3   : > { %v1342_v39 = vadd.f32 %v1295_v20, %v1044_v10  ;;  %2153 = vmatmul.bf16.gmra.mxu1 %v2048_v56 }
 0x1c4   : > { %v1593_v33 = vpop.f32.mrf.mxu3 }
 0x1c5   : > { %v1640_v60 = vadd.f32 %v1593_v33, %v1342_v39  ;;  %v2289_v33 = vld [vmem:[#allocation2 + $0xa8] sm:$0xff] }
 0x1c6   : > { %v1896_v6 = vpop.f32.mrf.mxu0 }
 0x1c7   : > { %v4950_v46 = vadd.f32 %v1891_v28, %v1640_v60  ;;  %v2049_v28 = vpack.c.bf16 %v1991_v32, %v1990_v27  ;;  %v2290_v60 = vld [vmem:[#allocation2 + $0xb0] sm:$0xff] }
 0x1c8   : > { %v1004_v61 = vpop.f32.mrf.mxu1  ;;  %v2348_v18 = vpack.c.bf16 %v2290_v60, %v2289_v33  ;;  %v2589_v60 = vld [vmem:[#allocation2 + $0xc1] sm:$0xff] }
 0x1c9   : > { %3048 = vmatmul.bf16.gmra.mxu0 %v4742_v5  ;;  %v1047_v43 = vadd.f32 %v1004_v61, %v4720_v44 }
 0x1ca   : > { %v1297_v50 = vpop.f32.mrf.mxu2 }
 0x1cb   : > { %v1343_v41 = vadd.f32 %v1297_v50, %v1045_v21  ;;  %v2587_v21 = vld [vmem:[#allocation2 + $0xa9] sm:$0xff]  ;;  %v2588_v50 = vld [vmem:[#allocation2 + $0xb1] sm:$0xff] }
 0x1cc   : > { %v1595_v35 = vpop.f32.mrf.mxu3 }
 0x1cd   : > { %v1641_v54 = vadd.f32 %v1595_v35, %v1343_v41  ;;  %v1993_v41 = vld [vmem:[#allocation2 + $0xb2] sm:$0xff]  ;;  %v2646_v35 = vpack.c.bf16 %v2588_v50, %v2587_v21  ;;  %v1994_v21 = vld [vmem:[#allocation2 + $0xc2] sm:$0xff]  ;;  %v1995_v50 = vld [vmem:[#allocation2 + $0xca] sm:$0xff] }
 0x1ce   : > { %v1898_v57 = vpop.f32.mrf.mxu0 }
 0x1cf   : > { %2452 = vmatmul.bf16.gmra.mxu2 %v2347_v11  ;;  %v4954_v51 = vadd.f32 %v1893_v59, %v1641_v54 }
 0x1d0   : > { %v1007_v14 = vpop.f32.mrf.mxu1 }
 0x1d1   : > { %2750 = vmatmul.bf16.gmra.mxu3 %v2645_v47  ;;  %v1048_v44 = vadd.f32 %v1007_v14, %v4730_v0 }
 0x1d2   : > { %v1300_v5 = vpop.f32.mrf.mxu2 }
 0x1d3   : > { %v1344_v9 = vadd.f32 %v1300_v5, %v1046_v16  ;;  %2158 = vmatmul.bf16.gmra.mxu1 %v2049_v28 }
 0x1d4   : > { %v1598_v56 = vpop.f32.mrf.mxu3 }
 0x1d5   : > { %v1642_v10 = vadd.f32 %v1598_v56, %v1344_v9  ;;  %v2291_v9 = vld [vmem:[#allocation2 + $0xc0] sm:$0xff]  ;;  %v2292_v56 = vld [vmem:[#allocation2 + $0xc8] sm:$0xff] }
 0x1d6   : > { %v1901_v20 = vpop.f32.mrf.mxu0  ;;  %v2349_v14 = vpack.c.bf16 %v2292_v56, %v2291_v9 }
 0x1d7   : > { %v4957_v39 = vadd.f32 %v1896_v6, %v1642_v10  ;;  %v2050_v6 = vpack.c.bf16 %v1993_v41, %v1992_v22 }
 0x1d8   : > { %v1009_v15 = vpop.f32.mrf.mxu1 }
 0x1d9   : > { %3053 = vmatmul.bf16.gmra.mxu0 %v4774_v29  ;;  %v1049_v33 = vadd.f32 %v1009_v15, %v4744_v45 }
 0x1da   : > { %v1302_v59 = vpop.f32.mrf.mxu2 }
 0x1db   : > { %v1345_v1 = vadd.f32 %v1302_v59, %v1047_v43  ;;  %v2590_v43 = vld [vmem:[#allocation2 + $0xc9] sm:$0xff] }
 0x1dc   : > { %v1600_v37 = vpop.f32.mrf.mxu3 }
 0x1dd   : > { %v1643_v11 = vadd.f32 %v1600_v37, %v1345_v1 }
 0x1de   : > { %v1903_v27 = vpop.f32.mrf.mxu0 }
 0x1df   : > { %2457 = vmatmul.bf16.gmra.mxu2 %v2348_v18  ;;  %v4961_v32 = vadd.f32 %v1898_v57, %v1643_v11  ;;  %v2647_v18 = vpack.c.bf16 %v2590_v43, %v2589_v60 }
 0x1e0   : > { %v1012_v54 = vpop.f32.mrf.mxu1 }
 0x1e1   : > { %2755 = vmatmul.bf16.gmra.mxu3 %v2646_v35  ;;  %v1050_v45 = vadd.f32 %v1012_v54, %v4760_v42 }
 0x1e2   : > { %v1305_v29 = vpop.f32.mrf.mxu2 }
 0x1e3   : > { %v1346_v61 = vadd.f32 %v1305_v29, %v1048_v44  ;;  %2163 = vmatmul.bf16.gmra.mxu1 %v2050_v6  ;;  %v2293_v29 = vld [vmem:[#allocation2 + $0xd8] sm:$0xff] }
 0x1e4   : > { %v1603_v47 = vpop.f32.mrf.mxu3 }
 0x1e5   : > { %v1644_v28 = vadd.f32 %v1603_v47, %v1346_v61  ;;  %v2294_v61 = vld [vmem:[#allocation2 + $0xe0] sm:$0xff] }
 0x1e6   : > { %v1906_v16 = vpop.f32.mrf.mxu0  ;;  %v2350_v56 = vpack.c.bf16 %v2294_v61, %v2293_v29 }
 0x1e7   : > { %v4964_v5 = vadd.f32 %v1901_v20, %v1644_v28  ;;  %v2051_v20 = vpack.c.bf16 %v1995_v50, %v1994_v21  ;;  %v2295_v21 = vld [vmem:[#allocation2 + $0xf0] sm:$0xff]  ;;  %v2296_v50 = vld [vmem:[#allocation2 + $0xf8] sm:$0xff] }
 0x1e8   : > { %v1014_v10 = vpop.f32.mrf.mxu1 }
 0x1e9   : > { %3058 = vmatmul.bf16.gmra.mxu0 %v4792_v19  ;;  %v1051_v28 = vadd.f32 %v1014_v10, %v4776_v34 }
 0x1ea   : > { %v1307_v57 = vpop.f32.mrf.mxu2 }
 0x1eb   : > { %v1347_v0 = vadd.f32 %v1307_v57, %v1049_v33 }
 0x1ec   : > { %v1605_v59 = vpop.f32.mrf.mxu3 }
 0x1ed   : > { %v1645_v1 = vadd.f32 %v1605_v59, %v1347_v0 }
 0x1ee   : > { %v1908_v37 = vpop.f32.mrf.mxu0 }
 0x1ef   : > { %2462 = vmatmul.bf16.gmra.mxu2 %v2349_v14  ;;  %v4968_v22 = vadd.f32 %v1903_v27, %v1645_v1 }
 0x1f0   : > { %v1017_v41 = vpop.f32.mrf.mxu1 }
 0x1f1   : > { %2760 = vmatmul.bf16.gmra.mxu3 %v2647_v18  ;;  %v5071_v18 = vld [vmem:[#allocation4_spill] sm:$0xff] }
 0x1f2   : > { %v1310_v19 = vpop.f32.mrf.mxu2 }
 0x1f3   : > { %v1348_v15 = vadd.f32 %v1310_v19, %v1050_v45  ;;  %2168 = vmatmul.bf16.gmra.mxu1 %v2051_v20  ;;  %v2351_v45 = vpack.c.bf16 %v2296_v50, %v2295_v21 }
 0x1f4   : > { %v1608_v11 = vpop.f32.mrf.mxu3 }
 0x1f5   : > { %v1646_v35 = vadd.f32 %v1608_v11, %v1348_v15  ;;  %v1998_v15 = vld [vmem:[#allocation2 + $0xf2] sm:$0xff] }
 0x1f6   : > { %v1911_v6 = vpop.f32.mrf.mxu0 }
 0x1f7   : > { %v4971_v44 = vadd.f32 %v1906_v16, %v1646_v35  ;;  %v1052_v16 = vadd.f32 %v1017_v41, %v4783_v63  ;;  %v2593_v63 = vld [vmem:[#allocation2 + $0xf1] sm:$0xff]  ;;  %v2594_v41 = vld [vmem:[#allocation2 + $0xf9] sm:$0xff] }
 0x1f8   : > { %v1019_v47 = vpop.f32.mrf.mxu1  ;;  %v2649_v35 = vpack.c.bf16 %v2594_v41, %v2593_v63 }
 0x1f9   : > { %3063 = vmatmul.bf16.gmra.mxu0 %v4822_v2 }
 0x1fa   : > { %v1312_v27 = vpop.f32.mrf.mxu2 }
 0x1fb   : > { %v1349_v9 = vadd.f32 %v1312_v27, %v1051_v28 }
 0x1fc   : > { %v1610_v42 = vpop.f32.mrf.mxu3 }
 0x1fd   : > { %v1647_v54 = vadd.f32 %v1610_v42, %v1349_v9  ;;  %v2297_v42 = vld [vmem:[#allocation2 + $0x108] sm:$0xff] }
 0x1fe   : > { %v1913_v33 = vpop.f32.mrf.mxu0 }
 0x1ff   : > { %2467 = vmatmul.bf16.gmra.mxu2 %v2350_v56  ;;  %v4975_v57 = vadd.f32 %v1908_v37, %v1647_v54  ;;  %v1053_v37 = vadd.f32 %v1019_v47, %v5071_v18  ;;  %v2298_v54 = vld [vmem:[#allocation2 + $0x110] sm:$0xff] }
 0x200   : > { %v2134_v60 = vpop.f32.mrf.mxu1  ;;  %v2352_v50 = vpack.c.bf16 %v2298_v54, %v2297_v42 }
 0x201   : > { %2765 = vmatmul.bf16.gmra.mxu3 %v4797_v17 }
 0x202   : > { %v1315_v43 = vpop.f32.mrf.mxu2 }
 0x203   : > { %v1350_v0 = vadd.f32 %v1315_v43, %v1052_v16  ;;  %2173 = vmatmul.bf16.gmra.mxu1 %v4822_v2  ;;  %v1999_v2 = vld [vmem:[#allocation2 + $0xfa] sm:$0xff] }
 0x204   : > { %v1613_v34 = vpop.f32.mrf.mxu3 }
 0x205   : > { %v1648_v10 = vadd.f32 %v1613_v34, %v1350_v0  ;;  %v2595_v34 = vld [vmem:[#allocation2 + $0x109] sm:$0xff] }
 0x206   : > { %v3029_v14 = vpop.f32.mrf.mxu0 }
 0x207   : > { %v4980_v59 = vadd.f32 %v1911_v6, %v1648_v10  ;;  %v2053_v6 = vpack.c.bf16 %v1999_v2, %v1998_v15  ;;  %v2596_v10 = vld [vmem:[#allocation2 + $0x111] sm:$0xff] }
 0x208   : > { %v2136_v1 = vpop.f32.mrf.mxu1  ;;  %v2650_v63 = vpack.c.bf16 %v2596_v10, %v2595_v34  ;;  %v2598_v34 = vld [vmem:[#allocation2 + $0x129] sm:$0xff] }
 0x209   : > { %3068 = vmatmul.bf16.gmra.mxu0 %v4836_v48  ;;  %v2214_v48 = vadd.f32 %v2134_v60, %v4819_v24  ;;  %v2215_v0 = vadd.f32 %v2136_v1, %v4825_v38  ;;  %v2000_v24 = vld [vmem:[#allocation2 + $0x10a] sm:$0xff]  ;;  %v2001_v60 = vld [vmem:[#allocation2 + $0x112] sm:$0xff] }
 0x20a   : > { %v1317_v20 = vpop.f32.mrf.mxu2 }
 0x20b   : > { %v1351_v17 = vadd.f32 %v1317_v20, %v1053_v37 }
 0x20c   : > { %v1615_v19 = vpop.f32.mrf.mxu3 }
 0x20d   : > { %v1649_v11 = vadd.f32 %v1615_v19, %v1351_v17 }
 0x20e   : > { %v3031_v29 = vpop.f32.mrf.mxu0 }
 0x20f   : > { %2472 = vmatmul.bf16.gmra.mxu2 %v2351_v45  ;;  %v4984_v61 = vadd.f32 %v1913_v33, %v1649_v11  ;;  %v2054_v45 = vpack.c.bf16 %v2001_v60, %v2000_v24  ;;  %v2002_v24 = vld [vmem:[#allocation2 + $0x122] sm:$0xff]  ;;  %v2003_v60 = vld [vmem:[#allocation2 + $0x12a] sm:$0xff] }
 0x210   : > { %v2139_v28 = vpop.f32.mrf.mxu1 }
 0x211   : > { %2770 = vmatmul.bf16.gmra.mxu3 %v2649_v35  ;;  %v2216_v38 = vadd.f32 %v2139_v28, %v4833_v7  ;;  %v5072_v28 = vld [vmem:[#allocation5_spill] sm:$0xff] }
 0x212   : > { %v2433_v47 = vpop.f32.mrf.mxu2 }
 0x213   : > { %2178 = vmatmul.bf16.gmra.mxu1 %v2053_v6  ;;  %v2513_v9 = vadd.f32 %v2433_v47, %v2214_v48 }
 0x214   : > { %v2731_v27 = vpop.f32.mrf.mxu3 }
 0x215   : > { %v2811_v43 = vadd.f32 %v2731_v27, %v2513_v9  ;;  %v2299_v27 = vld [vmem:[#allocation2 + $0x120] sm:$0xff]  ;;  %v2300_v9 = vld [vmem:[#allocation2 + $0x128] sm:$0xff] }
 0x216   : > { %v3034_v56 = vpop.f32.mrf.mxu0 }
 0x217   : > { %v3109_v37 = vadd.f32 %v3029_v14, %v2811_v43 }
 0x218   : > { %v2141_v16 = vpop.f32.mrf.mxu1 }
 0x219   : > { %3073 = vmatmul.bf16.gmra.mxu0 %v4858_v49  ;;  %v3306_v1 = vmul.f32 %v3109_v37, %v3109_v37  ;;  %v2217_v43 = vadd.f32 %v2141_v16, %v5072_v28 }
 0x21a   : > { %v2435_v33 = vpop.f32.mrf.mxu2 }
 0x21b   : > { %v2514_v21 = vadd.f32 %v2435_v33, %v2215_v0  ;;  %v2597_v33 = vld [vmem:[#allocation2 + $0x121] sm:$0xff] }
 0x21c   : > { %v2733_v18 = vpop.f32.mrf.mxu3 }
 0x21d   : > { %v2812_v20 = vadd.f32 %v2733_v18, %v2514_v21 }
 0x21e   : > { %v3036_v41 = vpop.f32.mrf.mxu0 }
 0x21f   : > { %v3110_v17 = vadd.f32 %v3031_v29, %v2812_v20  ;;  %2477 = vmatmul.bf16.gmra.mxu2 %v2352_v50  ;;  %v2353_v50 = vpack.c.bf16 %v2300_v9, %v2299_v27  ;;  %v2301_v27 = vld [vmem:[#allocation2 + $0x138] sm:$0xff] }
 0x220   : > { %v2144_v49 = vpop.f32.mrf.mxu1 }
 0x221   : > { %v4033_v19 = vpack.c.bf16 %v3110_v17, %v3109_v37  ;;  %v3269_v15 = vadd.f32 %v3110_v17, %v3109_v37  ;;  %v3307_v14 = vmul.f32 %v3110_v17, %v3110_v17  ;;  %2775 = vmatmul.bf16.gmra.mxu3 %v2650_v63  ;;  %v2651_v37 = vpack.c.bf16 %v2598_v34, %v2597_v33 }
 0x222   : > { %v2438_v2 = vpop.f32.mrf.mxu2  ;;  %v2055_v17 = vpack.c.bf16 %v2003_v60, %v2002_v24 }
 0x223   : > { %4034 = vst [vmem:[%s4994_s10] sm:$0xff] %v4033_v19   ;;  %v3338_v11 = vadd.f32 %v3307_v14, %v3306_v1  ;;  %v2515_v35 = vadd.f32 %v2438_v2, %v2216_v38  ;;  %2183 = vmatmul.bf16.gmra.mxu1 %v2054_v45  ;;  %v5073_v1 = vld [vmem:[#allocation6_spill] sm:$0xff] }
 0x224   : > { %v2736_v29 = vpop.f32.mrf.mxu3  ;;  %v2218_v19 = vadd.f32 %v2144_v49, %v5073_v1 }
 0x225   : > { %v2813_v6 = vadd.f32 %v2736_v29, %v2515_v35 }
 0x226   : > { %v3039_v47 = vpop.f32.mrf.mxu0 }
 0x227   : > { %v3111_v48 = vadd.f32 %v3034_v56, %v2813_v6 }
 0x228   : > { %v2146_v42 = vpop.f32.mrf.mxu1 }
 0x229   : > { %v3270_v54 = vadd.f32 %v3269_v15, %v3111_v48  ;;  %v3308_v7 = vmul.f32 %v3111_v48, %v3111_v48  ;;  %3078 = vmatmul.bf16.gmra.mxu0 %v4865_v40 }
 0x22a   : > { %v2440_v0 = vpop.f32.mrf.mxu2 }
 0x22b   : > { %v3339_v10 = vadd.f32 %v3338_v11, %v3308_v7  ;;  %v2516_v21 = vadd.f32 %v2440_v0, %v2217_v43  ;;  %v2599_v43 = vld [vmem:[#allocation2 + $0x139] sm:$0xff]  ;;  %v2600_v0 = vld [vmem:[#allocation2 + $0x141] sm:$0xff] }
 0x22c   : > { %v2738_v18 = vpop.f32.mrf.mxu3  ;;  %v2652_v24 = vpack.c.bf16 %v2600_v0, %v2599_v43  ;;  %v2006_v0 = vld [vmem:[#allocation2 + $0x152] sm:$0xff] }
 0x22d   : > { %v2814_v56 = vadd.f32 %v2738_v18, %v2516_v21  ;;  %v2005_v18 = vld [vmem:[#allocation2 + $0x142] sm:$0xff] }
 0x22e   : > { %v3041_v20 = vpop.f32.mrf.mxu0 }
 0x22f   : > { %v3112_v63 = vadd.f32 %v3036_v41, %v2814_v56  ;;  %2482 = vmatmul.bf16.gmra.mxu2 %v2353_v50  ;;  %v2302_v41 = vld [vmem:[#allocation2 + $0x140] sm:$0xff] }
 0x230   : > { %v2149_v45 = vpop.f32.mrf.mxu1  ;;  %v2004_v50 = vld [vmem:[#allocation2 + $0x13a] sm:$0xff] }
 0x231   : > { %v4038_v16 = vpack.c.bf16 %v3112_v63, %v3111_v48  ;;  %v3271_v38 = vadd.f32 %v3270_v54, %v3112_v63  ;;  %v3309_v40 = vmul.f32 %v3112_v63, %v3112_v63  ;;  %2780 = vmatmul.bf16.gmra.mxu3 %v2651_v37  ;;  %v5074_v48 = vld [vmem:[#allocation7_spill] sm:$0xff]  ;;  %v2056_v37 = vpack.c.bf16 %v2005_v18, %v2004_v50 }
 0x232   : > { %v2443_v15 = vpop.f32.mrf.mxu2  ;;  %v2219_v54 = vadd.f32 %v2146_v42, %v5074_v48 }
 0x233   : > { %4125 = vst [vmem:[%s4994_s10 + $0x8] sm:$0xff] %v4038_v16   ;;  %v3340_v14 = vadd.f32 %v3339_v10, %v3309_v40  ;;  %v2517_v2 = vadd.f32 %v2443_v15, %v2218_v19  ;;  %2188 = vmatmul.bf16.gmra.mxu1 %v2055_v17  ;;  %v2354_v10 = vpack.c.bf16 %v2302_v41, %v2301_v27 }
 0x234   : > { %v2741_v11 = vpop.f32.mrf.mxu3  ;;  %v2220_v16 = vadd.f32 %v2149_v45, %v4863_v25  ;;  %v2601_v45 = vld [vmem:[#allocation2 + $0x151] sm:$0xff] }
 0x235   : > { %v2815_v35 = vadd.f32 %v2741_v11, %v2517_v2  ;;  %v2303_v11 = vld [vmem:[#allocation2 + $0x150] sm:$0xff] }
 0x236   : > { %v3044_v29 = vpop.f32.mrf.mxu0 }
 0x237   : > { %v3113_v6 = vadd.f32 %v3039_v47, %v2815_v35 }
 0x238   : > { %v2151_v9 = vpop.f32.mrf.mxu1 }
 0x239   : > { %v3272_v7 = vadd.f32 %v3271_v38, %v3113_v6  ;;  %v3310_v28 = vmul.f32 %v3113_v6, %v3113_v6  ;;  %3083 = vmatmul.bf16.gmra.mxu0 %v4897_v26 }
 0x23a   : > { %v2445_v49 = vpop.f32.mrf.mxu2 }
 0x23b   : > { %v3341_v33 = vadd.f32 %v3340_v14, %v3310_v28  ;;  %v2518_v34 = vadd.f32 %v2445_v49, %v2219_v54  ;;  %v2602_v28 = vld [vmem:[#allocation2 + $0x159] sm:$0xff] }
 0x23c   : > { %v2743_v21 = vpop.f32.mrf.mxu3 }
 0x23d   : > { %v2816_v47 = vadd.f32 %v2743_v21, %v2518_v34  ;;  %v2653_v34 = vpack.c.bf16 %v2602_v28, %v2601_v45  ;;  %v2008_v28 = vld [vmem:[#allocation2 + $0x16a] sm:$0xff] }
 0x23e   : > { %v3046_v60 = vpop.f32.mrf.mxu0 }
 0x23f   : > { %v3114_v56 = vadd.f32 %v3041_v20, %v2816_v47  ;;  %2487 = vmatmul.bf16.gmra.mxu2 %v2354_v10  ;;  %v2304_v20 = vld [vmem:[#allocation2 + $0x158] sm:$0xff] }
 0x240   : > { %v2154_v63 = vpop.f32.mrf.mxu1  ;;  %v2355_v49 = vpack.c.bf16 %v2304_v20, %v2303_v11 }
 0x241   : > { %v4043_v42 = vpack.c.bf16 %v3114_v56, %v3113_v6  ;;  %v3273_v17 = vadd.f32 %v3272_v7, %v3114_v56  ;;  %v3311_v26 = vmul.f32 %v3114_v56, %v3114_v56  ;;  %2785 = vmatmul.bf16.gmra.mxu3 %v2652_v24  ;;  %v5075_v6 = vld [vmem:[#allocation8_spill] sm:$0xff]  ;;  %v5076_v24 = vld [vmem:[#allocation9_spill] sm:$0xff] }
 0x242   : > { %v2448_v38 = vpop.f32.mrf.mxu2  ;;  %v2221_v7 = vadd.f32 %v2151_v9, %v5075_v6  ;;  %v2222_v56 = vadd.f32 %v2154_v63, %v5076_v24 }
 0x243   : > { %4126 = vst [vmem:[%s4994_s10 + $0x10] sm:$0xff] %v4043_v42   ;;  %v3342_v40 = vadd.f32 %v3341_v33, %v3311_v26  ;;  %v2519_v1 = vadd.f32 %v2448_v38, %v2220_v16  ;;  %2193 = vmatmul.bf16.gmra.mxu1 %v2056_v37  ;;  %v2007_v33 = vld [vmem:[#allocation2 + $0x15a] sm:$0xff] }
 0x244   : > { %v2746_v19 = vpop.f32.mrf.mxu3  ;;  %v2057_v50 = vpack.c.bf16 %v2007_v33, %v2006_v0 }
 0x245   : > { %v2817_v15 = vadd.f32 %v2746_v19, %v2519_v1  ;;  %v2305_v1 = vld [vmem:[#allocation2 + $0x168] sm:$0xff] }
 0x246   : > { %v3049_v14 = vpop.f32.mrf.mxu0 }
 0x247   : > { %v3115_v2 = vadd.f32 %v3044_v29, %v2817_v15 }
 0x248   : > { %v2156_v35 = vpop.f32.mrf.mxu1 }
 0x249   : > { %v3274_v27 = vadd.f32 %v3273_v17, %v3115_v2  ;;  %v3312_v41 = vmul.f32 %v3115_v2, %v3115_v2  ;;  %3088 = vmatmul.bf16.gmra.mxu0 %v4906_v53 }
 0x24a   : > { %v2450_v25 = vpop.f32.mrf.mxu2 }
 0x24b   : > { %v3343_v48 = vadd.f32 %v3342_v40, %v3312_v41  ;;  %v2520_v54 = vadd.f32 %v2450_v25, %v2221_v7  ;;  %v2604_v41 = vld [vmem:[#allocation2 + $0x171] sm:$0xff] }
 0x24c   : > { %v2748_v43 = vpop.f32.mrf.mxu3 }
 0x24d   : > { %v2818_v29 = vadd.f32 %v2748_v43, %v2520_v54 }
 0x24e   : > { %v3051_v10 = vpop.f32.mrf.mxu0 }
 0x24f   : > { %v3116_v21 = vadd.f32 %v3046_v60, %v2818_v29  ;;  %2492 = vmatmul.bf16.gmra.mxu2 %v2355_v49  ;;  %v2306_v60 = vld [vmem:[#allocation2 + $0x170] sm:$0xff] }
 0x250   : > { %v2159_v18 = vpop.f32.mrf.mxu1  ;;  %v2356_v25 = vpack.c.bf16 %v2306_v60, %v2305_v1  ;;  %v2605_v60 = vld [vmem:[#allocation2 + $0x181] sm:$0xff] }
 0x251   : > { %v4048_v9 = vpack.c.bf16 %v3116_v21, %v3115_v2  ;;  %v3275_v47 = vadd.f32 %v3274_v27, %v3116_v21  ;;  %v3313_v53 = vmul.f32 %v3116_v21, %v3116_v21  ;;  %2790 = vmatmul.bf16.gmra.mxu3 %v2653_v34  ;;  %v5077_v2 = vld [vmem:[#allocation10_spill] sm:$0xff]  ;;  %v2603_v27 = vld [vmem:[#allocation2 + $0x169] sm:$0xff]  ;;  %v2224_v34 = vadd.f32 %v2159_v18, %v4903_v52 }
 0x252   : > { %v2453_v37 = vpop.f32.mrf.mxu2  ;;  %v2223_v20 = vadd.f32 %v2156_v35, %v5077_v2  ;;  %v2654_v54 = vpack.c.bf16 %v2604_v41, %v2603_v27 }
 0x253   : > { %4127 = vst [vmem:[%s4994_s10 + $0x18] sm:$0xff] %v4048_v9   ;;  %v3344_v42 = vadd.f32 %v3343_v48, %v3313_v53  ;;  %v2521_v17 = vadd.f32 %v2453_v37, %v2222_v56  ;;  %2198 = vmatmul.bf16.gmra.mxu1 %v2057_v50  ;;  %v2009_v48 = vld [vmem:[#allocation2 + $0x172] sm:$0xff]  ;;  %v2903_v50 = vld [vmem:[#allocation2 + $0x182] sm:$0xff]  ;;  %v2904_v9 = vld [vmem:[#allocation2 + $0x18a] sm:$0xff] }
 0x254   : > { %v2751_v26 = vpop.f32.mrf.mxu3  ;;  %v2058_v0 = vpack.c.bf16 %v2009_v48, %v2008_v28  ;;  %v2953_v37 = vpack.c.bf16 %v2904_v9, %v2903_v50  ;;  %v2905_v48 = vld [vmem:[#allocation2 + $0x19a] sm:$0xff] }
 0x255   : > { %v2819_v16 = vadd.f32 %v2751_v26, %v2521_v17  ;;  %v2307_v17 = vld [vmem:[#allocation2 + $0x180] sm:$0xff]  ;;  %v2308_v26 = vld [vmem:[#allocation2 + $0x188] sm:$0xff] }
 0x256   : > { %v3054_v38 = vpop.f32.mrf.mxu0 }
 0x257   : > { %v3117_v40 = vadd.f32 %v3049_v14, %v2819_v16 }
 0x258   : > { %v2161_v19 = vpop.f32.mrf.mxu1 }
 0x259   : > { %v3276_v15 = vadd.f32 %v3275_v47, %v3117_v40  ;;  %v3314_v11 = vmul.f32 %v3117_v40, %v3117_v40  ;;  %3093 = vmatmul.bf16.gmra.mxu0 %v4915_v36  ;;  %v2225_v52 = vadd.f32 %v2161_v19, %v4909_v12 }
 0x25a   : > { %v2455_v63 = vpop.f32.mrf.mxu2 }
 0x25b   : > { %v3345_v6 = vadd.f32 %v3344_v42, %v3314_v11  ;;  %v2522_v7 = vadd.f32 %v2455_v63, %v2223_v20  ;;  %v2357_v20 = vpack.c.bf16 %v2308_v26, %v2307_v17 }
 0x25c   : > { %v2753_v45 = vpop.f32.mrf.mxu3 }
 0x25d   : > { %v2820_v14 = vadd.f32 %v2753_v45, %v2522_v7 }
 0x25e   : > { %v3056_v49 = vpop.f32.mrf.mxu0 }
 0x25f   : > { %v3118_v43 = vadd.f32 %v3051_v10, %v2820_v14  ;;  %2497 = vmatmul.bf16.gmra.mxu2 %v2356_v25  ;;  %v2906_v14 = vld [vmem:[#allocation2 + $0x1a2] sm:$0xff] }
 0x260   : > { %v2164_v33 = vpop.f32.mrf.mxu1 }
 0x261   : > { %v4053_v35 = vpack.c.bf16 %v3118_v43, %v3117_v40  ;;  %v3277_v29 = vadd.f32 %v3276_v15, %v3118_v43  ;;  %v3315_v36 = vmul.f32 %v3118_v43, %v3118_v43  ;;  %2795 = vmatmul.bf16.gmra.mxu3 %v2654_v54  ;;  %v2606_v15 = vld [vmem:[#allocation2 + $0x189] sm:$0xff]  ;;  %v2226_v12 = vadd.f32 %v2164_v33, %v4912_v55  ;;  %v2607_v33 = vld [vmem:[#allocation2 + $0x199] sm:$0xff] }
 0x262   : > { %v2458_v21 = vpop.f32.mrf.mxu2  ;;  %v2655_v41 = vpack.c.bf16 %v2606_v15, %v2605_v60 }
 0x263   : > { %4128 = vst [vmem:[%s4994_s10 + $0x20] sm:$0xff] %v4053_v35   ;;  %v3346_v47 = vadd.f32 %v3345_v6, %v3315_v36  ;;  %v2523_v53 = vadd.f32 %v2458_v21, %v2224_v34  ;;  %2203 = vmatmul.bf16.gmra.mxu1 %v2058_v0 }
 0x264   : > { %v2756_v24 = vpop.f32.mrf.mxu3 }
 0x265   : > { %v2821_v56 = vadd.f32 %v2756_v24, %v2523_v53 }
 0x266   : > { %v3059_v10 = vpop.f32.mrf.mxu0 }
 0x267   : > { %v3119_v42 = vadd.f32 %v3054_v38, %v2821_v56  ;;  %v4173_v56 = vld [vmem:[#allocation2] sm:$0xff] }
 0x268   : > { %v2166_v16 = vpop.f32.mrf.mxu1 }
 0x269   : > { %v3278_v40 = vadd.f32 %v3277_v29, %v3119_v42  ;;  %v3316_v1 = vmul.f32 %v3119_v42, %v3119_v42  ;;  %3098 = vmatmul.bf16.gmra.mxu0 %v2953_v37  ;;  %v2954_v29 = vpack.c.bf16 %v2906_v14, %v2905_v48  ;;  %v2227_v9 = vadd.f32 %v2166_v16, %v4918_v3 }
 0x26a   : > { %v2460_v18 = vpop.f32.mrf.mxu2 }
 0x26b   : > { %v3347_v11 = vadd.f32 %v3346_v47, %v3316_v1  ;;  %v2524_v2 = vadd.f32 %v2460_v18, %v2225_v52  ;;  %v2608_v47 = vld [vmem:[#allocation2 + $0x1a1] sm:$0xff] }
 0x26c   : > { %v2758_v63 = vpop.f32.mrf.mxu3  ;;  %v2656_v26 = vpack.c.bf16 %v2608_v47, %v2607_v33 }
 0x26d   : > { %v2822_v27 = vadd.f32 %v2758_v63, %v2524_v2 }
 0x26e   : > { %v3061_v6 = vpop.f32.mrf.mxu0 }
 0x26f   : > { %v3120_v38 = vadd.f32 %v3056_v49, %v2822_v27  ;;  %2502 = vmatmul.bf16.gmra.mxu2 %v2357_v20 }
 0x270   : > { %v2169_v7 = vpop.f32.mrf.mxu1 }
 0x271   : > { %v4058_v25 = vpack.c.bf16 %v3120_v38, %v3119_v42  ;;  %v3279_v45 = vadd.f32 %v3278_v40, %v3120_v38  ;;  %v3317_v28 = vmul.f32 %v3120_v38, %v3120_v38  ;;  %2800 = vmatmul.bf16.gmra.mxu3 %v2655_v41  ;;  %v2358_v42 = vpack.c.bf16 %v4173_v56, %v4173_v56 }
 0x272   : > { %v2463_v19 = vpop.f32.mrf.mxu2  ;;  %v2228_v3 = vadd.f32 %v2169_v7, %v4922_v13 }
 0x273   : > { %4129 = vst [vmem:[%s4994_s10 + $0x28] sm:$0xff] %v4058_v25   ;;  %v3348_v54 = vadd.f32 %v3347_v11, %v3317_v28  ;;  %v2525_v43 = vadd.f32 %v2463_v19, %v2226_v12  ;;  %2208 = vmatmul.bf16.gmra.mxu1 %v2953_v37 }
 0x274   : > { %v2761_v0 = vpop.f32.mrf.mxu3 }
 0x275   : > { %v2823_v35 = vadd.f32 %v2761_v0, %v2525_v43 }
 0x276   : > { %v3064_v36 = vpop.f32.mrf.mxu0 }
 0x277   : > { %v3121_v49 = vadd.f32 %v3059_v10, %v2823_v35 }
 0x278   : > { %v2171_v34 = vpop.f32.mrf.mxu1 }
 0x279   : > { %v3280_v21 = vadd.f32 %v3279_v45, %v3121_v49  ;;  %v3318_v50 = vmul.f32 %v3121_v49, %v3121_v49  ;;  %3103 = vmatmul.bf16.gmra.mxu0 %v2954_v29  ;;  %v2229_v25 = vadd.f32 %v2171_v34, %v4926_v30 }
 0x27a   : > { %v2465_v55 = vpop.f32.mrf.mxu2 }
 0x27b   : > { %v3349_v53 = vadd.f32 %v3348_v54, %v3318_v50  ;;  %v2526_v24 = vadd.f32 %v2465_v55, %v2227_v9 }
 0x27c   : > { %v2763_v37 = vpop.f32.mrf.mxu3 }
 0x27d   : > { %v2824_v17 = vadd.f32 %v2763_v37, %v2526_v24 }
 0x27e   : > { %v3066_v40 = vpop.f32.mrf.mxu0 }
 0x27f   : > { %v3122_v1 = vadd.f32 %v3061_v6, %v2824_v17  ;;  %2507 = vmatmul.bf16.gmra.mxu2 %v2358_v42 }
 0x280   : > { %v2174_v10 = vpop.f32.mrf.mxu1 }
 0x281   : > { %v4063_v52 = vpack.c.bf16 %v3122_v1, %v3121_v49  ;;  %v3281_v18 = vadd.f32 %v3280_v21, %v3122_v1  ;;  %v3319_v60 = vmul.f32 %v3122_v1, %v3122_v1  ;;  %2805 = vmatmul.bf16.gmra.mxu3 %v2656_v26  ;;  %v2230_v35 = vadd.f32 %v2174_v10, %v4929_v23 }
 0x282   : > { %v2468_v16 = vpop.f32.mrf.mxu2 }
 0x283   : > { %4130 = vst [vmem:[%s4994_s10 + $0x30] sm:$0xff] %v4063_v52   ;;  %v3350_v15 = vadd.f32 %v3349_v53, %v3319_v60  ;;  %v2527_v11 = vadd.f32 %v2468_v16, %v2228_v3 }
 0x284   : > { %v2766_v2 = vpop.f32.mrf.mxu3 }
 0x285   : > { %v2825_v20 = vadd.f32 %v2766_v2, %v2527_v11 }
 0x286   : > { %v3069_v63 = vpop.f32.mrf.mxu0 }
 0x287   : > { %v3123_v27 = vadd.f32 %v3064_v36, %v2825_v20 }
 0x288   : > { %v2176_v41 = vpop.f32.mrf.mxu1 }
 0x289   : > { %v3282_v38 = vadd.f32 %v3281_v18, %v3123_v27  ;;  %v3320_v6 = vmul.f32 %v3123_v27, %v3123_v27  ;;  %v2231_v47 = vadd.f32 %v2176_v41, %v4933_v8 }
 0x28a   : > { %v2470_v45 = vpop.f32.mrf.mxu2 }
 0x28b   : > { %v3351_v28 = vadd.f32 %v3350_v15, %v3320_v6  ;;  %v2528_v12 = vadd.f32 %v2470_v45, %v2229_v25 }
 0x28c   : > { %v2768_v19 = vpop.f32.mrf.mxu3 }
 0x28d   : > { %v2826_v13 = vadd.f32 %v2768_v19, %v2528_v12 }
 0x28e   : > { %v3071_v7 = vpop.f32.mrf.mxu0 }
 0x28f   : > { %v3124_v48 = vadd.f32 %v3066_v40, %v2826_v13 }
 0x290   : > { %v2179_v14 = vpop.f32.mrf.mxu1 }
 0x291   : > { %v4068_v54 = vpack.c.bf16 %v3124_v48, %v3123_v27  ;;  %v3283_v43 = vadd.f32 %v3282_v38, %v3124_v48  ;;  %v3321_v0 = vmul.f32 %v3124_v48, %v3124_v48  ;;  %v2232_v52 = vadd.f32 %v2179_v14, %v4936_v4 }
 0x292   : > { %v2473_v29 = vpop.f32.mrf.mxu2 }
 0x293   : > { %4131 = vst [vmem:[%s4994_s10 + $0x38] sm:$0xff] %v4068_v54   ;;  %v3352_v36 = vadd.f32 %v3351_v28, %v3321_v0  ;;  %v2529_v49 = vadd.f32 %v2473_v29, %v2230_v35 }
 0x294   : > { %v2771_v21 = vpop.f32.mrf.mxu3 }
 0x295   : > { %v2827_v50 = vadd.f32 %v2771_v21, %v2529_v49 }
 0x296   : > { %v3074_v30 = vpop.f32.mrf.mxu0 }
 0x297   : > { %v3125_v34 = vadd.f32 %v3069_v63, %v2827_v50 }
 0x298   : > { %v2181_v9 = vpop.f32.mrf.mxu1 }
 0x299   : > { %v3284_v55 = vadd.f32 %v3283_v43, %v3125_v34  ;;  %v3322_v33 = vmul.f32 %v3125_v34, %v3125_v34  ;;  %v2233_v27 = vadd.f32 %v2181_v9, %v4940_v62 }
 0x29a   : > { %v2475_v53 = vpop.f32.mrf.mxu2 }
 0x29b   : > { %v3353_v24 = vadd.f32 %v3352_v36, %v3322_v33  ;;  %v2530_v56 = vadd.f32 %v2475_v53, %v2231_v47 }
 0x29c   : > { %v2773_v42 = vpop.f32.mrf.mxu3 }
 0x29d   : > { %v2828_v37 = vadd.f32 %v2773_v42, %v2530_v56 }
 0x29e   : > { %v3076_v23 = vpop.f32.mrf.mxu0 }
 0x29f   : > { %v3126_v17 = vadd.f32 %v3071_v7, %v2828_v37 }
 0x2a0   : > { %v2184_v26 = vpop.f32.mrf.mxu1 }
 0x2a1   : > { %v4073_v40 = vpack.c.bf16 %v3126_v17, %v3125_v34  ;;  %v3285_v1 = vadd.f32 %v3284_v55, %v3126_v17  ;;  %v3323_v10 = vmul.f32 %v3126_v17, %v3126_v17  ;;  %v2234_v48 = vadd.f32 %v2184_v26, %v4943_v58 }
 0x2a2   : > { %v2478_v18 = vpop.f32.mrf.mxu2 }
 0x2a3   : > { %4132 = vst [vmem:[%s4994_s10 + $0x40] sm:$0xff] %v4073_v40   ;;  %v3354_v60 = vadd.f32 %v3353_v24, %v3323_v10  ;;  %v2531_v3 = vadd.f32 %v2478_v18, %v2232_v52 }
 0x2a4   : > { %v2776_v16 = vpop.f32.mrf.mxu3 }
 0x2a5   : > { %v2829_v15 = vadd.f32 %v2776_v16, %v2531_v3 }
 0x2a6   : > { %v3079_v8 = vpop.f32.mrf.mxu0 }
 0x2a7   : > { %v3127_v11 = vadd.f32 %v3074_v30, %v2829_v15 }
 0x2a8   : > { %v2186_v2 = vpop.f32.mrf.mxu1 }
 0x2a9   : > { %v3286_v20 = vadd.f32 %v3285_v1, %v3127_v11  ;;  %v3324_v63 = vmul.f32 %v3127_v11, %v3127_v11  ;;  %v2235_v50 = vadd.f32 %v2186_v2, %v4947_v31 }
 0x2aa   : > { %v2480_v41 = vpop.f32.mrf.mxu2 }
 0x2ab   : > { %v3355_v38 = vadd.f32 %v3354_v60, %v3324_v63  ;;  %v2532_v6 = vadd.f32 %v2480_v41, %v2233_v27 }
 0x2ac   : > { %v2778_v25 = vpop.f32.mrf.mxu3 }
 0x2ad   : > { %v2830_v45 = vadd.f32 %v2778_v25, %v2532_v6 }
 0x2ae   : > { %v3081_v4 = vpop.f32.mrf.mxu0 }
 0x2af   : > { %v3128_v28 = vadd.f32 %v3076_v23, %v2830_v45 }
 0x2b0   : > { %v2189_v12 = vpop.f32.mrf.mxu1 }
 0x2b1   : > { %v4078_v19 = vpack.c.bf16 %v3128_v28, %v3127_v11  ;;  %v3287_v13 = vadd.f32 %v3286_v20, %v3128_v28  ;;  %v3325_v7 = vmul.f32 %v3128_v28, %v3128_v28  ;;  %v2236_v37 = vadd.f32 %v2189_v12, %v4950_v46 }
 0x2b2   : > { %v2483_v14 = vpop.f32.mrf.mxu2 }
 0x2b3   : > { %4133 = vst [vmem:[%s4994_s10 + $0x48] sm:$0xff] %v4078_v19   ;;  %v3356_v54 = vadd.f32 %v3355_v38, %v3325_v7  ;;  %v2533_v43 = vadd.f32 %v2483_v14, %v2234_v48 }
 0x2b4   : > { %v2781_v0 = vpop.f32.mrf.mxu3 }
 0x2b5   : > { %v2831_v35 = vadd.f32 %v2781_v0, %v2533_v43 }
 0x2b6   : > { %v3084_v62 = vpop.f32.mrf.mxu0 }
 0x2b7   : > { %v3129_v29 = vadd.f32 %v3079_v8, %v2831_v35 }
 0x2b8   : > { %v2191_v36 = vpop.f32.mrf.mxu1 }
 0x2b9   : > { %v3288_v49 = vadd.f32 %v3287_v13, %v3129_v29  ;;  %v3326_v21 = vmul.f32 %v3129_v29, %v3129_v29  ;;  %v2237_v60 = vadd.f32 %v2191_v36, %v4954_v51 }
 0x2ba   : > { %v2485_v30 = vpop.f32.mrf.mxu2 }
 0x2bb   : > { %v3357_v34 = vadd.f32 %v3356_v54, %v3326_v21  ;;  %v2534_v9 = vadd.f32 %v2485_v30, %v2235_v50 }
 0x2bc   : > { %v2783_v55 = vpop.f32.mrf.mxu3 }
 0x2bd   : > { %v2832_v33 = vadd.f32 %v2783_v55, %v2534_v9 }
 0x2be   : > { %v3086_v58 = vpop.f32.mrf.mxu0 }
 0x2bf   : > { %v3130_v47 = vadd.f32 %v3081_v4, %v2832_v33 }
 0x2c0   : > { %v2194_v53 = vpop.f32.mrf.mxu1 }
 0x2c1   : > { %v4083_v24 = vpack.c.bf16 %v3130_v47, %v3129_v29  ;;  %v3289_v56 = vadd.f32 %v3288_v49, %v3130_v47  ;;  %v3327_v42 = vmul.f32 %v3130_v47, %v3130_v47  ;;  %v2238_v41 = vadd.f32 %v2194_v53, %v4957_v39 }
 0x2c2   : > { %v2488_v23 = vpop.f32.mrf.mxu2 }
 0x2c3   : > { %4134 = vst [vmem:[%s4994_s10 + $0x50] sm:$0xff] %v4083_v24   ;;  %v3358_v17 = vadd.f32 %v3357_v34, %v3327_v42  ;;  %v2535_v26 = vadd.f32 %v2488_v23, %v2236_v37 }
 0x2c4   : > { %v2786_v40 = vpop.f32.mrf.mxu3 }
 0x2c5   : > { %v2833_v1 = vadd.f32 %v2786_v40, %v2535_v26 }
 0x2c6   : > { %v3089_v10 = vpop.f32.mrf.mxu0 }
 0x2c7   : > { %v3131_v31 = vadd.f32 %v3084_v62, %v2833_v1 }
 0x2c8   : > { %v2196_v16 = vpop.f32.mrf.mxu1 }
 0x2c9   : > { %v3290_v52 = vadd.f32 %v3289_v56, %v3131_v31  ;;  %v3328_v18 = vmul.f32 %v3131_v31, %v3131_v31  ;;  %v2239_v7 = vadd.f32 %v2196_v16, %v4961_v32 }
 0x2ca   : > { %v2490_v3 = vpop.f32.mrf.mxu2 }
 0x2cb   : > { %v3359_v15 = vadd.f32 %v3358_v17, %v3328_v18  ;;  %v2536_v8 = vadd.f32 %v2490_v3, %v2237_v60 }
 0x2cc   : > { %v2788_v11 = vpop.f32.mrf.mxu3 }
 0x2cd   : > { %v2834_v2 = vadd.f32 %v2788_v11, %v2536_v8 }
 0x2ce   : > { %v3091_v6 = vpop.f32.mrf.mxu0 }
 0x2cf   : > { %v3132_v46 = vadd.f32 %v3086_v58, %v2834_v2 }
 0x2d0   : > { %v2199_v28 = vpop.f32.mrf.mxu1 }
 0x2d1   : > { %v4088_v20 = vpack.c.bf16 %v3132_v46, %v3131_v31  ;;  %v3291_v63 = vadd.f32 %v3290_v52, %v3132_v46  ;;  %v3329_v27 = vmul.f32 %v3132_v46, %v3132_v46  ;;  %v2240_v21 = vadd.f32 %v2199_v28, %v4964_v5 }
 0x2d2   : > { %v2493_v38 = vpop.f32.mrf.mxu2 }
 0x2d3   : > { %4135 = vst [vmem:[%s4994_s10 + $0x58] sm:$0xff] %v4088_v20   ;;  %v3360_v25 = vadd.f32 %v3359_v15, %v3329_v27  ;;  %v2537_v45 = vadd.f32 %v2493_v38, %v2238_v41 }
 0x2d4   : > { %v2791_v4 = vpop.f32.mrf.mxu3 }
 0x2d5   : > { %v2835_v51 = vadd.f32 %v2791_v4, %v2537_v45 }
 0x2d6   : > { %v3094_v0 = vpop.f32.mrf.mxu0 }
 0x2d7   : > { %v3133_v12 = vadd.f32 %v3089_v10, %v2835_v51 }
 0x2d8   : > { %v2201_v35 = vpop.f32.mrf.mxu1 }
 0x2d9   : > { %v3292_v19 = vadd.f32 %v3291_v63, %v3133_v12  ;;  %v3330_v13 = vmul.f32 %v3133_v12, %v3133_v12  ;;  %v2241_v24 = vadd.f32 %v2201_v35, %v4968_v22 }
 0x2da   : > { %v2495_v48 = vpop.f32.mrf.mxu2 }
 0x2db   : > { %v3361_v14 = vadd.f32 %v3360_v25, %v3330_v13  ;;  %v2538_v54 = vadd.f32 %v2495_v48, %v2239_v7 }
 0x2dc   : > { %v2793_v43 = vpop.f32.mrf.mxu3 }
 0x2dd   : > { %v2836_v39 = vadd.f32 %v2793_v43, %v2538_v54 }
 0x2de   : > { %v3096_v32 = vpop.f32.mrf.mxu0 }
 0x2df   : > { %v3134_v62 = vadd.f32 %v3091_v6, %v2836_v39 }
 0x2e0   : > { %v2204_v58 = vpop.f32.mrf.mxu1 }
 0x2e1   : > { %v4093_v29 = vpack.c.bf16 %v3134_v62, %v3133_v12  ;;  %v3293_v36 = vadd.f32 %v3292_v19, %v3134_v62  ;;  %v3331_v49 = vmul.f32 %v3134_v62, %v3134_v62  ;;  %v2242_v10 = vadd.f32 %v2204_v58, %v4971_v44 }
 0x2e2   : > { %v2498_v50 = vpop.f32.mrf.mxu2 }
 0x2e3   : > { %4136 = vst [vmem:[%s4994_s10 + $0x60] sm:$0xff] %v4093_v29   ;;  %v3362_v30 = vadd.f32 %v3361_v14, %v3331_v49  ;;  %v2539_v34 = vadd.f32 %v2498_v50, %v2240_v21 }
 0x2e4   : > { %v2796_v9 = vpop.f32.mrf.mxu3 }
 0x2e5   : > { %v2837_v55 = vadd.f32 %v2796_v9, %v2539_v34 }
 0x2e6   : > { %v3099_v26 = vpop.f32.mrf.mxu0 }
 0x2e7   : > { %v3135_v33 = vadd.f32 %v3094_v0, %v2837_v55 }
 0x2e8   : > { %v2206_v18 = vpop.f32.mrf.mxu1 }
 0x2e9   : > { %v3294_v47 = vadd.f32 %v3293_v36, %v3135_v33  ;;  %v3332_v53 = vmul.f32 %v3135_v33, %v3135_v33  ;;  %v2243_v2 = vadd.f32 %v2206_v18, %v4975_v57 }
 0x2ea   : > { %v2500_v56 = vpop.f32.mrf.mxu2 }
 0x2eb   : > { %v3363_v42 = vadd.f32 %v3362_v30, %v3332_v53  ;;  %v2540_v37 = vadd.f32 %v2500_v56, %v2241_v24 }
 0x2ec   : > { %v2798_v23 = vpop.f32.mrf.mxu3 }
 0x2ed   : > { %v2838_v17 = vadd.f32 %v2798_v23, %v2540_v37 }
 0x2ee   : > { %v3101_v46 = vpop.f32.mrf.mxu0 }
 0x2ef   : > { %v3136_v5 = vadd.f32 %v3096_v32, %v2838_v17 }
 0x2f0   : > { %v2209_v38 = vpop.f32.mrf.mxu1 }
 0x2f1   : > { %v4098_v40 = vpack.c.bf16 %v3136_v5, %v3135_v33  ;;  %v3295_v1 = vadd.f32 %v3294_v47, %v3136_v5  ;;  %v3333_v31 = vmul.f32 %v3136_v5, %v3136_v5  ;;  %v2244_v28 = vadd.f32 %v2209_v38, %v4980_v59 }
 0x2f2   : > { %v2503_v52 = vpop.f32.mrf.mxu2 }
 0x2f3   : > { %4137 = vst [vmem:[%s4994_s10 + $0x68] sm:$0xff] %v4098_v40   ;;  %v3364_v60 = vadd.f32 %v3363_v42, %v3333_v31  ;;  %v2541_v3 = vadd.f32 %v2503_v52, %v2242_v10 }
 0x2f4   : > { %v2801_v16 = vpop.f32.mrf.mxu3 }
 0x2f5   : > { %v2839_v15 = vadd.f32 %v2801_v16, %v2541_v3 }
 0x2f6   : > { %v3104_v13 = vpop.f32.mrf.mxu0 }
 0x2f7   : > { %v3137_v22 = vadd.f32 %v3099_v26, %v2839_v15 }
 0x2f8   : > { %v2211_v48 = vpop.f32.mrf.mxu1 }
 0x2f9   : > { %v3296_v8 = vadd.f32 %v3295_v1, %v3137_v22  ;;  %v3334_v11 = vmul.f32 %v3137_v22, %v3137_v22  ;;  %v2245_v0 = vadd.f32 %v2211_v48, %v4984_v61 }
 0x2fa   : > { %v2505_v20 = vpop.f32.mrf.mxu2 }
 0x2fb   : > { %v3365_v63 = vadd.f32 %v3364_v60, %v3334_v11  ;;  %v2542_v27 = vadd.f32 %v2505_v20, %v2243_v2 }
 0x2fc   : > { %v2803_v41 = vpop.f32.mrf.mxu3 }
 0x2fd   : > { %v2840_v44 = vadd.f32 %v2803_v41, %v2542_v27 }
 0x2fe   : > { %v3106_v59 = vpop.f32.mrf.mxu0 }
 0x2ff   : > { %v3138_v6 = vadd.f32 %v3101_v46, %v2840_v44 }
 0x301   : > { %v4103_v25 = vpack.c.bf16 %v3138_v6, %v3137_v22  ;;  %v3297_v45 = vadd.f32 %v3296_v8, %v3138_v6  ;;  %v3335_v4 = vmul.f32 %v3138_v6, %v3138_v6 }
 0x302   : > { %v2508_v51 = vpop.f32.mrf.mxu2 }
 0x303   : > { %4138 = vst [vmem:[%s4994_s10 + $0x70] sm:$0xff] %v4103_v25   ;;  %v3366_v12 = vadd.f32 %v3365_v63, %v3335_v4  ;;  %v2543_v19 = vadd.f32 %v2508_v51, %v2244_v28 }
 0x304   : > { %v2806_v7 = vpop.f32.mrf.mxu3 }
 0x305   : > { %v2841_v57 = vadd.f32 %v2806_v7, %v2543_v19 }
 0x307   : > { %v3139_v14 = vadd.f32 %v3104_v13, %v2841_v57 }
 0x309   : > { %v3298_v54 = vadd.f32 %v3297_v45, %v3139_v14  ;;  %v3336_v43 = vmul.f32 %v3139_v14, %v3139_v14 }
 0x30a   : > { %v2510_v39 = vpop.f32.mrf.mxu2 }
 0x30b   : > { %v3367_v35 = vadd.f32 %v3366_v12, %v3336_v43  ;;  %v2544_v62 = vadd.f32 %v2510_v39, %v2245_v0 }
 0x30c   : > { %v2808_v29 = vpop.f32.mrf.mxu3 }
 0x30d   : > { %v2842_v36 = vadd.f32 %v2808_v29, %v2544_v62 }
 0x30f   : > { %v3140_v49 = vadd.f32 %v3106_v59, %v2842_v36 }
 0x311   : > { %v4108_v21 = vpack.c.bf16 %v3140_v49, %v3139_v14  ;;  %v3299_v50 = vadd.f32 %v3298_v54, %v3140_v49  ;;  %v3337_v30 = vmul.f32 %v3140_v49, %v3140_v49 }
 0x313   : > { %4139 = vst [vmem:[%s4994_s10 + $0x78] sm:$0xff] %v4108_v21   ;;  %v3300_v34 = vrot.slane %v3299_v50, 4  ;;  %v3368_v9 = vadd.f32 %v3367_v35, %v3337_v30 }
 0x315   : > { %v3301_v55 = vadd.f32 %v3300_v34, %v3299_v50  ;;  %v3369_v32 = vrot.slane %v3368_v9, 4 }
 0x317   : > { %v3302_v33 = vrot.slane %v3301_v55, 2  ;;  %v3370_v58 = vadd.f32 %v3369_v32, %v3368_v9 }
 0x319   : > { %v3303_v47 = vadd.f32 %v3302_v33, %v3301_v55  ;;  %v3371_v61 = vrot.slane %v3370_v58, 2 }
 0x31b   : > { %v3304_v53 = vrot.slane %v3303_v47, 1  ;;  %v3372_v24 = vadd.f32 %v3371_v61, %v3370_v58 }
 0x31d   : > { %v3373_v56 = vrot.slane %v3372_v24, 1  ;;  %v3305_v42 = vadd.f32 %v3304_v53, %v3303_v47 }
 0x31f   : > { %v3374_v37 = vadd.f32 %v3373_v56, %v3372_v24 }
 0x321   : > { %v3376_v23 = vsel %vm3375_vm0, %v3305_v42, %v3374_v37 }
 0x322   : > { %3377 = vst [vmem:[%s208_s13] sm:$0x3] %v3376_v23 }
 0x323 PF: > { %s15_s15 = sadd.s32 1, %s4180_s15  }
 0x324   : > { %p12_p4 = scmp.ge.s32.totalorder %s15_s15, 4  }
 0x326   :  { %14 = sbr.rel (!%p12_p4) target bundleno = 1 (0x1), region = 84 }

// kernel: basic_block_forward.3
= control target key start
LH: loop header
LB: loop body
LE: loop exit
PB: predicated region body
PF: predicated region fallthrough
CT: control target
= control target key end

     0   :  { %s3967_s12 = smov 0   ;;  %s4720_s0 = inlined_call_operand.vmem [shape: f32[2,16,16,128], index: 0, kind: input, shape index: {}]   ;;  %s4721_s1 = inlined_call_operand.vmem [shape: bf16[9,128,128], index: 1, kind: input, shape index: {}]   ;;  %s4722_s2 = inlined_call_operand.vmem [shape: bf16[2,16,16,128], index: 2, kind: output, shape index: {0}]   ;;  %s4723_s3 = inlined_call_operand.vmem [shape: f32[2,2,128], index: 3, kind: output, shape index: {1}]  }
   0x1 LB: > { %s3306_s13 = sadd.s32 4294967295, %s3943_s12   ;;  %p3310_p0 = scmp.ge.s32.totalorder %s3943_s12, 1  ;;  %s3943_s12 = sphi %s3967_s12, %s14_s12  }
   0x2   : > { %p140_p1 = scmp.lt.s32.totalorder %s3943_s12, 3 }
   0x4   : > { %p141_p2 = pnand %p3310_p0, %p140_p1 }
   0x6   : > { %144 = sbr.rel (%p141_p2) target bundleno = 803 (0x323), region = 28 }
   0xb   : > { %v3743_v0 = vld [vmem:[%s4721_s1 + $0x38] sm:$0xff]  ;;  %p168_p3 = scmp.lt.s32.totalorder %s3306_s13, 1  ;;  %v3945_v1 = vmov 0.0   ;;  %v3742_v2 = vld [vmem:[%s4721_s1 + $0x30] sm:$0xff]  ;;  %v3741_v3 = vld [vmem:[%s4721_s1 + $0x28] sm:$0xff]  ;;  %v3946_v18 = vmov 0.0|0.0  }
   0xc   : > { %226 = vst [vmem:[#allocation2 + $0x60] sm:$0xff] %v3945_v1  ;;  %3903 = vmatpush.bf16.msra.mxu1 %v3743_v0  ;;  %3904 = vmatpush.bf16.msra.mxu2 %v3743_v0  ;;  %v3740_v6 = vld [vmem:[%s4721_s1 + $0x20] sm:$0xff]  ;;  %v3739_v7 = vld [vmem:[%s4721_s1 + $0x18] sm:$0xff]  ;;  %v3738_v8 = vld [vmem:[%s4721_s1 + $0x10] sm:$0xff]  ;;  %vm3217_vm0 = vcmask 1040384  }
   0xd   : > { %s4746_s13 = smov (!%p168_p3, %s3306_s13), 1  ;;  %227 = vst [vmem:[#allocation2 + $0x68] sm:$0xff] %v3945_v1  ;;  %3905 = vmatpush.bf16.msra.mxu3 %v3743_v0  ;;  %477 = vmatpush.bf16.msra.mxu0 %v3743_v0  ;;  %v3737_v9 = vld [vmem:[%s4721_s1 + $0x8] sm:$0xff]  ;;  %v3736_v10 = vld [vmem:[%s4721_s1] sm:$0xff]  ;;  %v3759_v14 = vld [vmem:[%s4721_s1 + $0xb8] sm:$0xff] }
   0xe   : > { %228 = vst [vmem:[#allocation2 + $0x70] sm:$0x3] %v3945_v1  ;;  %s3734_s18 = sshll.u32 %s4746_s13, 8  ;;  %v3767_v15 = vld [vmem:[%s4721_s1 + $0xf8] sm:$0xff]  ;;  %v3758_v19 = vld [vmem:[%s4721_s1 + $0xb0] sm:$0xff]  ;;  %v3757_v23 = vld [vmem:[%s4721_s1 + $0xa8] sm:$0xff] }
   0xf   : > { %214 = vst [vmem:[#allocation2] sm:$0xff] %v3945_v1  ;;  %s3991_s21 = scalar_lea.vmem %s4720_s0, %s3734_s18  ;;  %v3751_v16 = vld [vmem:[%s4721_s1 + $0x78] sm:$0xff]  ;;  %v3766_v20 = vld [vmem:[%s4721_s1 + $0xf0] sm:$0xff]  ;;  %v3765_v24 = vld [vmem:[%s4721_s1 + $0xe8] sm:$0xff]  ;;  %s3315_s20 = sshll.u32 %s4746_s13, 1 }
  0x10   : > { %215 = vst [vmem:[#allocation2 + $0x8] sm:$0xff] %v3945_v1  ;;  %3906 = vmatpush.bf16.msra.mxu1 %v3742_v2  ;;  %3907 = vmatpush.bf16.msra.mxu2 %v3742_v2  ;;  %v3998_v4 = vld [vmem:[%s3991_s21 + $0x30] sm:$0xff]  ;;  %v4001_v5 = vld [vmem:[%s3991_s21 + $0x38] sm:$0xff]  ;;  %v3749_v27 = vld [vmem:[%s4721_s1 + $0x68] sm:$0xff]  ;;  %s181_s24 = scalar_lea.vmem %s4723_s3, %s3315_s20 }
  0x11   : > { %216 = vst [vmem:[#allocation2 + $0x10] sm:$0x3] %v3945_v1  ;;  %3908 = vmatpush.bf16.msra.mxu3 %v3742_v2  ;;  %478 = vmatpush.bf16.msra.mxu0 %v3742_v2  ;;  %v3775_v17 = vld [vmem:[%s4721_s1 + $0x138] sm:$0xff]  ;;  %v3750_v21 = vld [vmem:[%s4721_s1 + $0x70] sm:$0xff]  ;;  %v3756_v29 = vld [vmem:[%s4721_s1 + $0xa0] sm:$0xff] }
  0x12   : > { %275 = vst [vmem:[#allocation2 + $0x61] sm:$0xff] %v3998_v4  ;;  %v4091_v22 = vld [vmem:[%s3991_s21 + $0x70] sm:$0xff]  ;;  %v4105_v26 = vld [vmem:[%s3991_s21 + $0x78] sm:$0xff]  ;;  %v3764_v30 = vld [vmem:[%s4721_s1 + $0xe0] sm:$0xff] }
  0x13   : > { %276 = vst [vmem:[#allocation2 + $0x69] sm:$0xff] %v4001_v5  ;;  %v3774_v25 = vld [vmem:[%s4721_s1 + $0x130] sm:$0xff]  ;;  %v205_v31 = vld [vmem:[%s3991_s21 + $0xb8] sm:$0xff]  ;;  %v3773_v32 = vld [vmem:[%s4721_s1 + $0x128] sm:$0xff] }
  0x14   : > { %217 = vst [vmem:[#allocation2 + $0x18] sm:$0xff] %v3945_v1  ;;  %3909 = vmatpush.bf16.msra.mxu1 %v3741_v3  ;;  %3910 = vmatpush.bf16.msra.mxu2 %v3741_v3  ;;  %v204_v28 = vld [vmem:[%s3991_s21 + $0xb0] sm:$0xff]  ;;  %v3748_v33 = vld [vmem:[%s4721_s1 + $0x60] sm:$0xff]  ;;  %v4131_v35 = vld [vmem:[%s3991_s21 + $0x48] sm:$0xff] }
  0x15   : > { %218 = vst [vmem:[#allocation2 + $0x20] sm:$0xff] %v3945_v1  ;;  %3911 = vmatpush.bf16.msra.mxu3 %v3741_v3  ;;  %479 = vmatpush.bf16.msra.mxu0 %v3741_v3  ;;  %v4128_v34 = vld [vmem:[%s3991_s21 + $0x40] sm:$0xff]  ;;  %v4138_v37 = vld [vmem:[%s3991_s21 + $0x88] sm:$0xff]  ;;  %v4154_v46 = vld [vmem:[%s3991_s21 + $0x50] sm:$0xff] }
  0x16   : > { %219 = vst [vmem:[#allocation2 + $0x28] sm:$0x3] %v3945_v1  ;;  %v4134_v36 = vld [vmem:[%s3991_s21 + $0x80] sm:$0xff]  ;;  %v207_v39 = vld [vmem:[%s3991_s21 + $0xc8] sm:$0xff]  ;;  %v4158_v48 = vld [vmem:[%s3991_s21 + $0x58] sm:$0xff] }
  0x17   : > { %220 = vst [vmem:[#allocation2 + $0x30] sm:$0xff] %v3945_v1  ;;  %v206_v38 = vld [vmem:[%s3991_s21 + $0xc0] sm:$0xff]  ;;  %v4149_v43 = vld [vmem:[%s3991_s21 + $0x8] sm:$0xff]  ;;  %v4163_v51 = vld [vmem:[%s3991_s21 + $0x90] sm:$0xff] }
  0x18   : > { %221 = vst [vmem:[#allocation2 + $0x38] sm:$0xff] %v3945_v1  ;;  %3912 = vmatpush.bf16.msra.mxu1 %v3740_v6  ;;  %3913 = vmatpush.bf16.msra.mxu2 %v3740_v6  ;;  %v4146_v41 = vld [vmem:[%s3991_s21] sm:$0xff]  ;;  %v4167_v53 = vld [vmem:[%s3991_s21 + $0x98] sm:$0xff]  ;;  %v208_v55 = vld [vmem:[%s3991_s21 + $0xd0] sm:$0xff] }
  0x19   : > { %222 = vst [vmem:[#allocation2 + $0x40] sm:$0x3] %v3945_v1  ;;  %3914 = vmatpush.bf16.msra.mxu3 %v3740_v6  ;;  %480 = vmatpush.bf16.msra.mxu0 %v3740_v6  ;;  %v341_v11 = vld [vmem:[#allocation2 + $0x60] sm:$0xff]  ;;  %v3755_v56 = vld [vmem:[%s4721_s1 + $0x98] sm:$0xff]  ;;  %v4190_v61 = vld [vmem:[%s3991_s21 + $0x10] sm:$0xff] }
  0x1a   : > { %223 = vst [vmem:[#allocation2 + $0x48] sm:$0xff] %v3945_v1  ;;  %v342_v12 = vld [vmem:[#allocation2 + $0x68] sm:$0xff]  ;;  %v3763_v57 = vld [vmem:[%s4721_s1 + $0xd8] sm:$0xff]  ;;  %v3772_v59 = vld [vmem:[%s4721_s1 + $0x120] sm:$0xff] }
  0x1b   : > { %224 = vst [vmem:[#allocation2 + $0x50] sm:$0xff] %v3945_v1  ;;  %v4041_v13 = vpack.c.bf16 %v342_v12, %v341_v11  ;;  %v209_v58 = vld [vmem:[%s3991_s21 + $0xd8] sm:$0xff]  ;;  %v3754_v62 = vld [vmem:[%s4721_s1 + $0x90] sm:$0xff]  ;;  %v4208_v6 = vld [vmem:[%s3991_s21 + $0x60] sm:$0xff] }
  0x1c   : > { %225 = vst [vmem:[#allocation2 + $0x58] sm:$0x3] %v3945_v1  ;;  %3915 = vmatpush.bf16.msra.mxu1 %v3739_v7  ;;  %3916 = vmatpush.bf16.msra.mxu2 %v3739_v7  ;;  %v3747_v60 = vld [vmem:[%s4721_s1 + $0x58] sm:$0xff]  ;;  %v3762_v0 = vld [vmem:[%s4721_s1 + $0xd0] sm:$0xff] }
  0x1d   : > { %229 = vst [vmem:[#allocation2 + $0x78] sm:$0xff] %v3945_v1  ;;  %3917 = vmatpush.bf16.msra.mxu3 %v3739_v7  ;;  %481 = vmatpush.bf16.msra.mxu0 %v3739_v7  ;;  %v4196_v63 = vld [vmem:[%s3991_s21 + $0x18] sm:$0xff]  ;;  %v3746_v3 = vld [vmem:[%s4721_s1 + $0x50] sm:$0xff] }
  0x1e   : > { %230 = vst [vmem:[#allocation2 + $0x80] sm:$0xff] %v3945_v1 }
  0x1f   : > { %231 = vst [vmem:[#allocation2 + $0x88] sm:$0x3] %v3945_v1 }
  0x20   : > { %232 = vst [vmem:[#allocation2 + $0x90] sm:$0xff] %v3945_v1  ;;  %3918 = vmatpush.bf16.msra.mxu1 %v3738_v8  ;;  %3919 = vmatpush.bf16.msra.mxu2 %v3738_v8 }
  0x21   : > { %233 = vst [vmem:[#allocation2 + $0x98] sm:$0xff] %v3945_v1  ;;  %3920 = vmatpush.bf16.msra.mxu3 %v3738_v8  ;;  %482 = vmatpush.bf16.msra.mxu0 %v3738_v8  ;;  %v4212_v8 = vld [vmem:[%s3991_s21 + $0x68] sm:$0xff] }
  0x22   : > { %234 = vst [vmem:[#allocation2 + $0xa0] sm:$0x3] %v3945_v1 }
  0x23   : > { %235 = vst [vmem:[#allocation2 + $0xa8] sm:$0xff] %v3945_v1 }
  0x24   : > { %236 = vst [vmem:[#allocation2 + $0xb0] sm:$0xff] %v3945_v1  ;;  %3921 = vmatpush.bf16.msra.mxu1 %v3737_v9  ;;  %3922 = vmatpush.bf16.msra.mxu2 %v3737_v9 }
  0x25   : > { %237 = vst [vmem:[#allocation2 + $0xb8] sm:$0x3] %v3945_v1  ;;  %3923 = vmatpush.bf16.msra.mxu3 %v3737_v9  ;;  %483 = vmatpush.bf16.msra.mxu0 %v3737_v9 }
  0x26   : > { %238 = vst [vmem:[#allocation2 + $0xc0] sm:$0xff] %v3945_v1 }
  0x27   : > { %239 = vst [vmem:[#allocation2 + $0xc8] sm:$0xff] %v3945_v1 }
  0x28   : > { %240 = vst [vmem:[#allocation2 + $0xd0] sm:$0x3] %v3945_v1  ;;  %3924 = vmatpush.bf16.msra.mxu1 %v3736_v10  ;;  %3925 = vmatpush.bf16.msra.mxu2 %v3736_v10 }
  0x29   : > { %241 = vst [vmem:[#allocation2 + $0xd8] sm:$0xff] %v3945_v1  ;;  %3926 = vmatpush.bf16.msra.mxu3 %v3736_v10  ;;  %484 = vmatpush.bf16.msra.mxu0 %v3736_v10  ;;  %v4218_v10 = vld [vmem:[%s3991_s21 + $0xa0] sm:$0xff] }
  0x2a   : > { %242 = vst [vmem:[#allocation2 + $0xe0] sm:$0xff] %v3945_v1 }
  0x2b   : > { %243 = vst [vmem:[#allocation2 + $0xe8] sm:$0x3] %v3945_v1  ;;  %505 = vmatmul.bf16.vlgmr.msra.gmra.mxu1 %v4041_v13 }
  0x2c   : > { %244 = vst [vmem:[#allocation2 + $0xf0] sm:$0xff] %v3945_v1  ;;  %1073 = vmatpush.bf16.msrb.mxu2 %v3759_v14  ;;  %485 = vmatmul.bf16.vlgmr.msra.gmra.mxu0 %v3946_v18  ;;  %v4222_v14 = vld [vmem:[%s3991_s21 + $0xa8] sm:$0xff] }
  0x2d   : > { %245 = vst [vmem:[#allocation2 + $0xf8] sm:$0xff] %v3945_v1  ;;  %1371 = vmatpush.bf16.msrb.mxu3 %v3767_v15  ;;  %775 = vmatpush.bf16.msrb.mxu1 %v3751_v16  ;;  %v210_v15 = vld [vmem:[%s3991_s21 + $0xe0] sm:$0xff]  ;;  %v211_v18 = vld [vmem:[%s3991_s21 + $0xe8] sm:$0xff] }
  0x2e   : > { %246 = vst [vmem:[#allocation2 + $0x100] sm:$0x3] %v3945_v1  ;;  %1669 = vmatpush.bf16.msrb.mxu0 %v3775_v17 }
  0x2f   : > { %247 = vst [vmem:[#allocation2 + $0x108] sm:$0xff] %v3945_v1 }
  0x30   : > { %248 = vst [vmem:[#allocation2 + $0x110] sm:$0xff] %v3945_v1  ;;  %1074 = vmatpush.bf16.msrb.mxu2 %v3758_v19 }
  0x31   : > { %249 = vst [vmem:[#allocation2 + $0x118] sm:$0x3] %v3945_v1  ;;  %1372 = vmatpush.bf16.msrb.mxu3 %v3766_v20  ;;  %776 = vmatpush.bf16.msrb.mxu1 %v3750_v21  ;;  %v4233_v20 = vld [vmem:[%s3991_s21 + $0x20] sm:$0xff] }
  0x32   : > { %250 = vst [vmem:[#allocation2 + $0x120] sm:$0xff] %v3945_v1  ;;  %1670 = vmatpush.bf16.msrb.mxu0 %v3774_v25 }
  0x33   : > { %251 = vst [vmem:[#allocation2 + $0x128] sm:$0xff] %v3945_v1 }
  0x34   : > { %252 = vst [vmem:[#allocation2 + $0x130] sm:$0x3] %v3945_v1  ;;  %1075 = vmatpush.bf16.msrb.mxu2 %v3757_v23 }
  0x35   : > { %253 = vst [vmem:[#allocation2 + $0x138] sm:$0xff] %v3945_v1  ;;  %1373 = vmatpush.bf16.msrb.mxu3 %v3765_v24  ;;  %777 = vmatpush.bf16.msrb.mxu1 %v3749_v27  ;;  %v4236_v24 = vld [vmem:[%s3991_s21 + $0x28] sm:$0xff] }
  0x36   : > { %254 = vst [vmem:[#allocation2 + $0x140] sm:$0xff] %v3945_v1  ;;  %1671 = vmatpush.bf16.msrb.mxu0 %v3773_v32  ;;  %v3770_v32 = vld [vmem:[%s4721_s1 + $0x110] sm:$0xff] }
  0x37   : > { %255 = vst [vmem:[#allocation2 + $0x148] sm:$0x3] %v3945_v1 }
  0x38   : > { %256 = vst [vmem:[#allocation2 + $0x150] sm:$0xff] %v3945_v1  ;;  %1076 = vmatpush.bf16.msrb.mxu2 %v3756_v29  ;;  %v3753_v29 = vld [vmem:[%s4721_s1 + $0x88] sm:$0xff] }
  0x39   : > { %257 = vst [vmem:[#allocation2 + $0x158] sm:$0xff] %v3945_v1  ;;  %1374 = vmatpush.bf16.msrb.mxu3 %v3764_v30  ;;  %778 = vmatpush.bf16.msrb.mxu1 %v3748_v33  ;;  %v3761_v30 = vld [vmem:[%s4721_s1 + $0xc8] sm:$0xff] }
  0x3a   : > { %258 = vst [vmem:[#allocation2 + $0x160] sm:$0x3] %v3945_v1  ;;  %1672 = vmatpush.bf16.msrb.mxu0 %v3772_v59  ;;  %v3745_v33 = vld [vmem:[%s4721_s1 + $0x48] sm:$0xff] }
  0x3b   : > { %259 = vst [vmem:[#allocation2 + $0x168] sm:$0xff] %v3945_v1 }
  0x3c   : > { %260 = vst [vmem:[#allocation2 + $0x170] sm:$0xff] %v3945_v1  ;;  %1077 = vmatpush.bf16.msrb.mxu2 %v3755_v56 }
  0x3d   : > { %261 = vst [vmem:[#allocation2 + $0x178] sm:$0x3] %v3945_v1  ;;  %1375 = vmatpush.bf16.msrb.mxu3 %v3763_v57  ;;  %779 = vmatpush.bf16.msrb.mxu1 %v3747_v60 }
  0x3e   : > { %262 = vst [vmem:[#allocation2 + $0x180] sm:$0xff] %v3945_v1 }
  0x3f   : > { %263 = vst [vmem:[#allocation2 + $0x188] sm:$0xff] %v3945_v1 }
  0x40   : > { %264 = vst [vmem:[#allocation2 + $0x190] sm:$0x3] %v3945_v1  ;;  %1078 = vmatpush.bf16.msrb.mxu2 %v3754_v62  ;;  %v3791_v62 = vld [vmem:[%s4721_s1 + $0x1b8] sm:$0xff] }
  0x41   : > { %265 = vst [vmem:[#allocation2 + $0x198] sm:$0xff] %v3945_v1  ;;  %1376 = vmatpush.bf16.msrb.mxu3 %v3762_v0  ;;  %780 = vmatpush.bf16.msrb.mxu1 %v3746_v3  ;;  %v3799_v0 = vld [vmem:[%s4721_s1 + $0x1f8] sm:$0xff] }
  0x42   : > { %266 = vst [vmem:[#allocation2 + $0x1a0] sm:$0xff] %v3945_v1 }
  0x43   : > { %267 = vst [vmem:[#allocation2 + $0x1a8] sm:$0x3] %v3945_v1  ;;  %v3771_v1 = vld [vmem:[%s4721_s1 + $0x118] sm:$0xff] }
  0x44   : > { %283 = vst [vmem:[#allocation2 + $0xc1] sm:$0xff] %v4091_v22  ;;  %1673 = vmatpush.bf16.msrb.mxu0 %v3771_v1  ;;  %1079 = vmatpush.bf16.msrb.mxu2 %v3753_v29  ;;  %v3783_v1 = vld [vmem:[%s4721_s1 + $0x178] sm:$0xff]  ;;  %v1589_v29 = vpack.c.bf16 %v4196_v63, %v4190_v61 }
  0x45   : > { %284 = vst [vmem:[#allocation2 + $0xc9] sm:$0xff] %v4105_v26  ;;  %1377 = vmatpush.bf16.msrb.mxu3 %v3761_v30  ;;  %781 = vmatpush.bf16.msrb.mxu1 %v3745_v33  ;;  %v1588_v30 = vpack.c.bf16 %v4149_v43, %v4146_v41 }
  0x46   : > { %291 = vst [vmem:[#allocation2 + $0x121] sm:$0xff] %v204_v28 }
  0x47   : > { %292 = vst [vmem:[#allocation2 + $0x129] sm:$0xff] %v205_v31 }
  0x48   : > { %277 = vst [vmem:[#allocation2 + $0x79] sm:$0xff] %v4128_v34  ;;  %1674 = vmatpush.bf16.msrb.mxu0 %v3770_v32  ;;  %v929_v32 = vld [vmem:[#allocation2 + $0xa] sm:$0xff] }
  0x49   : > { %278 = vst [vmem:[#allocation2 + $0x81] sm:$0xff] %v4131_v35 }
  0x4a   : > { %285 = vst [vmem:[#allocation2 + $0xd9] sm:$0xff] %v4134_v36 }
  0x4b   : > { %v349_v40 = vld [vmem:[#allocation2 + $0xc0] sm:$0xff]  ;;  %286 = vst [vmem:[#allocation2 + $0xe1] sm:$0xff] %v4138_v37 }
  0x4c   : > { %v350_v42 = vld [vmem:[#allocation2 + $0xc8] sm:$0xff]  ;;  %293 = vst [vmem:[#allocation2 + $0x139] sm:$0xff] %v206_v38  ;;  %v3752_v38 = vld [vmem:[%s4721_s1 + $0x80] sm:$0xff] }
  0x4d   : > { %v4151_v44 = vpack.c.bf16 %v350_v42, %v349_v40  ;;  %v357_v45 = vld [vmem:[#allocation2 + $0x120] sm:$0xff]  ;;  %294 = vst [vmem:[#allocation2 + $0x141] sm:$0xff] %v207_v39  ;;  %v3769_v40 = vld [vmem:[%s4721_s1 + $0x108] sm:$0xff]  ;;  %1080 = vmatpush.bf16.msrb.mxu2 %v3752_v38  ;;  %v3790_v38 = vld [vmem:[%s4721_s1 + $0x1b0] sm:$0xff] }
  0x4e   : > { %v358_v47 = vld [vmem:[#allocation2 + $0x128] sm:$0xff]  ;;  %269 = vst [vmem:[#allocation2 + $0x19] sm:$0xff] %v4146_v41  ;;  %v3760_v39 = vld [vmem:[%s4721_s1 + $0xc0] sm:$0xff]  ;;  %1675 = vmatpush.bf16.msrb.mxu0 %v3769_v40  ;;  %v3782_v41 = vld [vmem:[%s4721_s1 + $0x170] sm:$0xff] }
  0x4f   : > { %525 = vmatmul.bf16.vlgmr.msra.gmra.mxu2 %v4151_v44  ;;  %v409_v49 = vpack.c.bf16 %v358_v47, %v357_v45  ;;  %v343_v50 = vld [vmem:[#allocation2 + $0x78] sm:$0xff]  ;;  %270 = vst [vmem:[#allocation2 + $0x21] sm:$0xff] %v4149_v43  ;;  %v3744_v45 = vld [vmem:[%s4721_s1 + $0x40] sm:$0xff]  ;;  %1378 = vmatpush.bf16.msrb.mxu3 %v3760_v39  ;;  %v1590_v39 = vpack.c.bf16 %v4236_v24, %v4233_v20  ;;  %v3806_v43 = vld [vmem:[%s4721_s1 + $0x230] sm:$0xff] }
  0x50   : > { %v344_v52 = vld [vmem:[#allocation2 + $0x80] sm:$0xff]  ;;  %279 = vst [vmem:[#allocation2 + $0x91] sm:$0xff] %v4154_v46  ;;  %782 = vmatpush.bf16.msrb.mxu1 %v3744_v45 }
  0x51   : > { %545 = vmatmul.bf16.vlgmr.msra.gmra.mxu3 %v409_v49  ;;  %v4169_v54 = vpack.c.bf16 %v344_v52, %v343_v50  ;;  %280 = vst [vmem:[#allocation2 + $0x99] sm:$0xff] %v4158_v48  ;;  %v351_v11 = vld [vmem:[#allocation2 + $0xd8] sm:$0xff]  ;;  %v3768_v50 = vld [vmem:[%s4721_s1 + $0x100] sm:$0xff]  ;;  %2266 = vmatpush.bf16.msra.mxu2 %v3791_v62 }
  0x52   : > { %287 = vst [vmem:[#allocation2 + $0xf1] sm:$0xff] %v4163_v51  ;;  %v352_v12 = vld [vmem:[#allocation2 + $0xe0] sm:$0xff]  ;;  %1676 = vmatpush.bf16.msrb.mxu0 %v3768_v50  ;;  %v3805_v50 = vld [vmem:[%s4721_s1 + $0x228] sm:$0xff] }
  0x53   : > { %510 = vmatmul.bf16.gmra.mxu1 %v4169_v54  ;;  %288 = vst [vmem:[#allocation2 + $0xf9] sm:$0xff] %v4167_v53  ;;  %v359_v16 = vld [vmem:[#allocation2 + $0x138] sm:$0xff]  ;;  %v4229_v19 = vpack.c.bf16 %v352_v12, %v351_v11  ;;  %2564 = vmatpush.bf16.msra.mxu3 %v3799_v0  ;;  %v1592_v0 = vpack.c.bf16 %v4131_v35, %v4128_v34  ;;  %v3796_v34 = vld [vmem:[%s4721_s1 + $0x1e0] sm:$0xff] }
  0x54   : > { %295 = vst [vmem:[#allocation2 + $0x151] sm:$0xff] %v208_v55  ;;  %v360_v17 = vld [vmem:[#allocation2 + $0x140] sm:$0xff]  ;;  %1967 = vmatpush.bf16.msra.mxu1 %v3783_v1  ;;  %v937_v1 = vld [vmem:[#allocation2 + $0x6a] sm:$0xff] }
  0x55   : > { %v335_v2 = vld [vmem:[#allocation2 + $0x18] sm:$0xff]  ;;  %296 = vst [vmem:[#allocation2 + $0x159] sm:$0xff] %v209_v58  ;;  %v410_v25 = vpack.c.bf16 %v360_v17, %v359_v16  ;;  %2267 = vmatpush.bf16.msra.mxu2 %v3790_v38 }
  0x56   : > { %v336_v7 = vld [vmem:[#allocation2 + $0x20] sm:$0xff]  ;;  %271 = vst [vmem:[#allocation2 + $0x31] sm:$0xff] %v4190_v61  ;;  %v3798_v61 = vld [vmem:[%s4721_s1 + $0x1f0] sm:$0xff] }
  0x57   : > { %v4214_v9 = vpack.c.bf16 %v336_v7, %v335_v2  ;;  %272 = vst [vmem:[#allocation2 + $0x39] sm:$0xff] %v4196_v63  ;;  %v345_v21 = vld [vmem:[#allocation2 + $0x90] sm:$0xff]  ;;  %v3807_v7 = vld [vmem:[%s4721_s1 + $0x238] sm:$0xff]  ;;  %2565 = vmatpush.bf16.msra.mxu3 %v3798_v61 }
  0x58   : > { %281 = vst [vmem:[#allocation2 + $0xa9] sm:$0xff] %v4208_v6  ;;  %v346_v23 = vld [vmem:[#allocation2 + $0x98] sm:$0xff]  ;;  %2862 = vmatpush.bf16.msra.mxu0 %v3807_v7  ;;  %1968 = vmatpush.bf16.msra.mxu1 %v3782_v41 }
  0x59   : > { %490 = vmatmul.bf16.gmra.mxu0 %v4214_v9  ;;  %282 = vst [vmem:[#allocation2 + $0xb1] sm:$0xff] %v4212_v8  ;;  %v4240_v27 = vpack.c.bf16 %v346_v23, %v345_v21  ;;  %v353_v47 = vld [vmem:[#allocation2 + $0xf0] sm:$0xff]  ;;  %v630_v21 = vld [vmem:[#allocation2 + $0x1] sm:$0xff] }
  0x5a   : > { %289 = vst [vmem:[#allocation2 + $0x109] sm:$0xff] %v4218_v10  ;;  %v354_v49 = vld [vmem:[#allocation2 + $0xf8] sm:$0xff]  ;;  %v631_v23 = vld [vmem:[#allocation2 + $0x9] sm:$0xff] }
  0x5b   : > { %290 = vst [vmem:[#allocation2 + $0x111] sm:$0xff] %v4222_v14  ;;  %v361_v52 = vld [vmem:[#allocation2 + $0x150] sm:$0xff]  ;;  %v4274_v56 = vpack.c.bf16 %v354_v49, %v353_v47  ;;  %v930_v63 = vld [vmem:[#allocation2 + $0x1a] sm:$0xff]  ;;  %v3789_v47 = vld [vmem:[%s4721_s1 + $0x1a8] sm:$0xff] }
  0x5c   : > { %297 = vst [vmem:[#allocation2 + $0x169] sm:$0xff] %v210_v15  ;;  %v362_v55 = vld [vmem:[#allocation2 + $0x158] sm:$0xff]  ;;  %2863 = vmatpush.bf16.msra.mxu0 %v3806_v43  ;;  %v3797_v49 = vld [vmem:[%s4721_s1 + $0x1e8] sm:$0xff]  ;;  %2268 = vmatpush.bf16.msra.mxu2 %v3789_v47 }
  0x5d   : > { %298 = vst [vmem:[#allocation2 + $0x171] sm:$0xff] %v211_v18  ;;  %v337_v28 = vld [vmem:[#allocation2 + $0x30] sm:$0xff]  ;;  %v411_v59 = vpack.c.bf16 %v362_v55, %v361_v52  ;;  %2566 = vmatpush.bf16.msra.mxu3 %v3797_v49  ;;  %v1591_v52 = vpack.c.bf16 %v4001_v5, %v3998_v4  ;;  %v936_v5 = vld [vmem:[#allocation2 + $0x62] sm:$0xff]  ;;  %v941_v61 = vld [vmem:[#allocation2 + $0x9a] sm:$0xff]  ;;  %v1595_v49 = vpack.c.bf16 %v4105_v26, %v4091_v22 }
  0x5e   : > { %273 = vst [vmem:[#allocation2 + $0x49] sm:$0xff] %v4233_v20  ;;  %v338_v31 = vld [vmem:[#allocation2 + $0x38] sm:$0xff] }
  0x5f   : > { %530 = vmatmul.bf16.gmra.mxu2 %v4229_v19  ;;  %274 = vst [vmem:[#allocation2 + $0x51] sm:$0xff] %v4236_v24  ;;  %v4265_v42 = vpack.c.bf16 %v338_v31, %v337_v28  ;;  %v347_v57 = vld [vmem:[#allocation2 + $0xa8] sm:$0xff]  ;;  %v694_v28 = vpack.c.bf16 %v631_v23, %v630_v21  ;;  %v932_v24 = vld [vmem:[#allocation2 + $0x32] sm:$0xff]  ;;  %v933_v40 = vld [vmem:[#allocation2 + $0x3a] sm:$0xff] }
  0x60   : > { %v348_v58 = vld [vmem:[#allocation2 + $0xb0] sm:$0xff]  ;;  %v928_v31 = vld [vmem:[#allocation2 + $0x2] sm:$0xff]  ;;  %v4321_v45 = vpack.c.bf16 %v933_v40, %v932_v24  ;;  %2864 = vmatpush.bf16.msra.mxu0 %v3805_v50 }
  0x61   : > { %550 = vmatmul.bf16.gmra.mxu3 %v410_v25  ;;  %v4277_v60 = vpack.c.bf16 %v348_v58, %v347_v57  ;;  %v355_v12 = vld [vmem:[#allocation2 + $0x108] sm:$0xff]  ;;  %v992_v33 = vpack.c.bf16 %v929_v32, %v928_v31 }
  0x62   : > { %v356_v15 = vld [vmem:[#allocation2 + $0x110] sm:$0xff]  ;;  %2567 = vmatpush.bf16.msra.mxu3 %v3796_v34  ;;  %v939_v21 = vld [vmem:[#allocation2 + $0x82] sm:$0xff] }
  0x63   : > { %515 = vmatmul.bf16.gmra.mxu1 %v4240_v27  ;;  %v363_v16 = vld [vmem:[#allocation2 + $0x168] sm:$0xff]  ;;  %v4292_v18 = vpack.c.bf16 %v356_v15, %v355_v12  ;;  %v3780_v12 = vld [vmem:[%s4721_s1 + $0x160] sm:$0xff]  ;;  %v1593_v15 = vpack.c.bf16 %v4158_v48, %v4154_v46 }
  0x64   : > { %v364_v17 = vld [vmem:[#allocation2 + $0x170] sm:$0xff] }
  0x65   : > { %v339_v2 = vld [vmem:[#allocation2 + $0x48] sm:$0xff]  ;;  %v4294_v25 = vpack.c.bf16 %v364_v17, %v363_v16  ;;  %v938_v17 = vld [vmem:[#allocation2 + $0x7a] sm:$0xff] }
  0x66   : > { %v340_v3 = vld [vmem:[#allocation2 + $0x50] sm:$0xff] }
  0x67   : > { %v400_v11 = vpack.c.bf16 %v340_v3, %v339_v2  ;;  %v934_v55 = vld [vmem:[#allocation2 + $0x4a] sm:$0xff]  ;;  %v935_v57 = vld [vmem:[#allocation2 + $0x52] sm:$0xff]  ;;  %v4350_v2 = vpack.c.bf16 %v937_v1, %v936_v5 }
  0x68   : > { %v4338_v58 = vpack.c.bf16 %v935_v57, %v934_v55  ;;  %v943_v55 = vld [vmem:[#allocation2 + $0xb2] sm:$0xff] }
  0x69   : > { %495 = vmatmul.bf16.gmra.mxu0 %v4265_v42 }
  0x6f   : > { %535 = vmatmul.bf16.gmra.mxu2 %v4274_v56 }
  0x71   : > { %555 = vmatmul.bf16.gmra.mxu3 %v411_v59 }
  0x73   : > { %520 = vmatmul.bf16.gmra.mxu1 %v4277_v60 }
  0x79   : > { %500 = vmatmul.bf16.gmra.mxu0 %v400_v11 }
  0x7f   : > { %540 = vmatmul.bf16.gmra.mxu2 %v4292_v18 }
  0x81   : > { %560 = vmatmul.bf16.gmra.mxu3 %v4294_v25 }
  0x83   : > { %783 = vmatmul.bf16.vlgmr.msrb.gmra.mxu1 %v694_v28 }
  0x89   : > { %1677 = vmatmul.bf16.vlgmr.msrb.gmra.mxu0 %v1588_v30 }
  0x8f   : > { %1081 = vmatmul.bf16.vlgmr.msrb.gmra.mxu2 %v992_v33  ;;  %v1594_v33 = vpack.c.bf16 %v4212_v8, %v4208_v6  ;;  %v3787_v6 = vld [vmem:[%s4721_s1 + $0x198] sm:$0xff] }
  0x90   : > { %v3795_v8 = vld [vmem:[%s4721_s1 + $0x1d8] sm:$0xff] }
  0x91   : > { %1379 = vmatmul.bf16.vlgmr.msrb.gmra.mxu3 %v4214_v9  ;;  %v931_v9 = vld [vmem:[#allocation2 + $0x22] sm:$0xff] }
  0x92   : > { %v4317_v20 = vpack.c.bf16 %v931_v9, %v930_v63  ;;  %2568 = vmatpush.bf16.msra.mxu3 %v3795_v8 }
  0x93   : > { %788 = vmatmul.bf16.gmra.mxu1 %v1588_v30 }
  0x99   : > { %1682 = vmatmul.bf16.gmra.mxu0 %v1589_v29 }
  0x9f   : > { %1086 = vmatmul.bf16.gmra.mxu2 %v4317_v20 }
  0xa1   : > { %1384 = vmatmul.bf16.gmra.mxu3 %v4265_v42  ;;  %v3781_v42 = vld [vmem:[%s4721_s1 + $0x168] sm:$0xff] }
  0xa2   : > { %1969 = vmatpush.bf16.msra.mxu1 %v3781_v42  ;;  %v3803_v42 = vld [vmem:[%s4721_s1 + $0x218] sm:$0xff] }
  0xa3   : > { %793 = vmatmul.bf16.gmra.mxu1 %v1589_v29  ;;  %v4382_v29 = vpack.c.bf16 %v939_v21, %v938_v17  ;;  %v945_v17 = vld [vmem:[#allocation2 + $0xca] sm:$0xff] }
  0xa6   : > { %1970 = vmatpush.bf16.msra.mxu1 %v3780_v12  ;;  %v1596_v12 = vpack.c.bf16 %v4138_v37, %v4134_v36  ;;  %v3786_v37 = vld [vmem:[%s4721_s1 + $0x190] sm:$0xff] }
  0xa8   : > { %v4340_v59 = vpop.f32.mrf.mxu1 }
  0xa9   : > { %1687 = vmatmul.bf16.gmra.mxu0 %v1590_v39  ;;  %v4344_v62 = vpop.f32.mrf.mxu0 }
  0xaf   : > { %1091 = vmatmul.bf16.gmra.mxu2 %v4321_v45 }
  0xb0   : > { %v4348_v4 = vpop.f32.mrf.mxu1 }
  0xb1   : > { %1389 = vmatmul.bf16.gmra.mxu3 %v400_v11  ;;  %v4352_v3 = vpop.f32.mrf.mxu0 }
  0xb3   : > { %798 = vmatmul.bf16.gmra.mxu1 %v1590_v39  ;;  %v940_v39 = vld [vmem:[#allocation2 + $0x92] sm:$0xff] }
  0xb4   : > { %v4404_v63 = vpack.c.bf16 %v941_v61, %v940_v39 }
  0xb9   : > { %1692 = vmatmul.bf16.gmra.mxu0 %v1591_v52 }
  0xbf   : > { %1096 = vmatmul.bf16.gmra.mxu2 %v4338_v58 }
  0xc1   : > { %1394 = vmatmul.bf16.gmra.mxu3 %v4041_v13  ;;  %v3788_v13 = vld [vmem:[%s4721_s1 + $0x1a0] sm:$0xff] }
  0xc2   : > { %2269 = vmatpush.bf16.msra.mxu2 %v3788_v13 }
  0xc3   : > { %803 = vmatmul.bf16.gmra.mxu1 %v1591_v52  ;;  %v942_v52 = vld [vmem:[#allocation2 + $0xaa] sm:$0xff] }
  0xc4   : > { %v4438_v22 = vpack.c.bf16 %v943_v55, %v942_v52 }
  0xc6   : > { %2270 = vmatpush.bf16.msra.mxu2 %v3787_v6 }
  0xc9   : > { %1697 = vmatmul.bf16.gmra.mxu0 %v1592_v0 }
  0xca   : > { %2271 = vmatpush.bf16.msra.mxu2 %v3786_v37 }
  0xcf   : > { %1101 = vmatmul.bf16.gmra.mxu2 %v4350_v2 }
  0xd0   : > { %v4355_v7 = vpop.f32.mrf.mxu1 }
  0xd1   : > { %1399 = vmatmul.bf16.gmra.mxu3 %v4169_v54  ;;  %v3804_v54 = vld [vmem:[%s4721_s1 + $0x220] sm:$0xff] }
  0xd2   : > { %v4364_v35 = vpop.f32.mrf.mxu2  ;;  %2865 = vmatpush.bf16.msra.mxu0 %v3804_v54 }
  0xd3   : > { %808 = vmatmul.bf16.gmra.mxu1 %v1592_v0 }
  0xd4   : > { %v4366_v11 = vpop.f32.mrf.mxu3 }
  0xd6   : > { %v4376_v16 = vpop.f32.mrf.mxu0  ;;  %2866 = vmatpush.bf16.msra.mxu0 %v3803_v42 }
  0xd8   : > { %v4378_v23 = vpop.f32.mrf.mxu1 }
  0xd9   : > { %1702 = vmatmul.bf16.gmra.mxu0 %v1593_v15 }
  0xda   : > { %v4380_v28 = vpop.f32.mrf.mxu2 }
  0xdc   : > { %v4384_v30 = vpop.f32.mrf.mxu3 }
  0xde   : > { %v4386_v31 = vpop.f32.mrf.mxu0 }
  0xdf   : > { %1106 = vmatmul.bf16.gmra.mxu2 %v4382_v29 }
  0xe0   : > { %v4389_v46 = vpop.f32.mrf.mxu1 }
  0xe1   : > { %1404 = vmatmul.bf16.gmra.mxu3 %v4240_v27 }
  0xe2   : > { %v4392_v48 = vpop.f32.mrf.mxu2 }
  0xe3   : > { %813 = vmatmul.bf16.gmra.mxu1 %v1593_v15  ;;  %v944_v15 = vld [vmem:[#allocation2 + $0xc2] sm:$0xff] }
  0xe4   : > { %v4394_v32 = vpop.f32.mrf.mxu3  ;;  %v4455_v61 = vpack.c.bf16 %v945_v17, %v944_v15  ;;  %v947_v17 = vld [vmem:[#allocation2 + $0xe2] sm:$0xff] }
  0xe6   : > { %v4398_v38 = vpop.f32.mrf.mxu0 }
  0xe8   : > { %v4400_v41 = vpop.f32.mrf.mxu1 }
  0xe9   : > { %1707 = vmatmul.bf16.gmra.mxu0 %v1594_v33 }
  0xea   : > { %v4402_v43 = vpop.f32.mrf.mxu2 }
  0xec   : > { %v4406_v27 = vpop.f32.mrf.mxu3 }
  0xee   : > { %v4408_v9 = vpop.f32.mrf.mxu0 }
  0xef   : > { %1111 = vmatmul.bf16.gmra.mxu2 %v4404_v63 }
  0xf0   : > { %v4411_v24 = vpop.f32.mrf.mxu1 }
  0xf1   : > { %1409 = vmatmul.bf16.gmra.mxu3 %v4277_v60  ;;  %v3779_v60 = vld [vmem:[%s4721_s1 + $0x158] sm:$0xff] }
  0xf2   : > { %v4420_v40 = vpop.f32.mrf.mxu2  ;;  %1971 = vmatpush.bf16.msra.mxu1 %v3779_v60 }
  0xf3   : > { %818 = vmatmul.bf16.gmra.mxu1 %v1594_v33 }
  0xf4   : > { %v4422_v47 = vpop.f32.mrf.mxu3 }
  0xf6   : > { %v4432_v50 = vpop.f32.mrf.mxu0 }
  0xf8   : > { %v4434_v57 = vpop.f32.mrf.mxu1 }
  0xf9   : > { %1712 = vmatmul.bf16.gmra.mxu0 %v1595_v49 }
  0xfa   : > { %v4436_v0 = vpop.f32.mrf.mxu2 }
  0xfc   : > { %v4440_v26 = vpop.f32.mrf.mxu3 }
  0xfe   : > { %v4442_v5 = vpop.f32.mrf.mxu0 }
  0xff   : > { %1116 = vmatmul.bf16.gmra.mxu2 %v4438_v22 }
 0x100   : > { %v784_v1 = vpop.f32.mrf.mxu1 }
 0x101   : > { %1414 = vmatmul.bf16.gmra.mxu3 %v4151_v44 }
 0x102   : > { %v4446_v13 = vpop.f32.mrf.mxu2 }
 0x103   : > { %823 = vmatmul.bf16.gmra.mxu1 %v1595_v49  ;;  %v864_v49 = vadd.f32 %v784_v1, %v4344_v62  ;;  %v3778_v62 = vld [vmem:[%s4721_s1 + $0x150] sm:$0xff] }
 0x104   : > { %v4448_v34 = vpop.f32.mrf.mxu3  ;;  %1972 = vmatpush.bf16.msra.mxu1 %v3778_v62 }
 0x106   : > { %v1678_v54 = vpop.f32.mrf.mxu0 }
 0x108   : > { %v786_v21 = vpop.f32.mrf.mxu1 }
 0x109   : > { %1717 = vmatmul.bf16.gmra.mxu0 %v1596_v12  ;;  %v865_v33 = vadd.f32 %v786_v21, %v4352_v3  ;;  %v3794_v3 = vld [vmem:[%s4721_s1 + $0x1d0] sm:$0xff] }
 0x10a   : > { %v4453_v39 = vpop.f32.mrf.mxu2  ;;  %2569 = vmatpush.bf16.msra.mxu3 %v3794_v3 }
 0x10c   : > { %v4457_v44 = vpop.f32.mrf.mxu3 }
 0x10e   : > { %v1680_v6 = vpop.f32.mrf.mxu0 }
 0x10f   : > { %1121 = vmatmul.bf16.gmra.mxu2 %v4455_v61 }
 0x110   : > { %v789_v8 = vpop.f32.mrf.mxu1 }
 0x111   : > { %1419 = vmatmul.bf16.gmra.mxu3 %v4229_v19  ;;  %v866_v36 = vadd.f32 %v789_v8, %v4376_v16  ;;  %v1597_v19 = vpack.c.bf16 %v4167_v53, %v4163_v51  ;;  %v3802_v16 = vld [vmem:[%s4721_s1 + $0x210] sm:$0xff] }
 0x112   : > { %v1082_v60 = vpop.f32.mrf.mxu2  ;;  %2867 = vmatpush.bf16.msra.mxu0 %v3802_v16 }
 0x113   : > { %v1162_v42 = vadd.f32 %v1082_v60, %v864_v49  ;;  %828 = vmatmul.bf16.gmra.mxu1 %v1596_v12  ;;  %v946_v12 = vld [vmem:[#allocation2 + $0xda] sm:$0xff] }
 0x114   : > { %v1380_v52 = vpop.f32.mrf.mxu3  ;;  %v4480_v49 = vpack.c.bf16 %v947_v17, %v946_v12 }
 0x115   : > { %v1460_v55 = vadd.f32 %v1380_v52, %v1162_v42 }
 0x116   : > { %v1683_v1 = vpop.f32.mrf.mxu0 }
 0x117   : > { %v4477_v15 = vadd.f32 %v1678_v54, %v1460_v55 }
 0x118   : > { %v791_v21 = vpop.f32.mrf.mxu1 }
 0x119   : > { %1722 = vmatmul.bf16.gmra.mxu0 %v1597_v19  ;;  %v867_v8 = vadd.f32 %v791_v21, %v4386_v31  ;;  %v948_v21 = vld [vmem:[#allocation2 + $0xf2] sm:$0xff] }
 0x11a   : > { %v1084_v51 = vpop.f32.mrf.mxu2 }
 0x11b   : > { %v1163_v53 = vadd.f32 %v1084_v51, %v865_v33  ;;  %v1598_v33 = vpack.c.bf16 %v4222_v14, %v4218_v10  ;;  %v949_v51 = vld [vmem:[#allocation2 + $0xfa] sm:$0xff] }
 0x11c   : > { %v1382_v37 = vpop.f32.mrf.mxu3 }
 0x11d   : > { %v1461_v3 = vadd.f32 %v1382_v37, %v1163_v53 }
 0x11e   : > { %v1685_v60 = vpop.f32.mrf.mxu0 }
 0x11f   : > { %1126 = vmatmul.bf16.gmra.mxu2 %v4480_v49  ;;  %v4483_v42 = vadd.f32 %v1680_v6, %v1461_v3 }
 0x120   : > { %v794_v52 = vpop.f32.mrf.mxu1 }
 0x121   : > { %1424 = vmatmul.bf16.gmra.mxu3 %v4274_v56  ;;  %v868_v54 = vadd.f32 %v794_v52, %v4398_v38  ;;  %v4492_v38 = vpack.c.bf16 %v949_v51, %v948_v21  ;;  %v3801_v21 = vld [vmem:[%s4721_s1 + $0x208] sm:$0xff] }
 0x122   : > { %v1087_v55 = vpop.f32.mrf.mxu2  ;;  %2868 = vmatpush.bf16.msra.mxu0 %v3801_v21 }
 0x123   : > { %v1164_v62 = vadd.f32 %v1087_v55, %v866_v36  ;;  %833 = vmatmul.bf16.gmra.mxu1 %v1597_v19  ;;  %v1546_v55 = vld [vmem:[#allocation2 + $0x121] sm:$0xff] }
 0x124   : > { %v1385_v31 = vpop.f32.mrf.mxu3 }
 0x125   : > { %v1462_v16 = vadd.f32 %v1385_v31, %v1164_v62  ;;  %v1547_v62 = vld [vmem:[#allocation2 + $0x129] sm:$0xff] }
 0x126   : > { %v1688_v12 = vpop.f32.mrf.mxu0 }
 0x127   : > { %v4489_v17 = vadd.f32 %v1683_v1, %v1462_v16  ;;  %v3793_v1 = vld [vmem:[%s4721_s1 + $0x1c8] sm:$0xff] }
 0x128   : > { %v796_v6 = vpop.f32.mrf.mxu1  ;;  %2570 = vmatpush.bf16.msra.mxu3 %v3793_v1 }
 0x129   : > { %1727 = vmatmul.bf16.gmra.mxu0 %v1598_v33  ;;  %v869_v53 = vadd.f32 %v796_v6, %v4408_v9  ;;  %v3785_v9 = vld [vmem:[%s4721_s1 + $0x188] sm:$0xff] }
 0x12a   : > { %v1089_v56 = vpop.f32.mrf.mxu2  ;;  %2272 = vmatpush.bf16.msra.mxu2 %v3785_v9 }
 0x12b   : > { %v1165_v37 = vadd.f32 %v1089_v56, %v867_v8 }
 0x12c   : > { %v1387_v36 = vpop.f32.mrf.mxu3 }
 0x12d   : > { %v1463_v19 = vadd.f32 %v1387_v36, %v1165_v37 }
 0x12e   : > { %v1690_v3 = vpop.f32.mrf.mxu0 }
 0x12f   : > { %1131 = vmatmul.bf16.gmra.mxu2 %v4492_v38  ;;  %v4495_v52 = vadd.f32 %v1685_v60, %v1463_v19  ;;  %v1248_v19 = vld [vmem:[#allocation2 + $0x120] sm:$0xff] }
 0x130   : > { %v799_v10 = vpop.f32.mrf.mxu1 }
 0x131   : > { %1429 = vmatmul.bf16.gmra.mxu3 %v4292_v18  ;;  %v870_v14 = vadd.f32 %v799_v10, %v4432_v50  ;;  %v4505_v18 = vpack.c.bf16 %v1547_v62, %v1546_v55  ;;  %v3777_v50 = vld [vmem:[%s4721_s1 + $0x148] sm:$0xff] }
 0x132   : > { %v1092_v8 = vpop.f32.mrf.mxu2  ;;  %1973 = vmatpush.bf16.msra.mxu1 %v3777_v50  ;;  %v1249_v10 = vld [vmem:[#allocation2 + $0x128] sm:$0xff] }
 0x133   : > { %v1166_v31 = vadd.f32 %v1092_v8, %v868_v54  ;;  %838 = vmatmul.bf16.gmra.mxu1 %v1598_v33  ;;  %4727 = vst [vmem:[#allocation4_spill] sm:$0xff] %v4505_v18  ;;  %v950_v54 = vld [vmem:[#allocation2 + $0x10a] sm:$0xff]  ;;  %v951_v33 = vld [vmem:[#allocation2 + $0x112] sm:$0xff]  ;;  %v4519_v62 = vpack.c.bf16 %v1249_v10, %v1248_v19  ;;  %v1549_v50 = vld [vmem:[#allocation2 + $0x141] sm:$0xff] }
 0x134   : > { %v1390_v60 = vpop.f32.mrf.mxu3  ;;  %v4517_v1 = vpack.c.bf16 %v951_v33, %v950_v54  ;;  %v952_v19 = vld [vmem:[#allocation2 + $0x122] sm:$0xff]  ;;  %v953_v10 = vld [vmem:[#allocation2 + $0x12a] sm:$0xff] }
 0x135   : > { %v1464_v16 = vadd.f32 %v1390_v60, %v1166_v31  ;;  %4729 = vst [vmem:[#allocation6_spill] sm:$0xff] %v4519_v62 }
 0x136   : > { %v1693_v51 = vpop.f32.mrf.mxu0 }
 0x137   : > { %v4513_v6 = vadd.f32 %v1688_v12, %v1464_v16 }
 0x138   : > { %v801_v56 = vpop.f32.mrf.mxu1 }
 0x139   : > { %4728 = vst [vmem:[#allocation5_spill] sm:$0xff] %v4513_v6  ;;  %1732 = vmatmul.bf16.gmra.mxu0 %v4505_v18  ;;  %v871_v37 = vadd.f32 %v801_v56, %v4442_v5  ;;  %v1548_v5 = vld [vmem:[#allocation2 + $0x139] sm:$0xff]  ;;  %v4528_v6 = vpack.c.bf16 %v953_v10, %v952_v19 }
 0x13a   : > { %v1094_v36 = vpop.f32.mrf.mxu2  ;;  %v1600_v33 = vpack.c.bf16 %v1549_v50, %v1548_v5  ;;  %v3776_v19 = vld [vmem:[%s4721_s1 + $0x140] sm:$0xff] }
 0x13b   : > { %v1167_v9 = vadd.f32 %v1094_v36, %v869_v53  ;;  %4732 = vst [vmem:[#allocation9_spill] sm:$0xff] %v4528_v6  ;;  %v3800_v10 = vld [vmem:[%s4721_s1 + $0x200] sm:$0xff]  ;;  %1974 = vmatpush.bf16.msra.mxu1 %v3776_v19 }
 0x13c   : > { %v1392_v8 = vpop.f32.mrf.mxu3  ;;  %2869 = vmatpush.bf16.msra.mxu0 %v3800_v10 }
 0x13d   : > { %v1465_v55 = vadd.f32 %v1392_v8, %v1167_v9  ;;  %v1250_v8 = vld [vmem:[#allocation2 + $0x138] sm:$0xff] }
 0x13e   : > { %v1695_v31 = vpop.f32.mrf.mxu0 }
 0x13f   : > { %1136 = vmatmul.bf16.gmra.mxu2 %v4517_v1  ;;  %v4522_v12 = vadd.f32 %v1690_v3, %v1465_v55  ;;  %v1251_v55 = vld [vmem:[#allocation2 + $0x140] sm:$0xff] }
 0x140   : > { %v804_v60 = vpop.f32.mrf.mxu1 }
 0x141   : > { %4730 = vst [vmem:[#allocation7_spill] sm:$0xff] %v4522_v12  ;;  %1434 = vmatmul.bf16.gmra.mxu3 %v4519_v62  ;;  %v872_v50 = vadd.f32 %v804_v60, %v4340_v59 }
 0x142   : > { %v1097_v16 = vpop.f32.mrf.mxu2 }
 0x143   : > { %v1168_v21 = vadd.f32 %v1097_v16, %v870_v14  ;;  %843 = vmatmul.bf16.gmra.mxu1 %v4505_v18  ;;  %v1302_v16 = vpack.c.bf16 %v1251_v55, %v1250_v8  ;;  %v4547_v8 = vld [vmem:[%s3991_s21 + $0xf0] sm:$0xff]  ;;  %v4550_v55 = vld [vmem:[%s3991_s21 + $0xf8] sm:$0xff]  ;;  %s3735_s21 = sshll.u32 %s4746_s13, 7 }
 0x144   : > { %v1395_v53 = vpop.f32.mrf.mxu3  ;;  %299 = vst [vmem:[#allocation2 + $0x181] sm:$0xff] %v4547_v8  ;;  %s4658_s19 = scalar_lea.vmem %s4722_s2, %s3735_s21 }
 0x145   : > { %v1466_v54 = vadd.f32 %v1395_v53, %v1168_v21  ;;  %v3784_v21 = vld [vmem:[%s4721_s1 + $0x180] sm:$0xff]  ;;  %300 = vst [vmem:[#allocation2 + $0x189] sm:$0xff] %v4550_v55 }
 0x146   : > { %v1698_v56 = vpop.f32.mrf.mxu0  ;;  %v1551_v53 = vld [vmem:[#allocation2 + $0x159] sm:$0xff]  ;;  %2273 = vmatpush.bf16.msra.mxu2 %v3784_v21 }
 0x147   : > { %v4526_v36 = vadd.f32 %v1693_v51, %v1466_v54 }
 0x148   : > { %v806_v9 = vpop.f32.mrf.mxu1 }
 0x149   : > { %4731 = vst [vmem:[#allocation8_spill] sm:$0xff] %v4526_v36  ;;  %1737 = vmatmul.bf16.gmra.mxu0 %v1600_v33  ;;  %v873_v21 = vadd.f32 %v806_v9, %v4348_v4  ;;  %v1552_v9 = vld [vmem:[#allocation2 + $0x169] sm:$0xff]  ;;  %v1553_v36 = vld [vmem:[#allocation2 + $0x171] sm:$0xff] }
 0x14a   : > { %v1099_v3 = vpop.f32.mrf.mxu2 }
 0x14b   : > { %v1169_v12 = vadd.f32 %v1099_v3, %v871_v37  ;;  %v3792_v37 = vld [vmem:[%s4721_s1 + $0x1c0] sm:$0xff] }
 0x14c   : > { %v1397_v62 = vpop.f32.mrf.mxu3  ;;  %2571 = vmatpush.bf16.msra.mxu3 %v3792_v37 }
 0x14d   : > { %v1467_v14 = vadd.f32 %v1397_v62, %v1169_v12  ;;  %v1550_v12 = vld [vmem:[#allocation2 + $0x151] sm:$0xff] }
 0x14e   : > { %v1700_v18 = vpop.f32.mrf.mxu0  ;;  %v1601_v60 = vpack.c.bf16 %v1551_v53, %v1550_v12  ;;  %v1253_v12 = vld [vmem:[#allocation2 + $0x158] sm:$0xff] }
 0x14f   : > { %1141 = vmatmul.bf16.gmra.mxu2 %v4528_v6  ;;  %v4531_v5 = vadd.f32 %v1695_v31, %v1467_v14  ;;  %v954_v14 = vld [vmem:[#allocation2 + $0x13a] sm:$0xff] }
 0x150   : > { %v809_v51 = vpop.f32.mrf.mxu1 }
 0x151   : > { %4733 = vst [vmem:[#allocation10_spill] sm:$0xff] %v4531_v5  ;;  %1439 = vmatmul.bf16.gmra.mxu3 %v1302_v16  ;;  %v955_v16 = vld [vmem:[#allocation2 + $0x142] sm:$0xff] }
 0x152   : > { %v1102_v62 = vpop.f32.mrf.mxu2 }
 0x153   : > { %v1170_v54 = vadd.f32 %v1102_v62, %v872_v50  ;;  %848 = vmatmul.bf16.gmra.mxu1 %v1600_v33  ;;  %v1252_v62 = vld [vmem:[#allocation2 + $0x150] sm:$0xff] }
 0x154   : > { %v1400_v31 = vpop.f32.mrf.mxu3  ;;  %v1303_v10 = vpack.c.bf16 %v1253_v12, %v1252_v62  ;;  %v956_v62 = vld [vmem:[#allocation2 + $0x152] sm:$0xff]  ;;  %v957_v12 = vld [vmem:[#allocation2 + $0x15a] sm:$0xff] }
 0x155   : > { %v1468_v59 = vadd.f32 %v1400_v31, %v1170_v54  ;;  %v4557_v54 = vpack.c.bf16 %v955_v16, %v954_v14  ;;  %v1602_v16 = vpack.c.bf16 %v1553_v36, %v1552_v9  ;;  %v1603_v9 = vpack.c.bf16 %v4550_v55, %v4547_v8 }
 0x156   : > { %v1703_v3 = vpop.f32.mrf.mxu0 }
 0x157   : > { %v4553_v33 = vadd.f32 %v1698_v56, %v1468_v59 }
 0x158   : > { %v811_v50 = vpop.f32.mrf.mxu1 }
 0x159   : > { %4734 = vst [vmem:[#allocation11_spill] sm:$0xff] %v4553_v33  ;;  %1742 = vmatmul.bf16.gmra.mxu0 %v1601_v60  ;;  %v874_v33 = vadd.f32 %v809_v51, %v4355_v7  ;;  %v4566_v51 = vpack.c.bf16 %v957_v12, %v956_v62  ;;  %v958_v62 = vld [vmem:[#allocation2 + $0x16a] sm:$0xff]  ;;  %v959_v12 = vld [vmem:[#allocation2 + $0x172] sm:$0xff] }
 0x15a   : > { %v1104_v37 = vpop.f32.mrf.mxu2 }
 0x15b   : > { %v1171_v53 = vadd.f32 %v1104_v37, %v873_v21 }
 0x15c   : > { %v1402_v31 = vpop.f32.mrf.mxu3 }
 0x15d   : > { %v1469_v19 = vadd.f32 %v1402_v31, %v1171_v53 }
 0x15e   : > { %v1705_v5 = vpop.f32.mrf.mxu0 }
 0x15f   : > { %1146 = vmatmul.bf16.gmra.mxu2 %v4557_v54  ;;  %v4560_v56 = vadd.f32 %v1700_v18, %v1469_v19  ;;  %v875_v18 = vadd.f32 %v811_v50, %v4378_v23 }
 0x160   : > { %v814_v59 = vpop.f32.mrf.mxu1 }
 0x161   : > { %4735 = vst [vmem:[#allocation12_spill] sm:$0xff] %v4560_v56  ;;  %1444 = vmatmul.bf16.gmra.mxu3 %v1303_v10 }
 0x162   : > { %v1107_v4 = vpop.f32.mrf.mxu2 }
 0x163   : > { %v1172_v6 = vadd.f32 %v1107_v4, %v874_v33  ;;  %853 = vmatmul.bf16.gmra.mxu1 %v1601_v60  ;;  %v876_v60 = vadd.f32 %v814_v59, %v4389_v46  ;;  %v1256_v59 = vld [vmem:[#allocation2 + $0x180] sm:$0xff] }
 0x164   : > { %v1405_v21 = vpop.f32.mrf.mxu3 }
 0x165   : > { %v1470_v14 = vadd.f32 %v1405_v21, %v1172_v6 }
 0x166   : > { %v1708_v37 = vpop.f32.mrf.mxu0 }
 0x167   : > { %v4563_v53 = vadd.f32 %v1703_v3, %v1470_v14 }
 0x168   : > { %v816_v31 = vpop.f32.mrf.mxu1 }
 0x169   : > { %1747 = vmatmul.bf16.gmra.mxu0 %v1602_v16 }
 0x16a   : > { %v1109_v19 = vpop.f32.mrf.mxu2 }
 0x16b   : > { %v1173_v7 = vadd.f32 %v1109_v19, %v875_v18  ;;  %v4578_v19 = vpack.c.bf16 %v959_v12, %v958_v62  ;;  %v2122_v62 = vld [vmem:[#allocation2 + $0x38] sm:$0xff] }
 0x16c   : > { %v1407_v10 = vpop.f32.mrf.mxu3 }
 0x16d   : > { %v1471_v56 = vadd.f32 %v1407_v10, %v1173_v7 }
 0x16e   : > { %v1710_v33 = vpop.f32.mrf.mxu0 }
 0x16f   : > { %1151 = vmatmul.bf16.gmra.mxu2 %v4566_v51  ;;  %v4569_v6 = vadd.f32 %v1705_v5, %v1471_v56  ;;  %v877_v56 = vadd.f32 %v816_v31, %v4400_v41 }
 0x170   : > { %v819_v36 = vpop.f32.mrf.mxu1 }
 0x171   : > { %1449 = vmatmul.bf16.gmra.mxu3 %v4294_v25  ;;  %v1257_v25 = vld [vmem:[#allocation2 + $0x188] sm:$0xff] }
 0x172   : > { %v1112_v3 = vpop.f32.mrf.mxu2  ;;  %v1305_v10 = vpack.c.bf16 %v1257_v25, %v1256_v59 }
 0x173   : > { %v1174_v4 = vadd.f32 %v1112_v3, %v876_v60  ;;  %858 = vmatmul.bf16.gmra.mxu1 %v1602_v16 }
 0x174   : > { %v1410_v23 = vpop.f32.mrf.mxu3 }
 0x175   : > { %v1472_v50 = vadd.f32 %v1410_v23, %v1174_v4 }
 0x176   : > { %v1713_v21 = vpop.f32.mrf.mxu0 }
 0x177   : > { %v4575_v14 = vadd.f32 %v1708_v37, %v1472_v50  ;;  %v878_v37 = vadd.f32 %v819_v36, %v4411_v24  ;;  %v2420_v24 = vld [vmem:[#allocation2 + $0x39] sm:$0xff] }
 0x178   : > { %v821_v5 = vpop.f32.mrf.mxu1 }
 0x179   : > { %1752 = vmatmul.bf16.gmra.mxu0 %v1603_v9  ;;  %v2121_v9 = vld [vmem:[#allocation2 + $0x30] sm:$0xff] }
 0x17a   : > { %v1114_v46 = vpop.f32.mrf.mxu2  ;;  %v2185_v59 = vpack.c.bf16 %v2122_v62, %v2121_v9  ;;  %v2123_v62 = vld [vmem:[#allocation2 + $0x48] sm:$0xff] }
 0x17b   : > { %v1175_v18 = vadd.f32 %v1114_v46, %v877_v56  ;;  %v879_v56 = vadd.f32 %v821_v5, %v4434_v57  ;;  %v2419_v46 = vld [vmem:[#allocation2 + $0x31] sm:$0xff] }
 0x17c   : > { %v1412_v16 = vpop.f32.mrf.mxu3 }
 0x17d   : > { %v1473_v7 = vadd.f32 %v1412_v16, %v1175_v18  ;;  %v1824_v18 = vld [vmem:[#allocation2 + $0x32] sm:$0xff] }
 0x17e   : > { %v1715_v60 = vpop.f32.mrf.mxu0 }
 0x17f   : > { %1156 = vmatmul.bf16.gmra.mxu2 %v4578_v19  ;;  %v4581_v8 = vadd.f32 %v1710_v33, %v1473_v7  ;;  %v2483_v7 = vpack.c.bf16 %v2420_v24, %v2419_v46  ;;  %v2421_v24 = vld [vmem:[#allocation2 + $0x49] sm:$0xff] }
 0x180   : > { %v824_v55 = vpop.f32.mrf.mxu1 }
 0x181   : > { %1454 = vmatmul.bf16.gmra.mxu3 %v1305_v10  ;;  %v880_v57 = vadd.f32 %v824_v55, %v4364_v35 }
 0x182   : > { %v1117_v41 = vpop.f32.mrf.mxu2 }
 0x183   : > { %v1176_v31 = vadd.f32 %v1117_v41, %v878_v37  ;;  %1975 = vmatmul.bf16.vlgmr.msra.gmra.mxu1 %v4317_v20  ;;  %v1825_v20 = vld [vmem:[#allocation2 + $0x3a] sm:$0xff] }
 0x184   : > { %v1415_v3 = vpop.f32.mrf.mxu3 }
 0x185   : > { %v1474_v4 = vadd.f32 %v1415_v3, %v1176_v31 }
 0x186   : > { %v1718_v23 = vpop.f32.mrf.mxu0 }
 0x187   : > { %v4585_v50 = vadd.f32 %v1713_v21, %v1474_v4  ;;  %v1887_v21 = vpack.c.bf16 %v1825_v20, %v1824_v18 }
 0x188   : > { %v826_v12 = vpop.f32.mrf.mxu1 }
 0x189   : > { %2870 = vmatmul.bf16.vlgmr.msra.gmra.mxu0 %v4321_v45  ;;  %v881_v46 = vadd.f32 %v826_v12, %v4380_v28 }
 0x18a   : > { %v1119_v33 = vpop.f32.mrf.mxu2 }
 0x18b   : > { %v1177_v36 = vadd.f32 %v1119_v33, %v879_v56  ;;  %v2124_v56 = vld [vmem:[#allocation2 + $0x50] sm:$0xff] }
 0x18c   : > { %v1417_v25 = vpop.f32.mrf.mxu3  ;;  %v2186_v55 = vpack.c.bf16 %v2124_v56, %v2123_v62 }
 0x18d   : > { %v1475_v16 = vadd.f32 %v1417_v25, %v1177_v36  ;;  %v2422_v36 = vld [vmem:[#allocation2 + $0x51] sm:$0xff] }
 0x18e   : > { %v1720_v10 = vpop.f32.mrf.mxu0  ;;  %v2484_v18 = vpack.c.bf16 %v2422_v36, %v2421_v24  ;;  %v1828_v36 = vld [vmem:[#allocation2 + $0x62] sm:$0xff] }
 0x18f   : > { %2274 = vmatmul.bf16.vlgmr.msra.gmra.mxu2 %v2185_v59  ;;  %v4589_v37 = vadd.f32 %v1715_v60, %v1475_v16 }
 0x190   : > { %v829_v41 = vpop.f32.mrf.mxu1 }
 0x191   : > { %2572 = vmatmul.bf16.vlgmr.msra.gmra.mxu3 %v2483_v7  ;;  %v882_v7 = vadd.f32 %v829_v41, %v4392_v48  ;;  %v2424_v48 = vld [vmem:[#allocation2 + $0x69] sm:$0xff] }
 0x192   : > { %v1122_v45 = vpop.f32.mrf.mxu2 }
 0x193   : > { %v1178_v5 = vadd.f32 %v1122_v45, %v880_v57  ;;  %1980 = vmatmul.bf16.gmra.mxu1 %v1887_v21 }
 0x194   : > { %v1420_v31 = vpop.f32.mrf.mxu3 }
 0x195   : > { %v1476_v3 = vadd.f32 %v1420_v31, %v1178_v5  ;;  %v2125_v31 = vld [vmem:[#allocation2 + $0x60] sm:$0xff] }
 0x196   : > { %v1723_v4 = vpop.f32.mrf.mxu0 }
 0x197   : > { %v4592_v9 = vadd.f32 %v1718_v23, %v1476_v3  ;;  %v2126_v3 = vld [vmem:[#allocation2 + $0x68] sm:$0xff] }
 0x198   : > { %v831_v33 = vpop.f32.mrf.mxu1 }
 0x199   : > { %2875 = vmatmul.bf16.gmra.mxu0 %v4338_v58  ;;  %v883_v56 = vadd.f32 %v831_v33, %v4402_v43 }
 0x19a   : > { %v1124_v60 = vpop.f32.mrf.mxu2 }
 0x19b   : > { %v1179_v35 = vadd.f32 %v1124_v60, %v881_v46  ;;  %v2423_v46 = vld [vmem:[#allocation2 + $0x61] sm:$0xff]  ;;  %v2187_v60 = vpack.c.bf16 %v2126_v3, %v2125_v31 }
 0x19c   : > { %v1422_v59 = vpop.f32.mrf.mxu3  ;;  %v2128_v31 = vld [vmem:[#allocation2 + $0x80] sm:$0xff] }
 0x19d   : > { %v1477_v25 = vadd.f32 %v1422_v59, %v1179_v35 }
 0x19e   : > { %v1725_v20 = vpop.f32.mrf.mxu0 }
 0x19f   : > { %2279 = vmatmul.bf16.gmra.mxu2 %v2186_v55  ;;  %v4596_v16 = vadd.f32 %v1720_v10, %v1477_v25  ;;  %v2485_v55 = vpack.c.bf16 %v2424_v48, %v2423_v46  ;;  %v2426_v46 = vld [vmem:[#allocation2 + $0x81] sm:$0xff] }
 0x1a0   : > { %v834_v23 = vpop.f32.mrf.mxu1 }
 0x1a1   : > { %2577 = vmatmul.bf16.gmra.mxu3 %v2484_v18  ;;  %v884_v43 = vadd.f32 %v834_v23, %v4420_v40 }
 0x1a2   : > { %v1127_v21 = vpop.f32.mrf.mxu2 }
 0x1a3   : > { %v1180_v28 = vadd.f32 %v1127_v21, %v882_v7  ;;  %1985 = vmatmul.bf16.gmra.mxu1 %v4338_v58  ;;  %v1829_v58 = vld [vmem:[#allocation2 + $0x6a] sm:$0xff] }
 0x1a4   : > { %v1425_v12 = vpop.f32.mrf.mxu3 }
 0x1a5   : > { %v1478_v57 = vadd.f32 %v1425_v12, %v1180_v28 }
 0x1a6   : > { %v1728_v45 = vpop.f32.mrf.mxu0 }
 0x1a7   : > { %v4600_v5 = vadd.f32 %v1723_v4, %v1478_v57  ;;  %v1889_v4 = vpack.c.bf16 %v1829_v58, %v1828_v36  ;;  %v2127_v57 = vld [vmem:[#allocation2 + $0x78] sm:$0xff] }
 0x1a8   : > { %v836_v62 = vpop.f32.mrf.mxu1  ;;  %v2188_v23 = vpack.c.bf16 %v2128_v31, %v2127_v57 }
 0x1a9   : > { %2880 = vmatmul.bf16.gmra.mxu0 %v4350_v2 }
 0x1aa   : > { %v1129_v10 = vpop.f32.mrf.mxu2 }
 0x1ab   : > { %v1181_v41 = vadd.f32 %v1129_v10, %v883_v56  ;;  %v885_v56 = vadd.f32 %v836_v62, %v4436_v0  ;;  %v2425_v10 = vld [vmem:[#allocation2 + $0x79] sm:$0xff] }
 0x1ac   : > { %v1427_v24 = vpop.f32.mrf.mxu3  ;;  %v2486_v36 = vpack.c.bf16 %v2426_v46, %v2425_v10  ;;  %v1832_v46 = vld [vmem:[#allocation2 + $0x92] sm:$0xff] }
 0x1ad   : > { %v1479_v35 = vadd.f32 %v1427_v24, %v1181_v41  ;;  %v1830_v41 = vld [vmem:[#allocation2 + $0x7a] sm:$0xff] }
 0x1ae   : > { %v1730_v59 = vpop.f32.mrf.mxu0 }
 0x1af   : > { %2284 = vmatmul.bf16.gmra.mxu2 %v2187_v60  ;;  %v4604_v25 = vadd.f32 %v1725_v20, %v1479_v35  ;;  %v1831_v60 = vld [vmem:[#allocation2 + $0x82] sm:$0xff] }
 0x1b0   : > { %v839_v18 = vpop.f32.mrf.mxu1 }
 0x1b1   : > { %2582 = vmatmul.bf16.gmra.mxu3 %v2485_v55  ;;  %v886_v0 = vadd.f32 %v839_v18, %v4446_v13 }
 0x1b2   : > { %v1132_v2 = vpop.f32.mrf.mxu2 }
 0x1b3   : > { %v1182_v33 = vadd.f32 %v1132_v2, %v884_v43  ;;  %1990 = vmatmul.bf16.gmra.mxu1 %v1889_v4 }
 0x1b4   : > { %v1430_v7 = vpop.f32.mrf.mxu3 }
 0x1b5   : > { %v1480_v21 = vadd.f32 %v1430_v7, %v1182_v33  ;;  %v2129_v7 = vld [vmem:[#allocation2 + $0x90] sm:$0xff] }
 0x1b6   : > { %v1733_v28 = vpop.f32.mrf.mxu0 }
 0x1b7   : > { %v4607_v12 = vadd.f32 %v1728_v45, %v1480_v21  ;;  %v1890_v45 = vpack.c.bf16 %v1831_v60, %v1830_v41  ;;  %v2130_v21 = vld [vmem:[#allocation2 + $0x98] sm:$0xff] }
 0x1b8   : > { %v841_v3 = vpop.f32.mrf.mxu1  ;;  %v2189_v18 = vpack.c.bf16 %v2130_v21, %v2129_v7  ;;  %v2429_v21 = vld [vmem:[#allocation2 + $0xa9] sm:$0xff] }
 0x1b9   : > { %2885 = vmatmul.bf16.gmra.mxu0 %v4382_v29  ;;  %v887_v31 = vadd.f32 %v841_v3, %v4453_v39 }
 0x1ba   : > { %v1134_v20 = vpop.f32.mrf.mxu2 }
 0x1bb   : > { %v1183_v40 = vadd.f32 %v1134_v20, %v885_v56  ;;  %v2427_v56 = vld [vmem:[#allocation2 + $0x91] sm:$0xff]  ;;  %v2428_v20 = vld [vmem:[#allocation2 + $0x99] sm:$0xff] }
 0x1bc   : > { %v1432_v48 = vpop.f32.mrf.mxu3 }
 0x1bd   : > { %v1481_v24 = vadd.f32 %v1432_v48, %v1183_v40  ;;  %v1833_v40 = vld [vmem:[#allocation2 + $0x9a] sm:$0xff]  ;;  %v2487_v48 = vpack.c.bf16 %v2428_v20, %v2427_v56 }
 0x1be   : > { %v1735_v58 = vpop.f32.mrf.mxu0 }
 0x1bf   : > { %2289 = vmatmul.bf16.gmra.mxu2 %v2188_v23  ;;  %v4611_v35 = vadd.f32 %v1730_v59, %v1481_v24 }
 0x1c0   : > { %v844_v55 = vpop.f32.mrf.mxu1 }
 0x1c1   : > { %2587 = vmatmul.bf16.gmra.mxu3 %v2486_v36  ;;  %v888_v39 = vadd.f32 %v844_v55, %v4366_v11 }
 0x1c2   : > { %v1137_v29 = vpop.f32.mrf.mxu2 }
 0x1c3   : > { %v1184_v62 = vadd.f32 %v1137_v29, %v886_v0  ;;  %1995 = vmatmul.bf16.gmra.mxu1 %v1890_v45 }
 0x1c4   : > { %v1435_v4 = vpop.f32.mrf.mxu3 }
 0x1c5   : > { %v1482_v43 = vadd.f32 %v1435_v4, %v1184_v62  ;;  %v2131_v62 = vld [vmem:[#allocation2 + $0xa8] sm:$0xff]  ;;  %v2132_v4 = vld [vmem:[#allocation2 + $0xb0] sm:$0xff] }
 0x1c6   : > { %v1738_v2 = vpop.f32.mrf.mxu0  ;;  %v2190_v55 = vpack.c.bf16 %v2132_v4, %v2131_v62  ;;  %v1836_v4 = vld [vmem:[#allocation2 + $0xc2] sm:$0xff] }
 0x1c7   : > { %v4614_v33 = vadd.f32 %v1733_v28, %v1482_v43  ;;  %v1891_v28 = vpack.c.bf16 %v1833_v40, %v1832_v46 }
 0x1c8   : > { %v846_v57 = vpop.f32.mrf.mxu1 }
 0x1c9   : > { %2890 = vmatmul.bf16.gmra.mxu0 %v4404_v63  ;;  %v889_v7 = vadd.f32 %v846_v57, %v4384_v30 }
 0x1ca   : > { %v1139_v59 = vpop.f32.mrf.mxu2 }
 0x1cb   : > { %v1185_v13 = vadd.f32 %v1139_v59, %v887_v31  ;;  %v2430_v31 = vld [vmem:[#allocation2 + $0xb1] sm:$0xff] }
 0x1cc   : > { %v1437_v10 = vpop.f32.mrf.mxu3  ;;  %v2488_v20 = vpack.c.bf16 %v2430_v31, %v2429_v21 }
 0x1cd   : > { %v1483_v23 = vadd.f32 %v1437_v10, %v1185_v13 }
 0x1ce   : > { %v1740_v41 = vpop.f32.mrf.mxu0 }
 0x1cf   : > { %2294 = vmatmul.bf16.gmra.mxu2 %v2189_v18  ;;  %v4618_v60 = vadd.f32 %v1735_v58, %v1483_v23 }
 0x1d0   : > { %v849_v24 = vpop.f32.mrf.mxu1 }
 0x1d1   : > { %2592 = vmatmul.bf16.gmra.mxu3 %v2487_v48  ;;  %v890_v10 = vadd.f32 %v849_v24, %v4394_v32  ;;  %v2432_v32 = vld [vmem:[#allocation2 + $0xc9] sm:$0xff] }
 0x1d2   : > { %v1142_v63 = vpop.f32.mrf.mxu2 }
 0x1d3   : > { %v1186_v3 = vadd.f32 %v1142_v63, %v888_v39  ;;  %2000 = vmatmul.bf16.gmra.mxu1 %v1891_v28  ;;  %v2133_v28 = vld [vmem:[#allocation2 + $0xc0] sm:$0xff]  ;;  %v2134_v39 = vld [vmem:[#allocation2 + $0xc8] sm:$0xff] }
 0x1d4   : > { %v1440_v36 = vpop.f32.mrf.mxu3 }
 0x1d5   : > { %v1484_v45 = vadd.f32 %v1440_v36, %v1186_v3  ;;  %v2431_v36 = vld [vmem:[#allocation2 + $0xc1] sm:$0xff] }
 0x1d6   : > { %v1743_v0 = vpop.f32.mrf.mxu0 }
 0x1d7   : > { %v4621_v29 = vadd.f32 %v1738_v2, %v1484_v45  ;;  %v2191_v45 = vpack.c.bf16 %v2134_v39, %v2133_v28  ;;  %v2434_v28 = vld [vmem:[#allocation2 + $0xe1] sm:$0xff] }
 0x1d8   : > { %v851_v43 = vpop.f32.mrf.mxu1 }
 0x1d9   : > { %2895 = vmatmul.bf16.gmra.mxu0 %v4438_v22  ;;  %v891_v3 = vadd.f32 %v851_v43, %v4406_v27 }
 0x1da   : > { %v1144_v58 = vpop.f32.mrf.mxu2 }
 0x1db   : > { %v1187_v11 = vadd.f32 %v1144_v58, %v889_v7  ;;  %v2489_v58 = vpack.c.bf16 %v2432_v32, %v2431_v36 }
 0x1dc   : > { %v1442_v59 = vpop.f32.mrf.mxu3 }
 0x1dd   : > { %v1485_v56 = vadd.f32 %v1442_v59, %v1187_v11 }
 0x1de   : > { %v1745_v13 = vpop.f32.mrf.mxu0 }
 0x1df   : > { %2299 = vmatmul.bf16.gmra.mxu2 %v2190_v55  ;;  %v4625_v18 = vadd.f32 %v1740_v41, %v1485_v56 }
 0x1e0   : > { %v854_v2 = vpop.f32.mrf.mxu1 }
 0x1e1   : > { %2597 = vmatmul.bf16.gmra.mxu3 %v2488_v20  ;;  %v892_v27 = vadd.f32 %v854_v2, %v4422_v47 }
 0x1e2   : > { %v1147_v46 = vpop.f32.mrf.mxu2 }
 0x1e3   : > { %v1188_v30 = vadd.f32 %v1147_v46, %v890_v10  ;;  %2005 = vmatmul.bf16.gmra.mxu1 %v4438_v22  ;;  %v1837_v22 = vld [vmem:[#allocation2 + $0xca] sm:$0xff]  ;;  %v2135_v10 = vld [vmem:[#allocation2 + $0xd8] sm:$0xff]  ;;  %v2136_v46 = vld [vmem:[#allocation2 + $0xe0] sm:$0xff] }
 0x1e4   : > { %v1445_v57 = vpop.f32.mrf.mxu3  ;;  %v2192_v2 = vpack.c.bf16 %v2136_v46, %v2135_v10 }
 0x1e5   : > { %v1486_v40 = vadd.f32 %v1445_v57, %v1188_v30 }
 0x1e6   : > { %v1748_v23 = vpop.f32.mrf.mxu0 }
 0x1e7   : > { %v4629_v48 = vadd.f32 %v1743_v0, %v1486_v40  ;;  %v1893_v0 = vpack.c.bf16 %v1837_v22, %v1836_v4  ;;  %v2433_v40 = vld [vmem:[#allocation2 + $0xd9] sm:$0xff] }
 0x1e8   : > { %v856_v63 = vpop.f32.mrf.mxu1 }
 0x1e9   : > { %2900 = vmatmul.bf16.gmra.mxu0 %v4455_v61  ;;  %v893_v57 = vadd.f32 %v856_v63, %v4440_v26 }
 0x1ea   : > { %v1149_v41 = vpop.f32.mrf.mxu2 }
 0x1eb   : > { %v1189_v24 = vadd.f32 %v1149_v41, %v891_v3  ;;  %v2490_v41 = vpack.c.bf16 %v2434_v28, %v2433_v40  ;;  %v2139_v28 = vld [vmem:[#allocation2 + $0x108] sm:$0xff] }
 0x1ec   : > { %v1447_v62 = vpop.f32.mrf.mxu3 }
 0x1ed   : > { %v1487_v7 = vadd.f32 %v1447_v62, %v1189_v24 }
 0x1ee   : > { %v1750_v21 = vpop.f32.mrf.mxu0 }
 0x1ef   : > { %2304 = vmatmul.bf16.gmra.mxu2 %v2191_v45  ;;  %v4633_v31 = vadd.f32 %v1745_v13, %v1487_v7  ;;  %v2137_v7 = vld [vmem:[#allocation2 + $0xf0] sm:$0xff] }
 0x1f0   : > { %v859_v11 = vpop.f32.mrf.mxu1 }
 0x1f1   : > { %2602 = vmatmul.bf16.gmra.mxu3 %v2489_v58  ;;  %v894_v24 = vadd.f32 %v859_v11, %v4448_v34  ;;  %v2138_v58 = vld [vmem:[#allocation2 + $0xf8] sm:$0xff] }
 0x1f2   : > { %v1152_v61 = vpop.f32.mrf.mxu2  ;;  %v2436_v34 = vld [vmem:[#allocation2 + $0xf9] sm:$0xff] }
 0x1f3   : > { %v1190_v43 = vadd.f32 %v1152_v61, %v892_v27  ;;  %2010 = vmatmul.bf16.gmra.mxu1 %v1893_v0  ;;  %v2435_v61 = vld [vmem:[#allocation2 + $0xf1] sm:$0xff] }
 0x1f4   : > { %v1450_v55 = vpop.f32.mrf.mxu3 }
 0x1f5   : > { %v1488_v59 = vadd.f32 %v1450_v55, %v1190_v43  ;;  %v2193_v43 = vpack.c.bf16 %v2138_v58, %v2137_v7 }
 0x1f6   : > { %v1753_v56 = vpop.f32.mrf.mxu0 }
 0x1f7   : > { %v4636_v20 = vadd.f32 %v1748_v23, %v1488_v59 }
 0x1f8   : > { %v861_v30 = vpop.f32.mrf.mxu1 }
 0x1f9   : > { %2905 = vmatmul.bf16.gmra.mxu0 %v4480_v49  ;;  %v895_v27 = vadd.f32 %v861_v30, %v4457_v44 }
 0x1fa   : > { %v1154_v13 = vpop.f32.mrf.mxu2 }
 0x1fb   : > { %v1191_v47 = vadd.f32 %v1154_v13, %v893_v57 }
 0x1fc   : > { %v1452_v39 = vpop.f32.mrf.mxu3 }
 0x1fd   : > { %v1489_v3 = vadd.f32 %v1452_v39, %v1191_v47  ;;  %v2140_v47 = vld [vmem:[#allocation2 + $0x110] sm:$0xff] }
 0x1fe   : > { %v1755_v36 = vpop.f32.mrf.mxu0 }
 0x1ff   : > { %2309 = vmatmul.bf16.gmra.mxu2 %v2192_v2  ;;  %v4640_v32 = vadd.f32 %v1750_v21, %v1489_v3 }
 0x200   : > { %v1976_v23 = vpop.f32.mrf.mxu1 }
 0x201   : > { %2607 = vmatmul.bf16.gmra.mxu3 %v2490_v41  ;;  %v2056_v13 = vadd.f32 %v1976_v23, %v4477_v15 }
 0x202   : > { %v1157_v45 = vpop.f32.mrf.mxu2 }
 0x203   : > { %v1192_v26 = vadd.f32 %v1157_v45, %v894_v24  ;;  %2015 = vmatmul.bf16.gmra.mxu1 %v4480_v49  ;;  %v2491_v49 = vpack.c.bf16 %v2436_v34, %v2435_v61  ;;  %v2438_v24 = vld [vmem:[#allocation2 + $0x111] sm:$0xff] }
 0x204   : > { %v1455_v63 = vpop.f32.mrf.mxu3 }
 0x205   : > { %v1490_v62 = vadd.f32 %v1455_v63, %v1192_v26  ;;  %v2194_v26 = vpack.c.bf16 %v2140_v47, %v2139_v28 }
 0x206   : > { %v2871_v4 = vpop.f32.mrf.mxu0 }
 0x207   : > { %v4644_v22 = vadd.f32 %v1753_v56, %v1490_v62 }
 0x208   : > { %v1978_v0 = vpop.f32.mrf.mxu1 }
 0x209   : > { %2910 = vmatmul.bf16.gmra.mxu0 %v4492_v38  ;;  %v2057_v3 = vadd.f32 %v1978_v0, %v4483_v42 }
 0x20a   : > { %v1159_v21 = vpop.f32.mrf.mxu2 }
 0x20b   : > { %v1193_v11 = vadd.f32 %v1159_v21, %v895_v27 }
 0x20c   : > { %v1457_v55 = vpop.f32.mrf.mxu3 }
 0x20d   : > { %v1491_v59 = vadd.f32 %v1457_v55, %v1193_v11 }
 0x20e   : > { %v2873_v10 = vpop.f32.mrf.mxu0 }
 0x20f   : > { %2314 = vmatmul.bf16.gmra.mxu2 %v2193_v43  ;;  %v4648_v46 = vadd.f32 %v1755_v36, %v1491_v59  ;;  %v2437_v36 = vld [vmem:[#allocation2 + $0x109] sm:$0xff] }
 0x210   : > { %v1981_v56 = vpop.f32.mrf.mxu1  ;;  %v2492_v63 = vpack.c.bf16 %v2438_v24, %v2437_v36  ;;  %v4737_v24 = vld [vmem:[#allocation6_spill] sm:$0xff] }
 0x211   : > { %2612 = vmatmul.bf16.gmra.mxu3 %v2491_v49  ;;  %v2058_v42 = vadd.f32 %v1981_v56, %v4489_v17  ;;  %v4736_v56 = vld [vmem:[#allocation9_spill] sm:$0xff] }
 0x212   : > { %v2275_v57 = vpop.f32.mrf.mxu2 }
 0x213   : > { %2020 = vmatmul.bf16.gmra.mxu1 %v4492_v38  ;;  %v2355_v30 = vadd.f32 %v2275_v57, %v2056_v13 }
 0x214   : > { %v2573_v44 = vpop.f32.mrf.mxu3 }
 0x215   : > { %v2653_v39 = vadd.f32 %v2573_v44, %v2355_v30 }
 0x216   : > { %v2876_v40 = vpop.f32.mrf.mxu0 }
 0x217   : > { %v2951_v23 = vadd.f32 %v2871_v4, %v2653_v39  ;;  %v1844_v39 = vld [vmem:[#allocation2 + $0x122] sm:$0xff] }
 0x218   : > { %v1983_v2 = vpop.f32.mrf.mxu1 }
 0x219   : > { %2915 = vmatmul.bf16.gmra.mxu0 %v4517_v1  ;;  %v3148_v0 = vmul.f32 %v2951_v23, %v2951_v23  ;;  %v2059_v17 = vadd.f32 %v1983_v2, %v4495_v52  ;;  %v4738_v52 = vld [vmem:[#allocation5_spill] sm:$0xff] }
 0x21a   : > { %v2277_v41 = vpop.f32.mrf.mxu2 }
 0x21b   : > { %v2356_v45 = vadd.f32 %v2277_v41, %v2057_v3  ;;  %v1845_v3 = vld [vmem:[#allocation2 + $0x12a] sm:$0xff] }
 0x21c   : > { %v2575_v15 = vpop.f32.mrf.mxu3 }
 0x21d   : > { %v2654_v38 = vadd.f32 %v2575_v15, %v2356_v45 }
 0x21e   : > { %v2878_v62 = vpop.f32.mrf.mxu0 }
 0x21f   : > { %v2952_v7 = vadd.f32 %v2873_v10, %v2654_v38  ;;  %2319 = vmatmul.bf16.gmra.mxu2 %v2194_v26  ;;  %v4739_v38 = vld [vmem:[#allocation4_spill] sm:$0xff] }
 0x220   : > { %v1986_v58 = vpop.f32.mrf.mxu1 }
 0x221   : > { %v3811_v27 = vpack.c.bf16 %v2952_v7, %v2951_v23  ;;  %v3111_v21 = vadd.f32 %v2952_v7, %v2951_v23  ;;  %v3149_v61 = vmul.f32 %v2952_v7, %v2952_v7  ;;  %2617 = vmatmul.bf16.gmra.mxu3 %v2492_v63  ;;  %v2060_v2 = vadd.f32 %v1986_v58, %v4738_v52 }
 0x222   : > { %v2280_v4 = vpop.f32.mrf.mxu2 }
 0x223   : > { %3812 = vst [vmem:[%s4658_s19] sm:$0xff] %v3811_v27   ;;  %v3180_v34 = vadd.f32 %v3149_v61, %v3148_v0  ;;  %v2357_v11 = vadd.f32 %v2280_v4, %v2058_v42  ;;  %2025 = vmatmul.bf16.gmra.mxu1 %v4517_v1  ;;  %v2143_v61 = vld [vmem:[#allocation2 + $0x138] sm:$0xff]  ;;  %v2144_v4 = vld [vmem:[#allocation2 + $0x140] sm:$0xff] }
 0x224   : > { %v2578_v43 = vpop.f32.mrf.mxu3 }
 0x225   : > { %v2655_v55 = vadd.f32 %v2578_v43, %v2357_v11 }
 0x226   : > { %v2881_v59 = vpop.f32.mrf.mxu0 }
 0x227   : > { %v2953_v49 = vadd.f32 %v2876_v40, %v2655_v55  ;;  %v1897_v40 = vpack.c.bf16 %v1845_v3, %v1844_v39  ;;  %v4740_v55 = vld [vmem:[#allocation7_spill] sm:$0xff] }
 0x228   : > { %v1988_v10 = vpop.f32.mrf.mxu1 }
 0x229   : > { %v3112_v57 = vadd.f32 %v3111_v21, %v2953_v49  ;;  %v3150_v13 = vmul.f32 %v2953_v49, %v2953_v49  ;;  %2920 = vmatmul.bf16.gmra.mxu0 %v4736_v56 }
 0x22a   : > { %v2282_v44 = vpop.f32.mrf.mxu2 }
 0x22b   : > { %v3181_v30 = vadd.f32 %v3180_v34, %v3150_v13  ;;  %v2358_v28 = vadd.f32 %v2282_v44, %v2059_v17  ;;  %v2442_v13 = vld [vmem:[#allocation2 + $0x141] sm:$0xff]  ;;  %v2196_v44 = vpack.c.bf16 %v2144_v4, %v2143_v61 }
 0x22c   : > { %v2580_v47 = vpop.f32.mrf.mxu3 }
 0x22d   : > { %v2656_v41 = vadd.f32 %v2580_v47, %v2358_v28  ;;  %v1846_v28 = vld [vmem:[#allocation2 + $0x13a] sm:$0xff]  ;;  %v1847_v47 = vld [vmem:[#allocation2 + $0x142] sm:$0xff] }
 0x22e   : > { %v2883_v1 = vpop.f32.mrf.mxu0 }
 0x22f   : > { %v2954_v36 = vadd.f32 %v2878_v62, %v2656_v41  ;;  %2324 = vmatmul.bf16.gmra.mxu2 %v4737_v24 }
 0x230   : > { %v1991_v45 = vpop.f32.mrf.mxu1 }
 0x231   : > { %v3816_v26 = vpack.c.bf16 %v2954_v36, %v2953_v49  ;;  %v3113_v15 = vadd.f32 %v3112_v57, %v2954_v36  ;;  %v3151_v23 = vmul.f32 %v2954_v36, %v2954_v36  ;;  %2622 = vmatmul.bf16.gmra.mxu3 %v4739_v38  ;;  %v2061_v49 = vadd.f32 %v1988_v10, %v4740_v55  ;;  %v2441_v57 = vld [vmem:[#allocation2 + $0x139] sm:$0xff] }
 0x232   : > { %v2285_v63 = vpop.f32.mrf.mxu2  ;;  %v2494_v39 = vpack.c.bf16 %v2442_v13, %v2441_v57  ;;  %v1898_v36 = vpack.c.bf16 %v1847_v47, %v1846_v28  ;;  %v2444_v55 = vld [vmem:[#allocation2 + $0x159] sm:$0xff] }
 0x233   : > { %3888 = vst [vmem:[%s4658_s19 + $0x8] sm:$0xff] %v3816_v26   ;;  %v3182_v7 = vadd.f32 %v3181_v30, %v3151_v23  ;;  %v2359_v42 = vadd.f32 %v2285_v63, %v2060_v2  ;;  %2030 = vmatmul.bf16.gmra.mxu1 %v1897_v40  ;;  %v4741_v26 = vld [vmem:[#allocation8_spill] sm:$0xff] }
 0x234   : > { %v2583_v0 = vpop.f32.mrf.mxu3 }
 0x235   : > { %v2657_v27 = vadd.f32 %v2583_v0, %v2359_v42  ;;  %v2145_v0 = vld [vmem:[#allocation2 + $0x150] sm:$0xff] }
 0x236   : > { %v2886_v21 = vpop.f32.mrf.mxu0 }
 0x237   : > { %v2955_v62 = vadd.f32 %v2881_v59, %v2657_v27 }
 0x238   : > { %v1993_v34 = vpop.f32.mrf.mxu1 }
 0x239   : > { %v3114_v11 = vadd.f32 %v3113_v15, %v2955_v62  ;;  %v3152_v43 = vmul.f32 %v2955_v62, %v2955_v62  ;;  %2925 = vmatmul.bf16.gmra.mxu0 %v4557_v54  ;;  %v2062_v15 = vadd.f32 %v1991_v45, %v4741_v26 }
 0x23a   : > { %v2287_v58 = vpop.f32.mrf.mxu2 }
 0x23b   : > { %v3183_v17 = vadd.f32 %v3182_v7, %v3152_v43  ;;  %v2360_v56 = vadd.f32 %v2287_v58, %v2061_v49  ;;  %v2443_v43 = vld [vmem:[#allocation2 + $0x151] sm:$0xff] }
 0x23c   : > { %v2585_v30 = vpop.f32.mrf.mxu3 }
 0x23d   : > { %v2658_v59 = vadd.f32 %v2585_v30, %v2360_v56  ;;  %v1849_v56 = vld [vmem:[#allocation2 + $0x15a] sm:$0xff] }
 0x23e   : > { %v2888_v3 = vpop.f32.mrf.mxu0 }
 0x23f   : > { %v2956_v41 = vadd.f32 %v2883_v1, %v2658_v59  ;;  %2329 = vmatmul.bf16.gmra.mxu2 %v2196_v44  ;;  %v2146_v1 = vld [vmem:[#allocation2 + $0x158] sm:$0xff]  ;;  %v2495_v44 = vpack.c.bf16 %v2444_v55, %v2443_v43  ;;  %v1850_v55 = vld [vmem:[#allocation2 + $0x16a] sm:$0xff] }
 0x240   : > { %v1996_v24 = vpop.f32.mrf.mxu1  ;;  %v2197_v57 = vpack.c.bf16 %v2146_v1, %v2145_v0 }
 0x241   : > { %v3821_v10 = vpack.c.bf16 %v2956_v41, %v2955_v62  ;;  %v3115_v40 = vadd.f32 %v3114_v11, %v2956_v41  ;;  %v3153_v54 = vmul.f32 %v2956_v41, %v2956_v41  ;;  %2627 = vmatmul.bf16.gmra.mxu3 %v2494_v39  ;;  %v4742_v62 = vld [vmem:[#allocation10_spill] sm:$0xff]  ;;  %v4743_v41 = vld [vmem:[#allocation11_spill] sm:$0xff] }
 0x242   : > { %v2290_v23 = vpop.f32.mrf.mxu2  ;;  %v2063_v11 = vadd.f32 %v1993_v34, %v4742_v62 }
 0x243   : > { %3889 = vst [vmem:[%s4658_s19 + $0x10] sm:$0xff] %v3821_v10   ;;  %v3184_v52 = vadd.f32 %v3183_v17, %v3153_v54  ;;  %v2361_v2 = vadd.f32 %v2290_v23, %v2062_v15  ;;  %2035 = vmatmul.bf16.gmra.mxu1 %v1898_v36  ;;  %v1848_v17 = vld [vmem:[#allocation2 + $0x152] sm:$0xff]  ;;  %v2064_v36 = vadd.f32 %v1996_v24, %v4743_v41 }
 0x244   : > { %v2588_v38 = vpop.f32.mrf.mxu3  ;;  %v1899_v47 = vpack.c.bf16 %v1849_v56, %v1848_v17 }
 0x245   : > { %v2659_v63 = vadd.f32 %v2588_v38, %v2361_v2  ;;  %v2147_v2 = vld [vmem:[#allocation2 + $0x168] sm:$0xff] }
 0x246   : > { %v2891_v7 = vpop.f32.mrf.mxu0 }
 0x247   : > { %v2957_v42 = vadd.f32 %v2886_v21, %v2659_v63 }
 0x248   : > { %v1998_v27 = vpop.f32.mrf.mxu1 }
 0x249   : > { %v3116_v61 = vadd.f32 %v3115_v40, %v2957_v42  ;;  %v3154_v4 = vmul.f32 %v2957_v42, %v2957_v42  ;;  %2930 = vmatmul.bf16.gmra.mxu0 %v4566_v51 }
 0x24a   : > { %v2292_v45 = vpop.f32.mrf.mxu2 }
 0x24b   : > { %v3185_v49 = vadd.f32 %v3184_v52, %v3154_v4  ;;  %v2362_v58 = vadd.f32 %v2292_v45, %v2063_v11  ;;  %v2446_v4 = vld [vmem:[#allocation2 + $0x171] sm:$0xff] }
 0x24c   : > { %v2590_v13 = vpop.f32.mrf.mxu3 }
 0x24d   : > { %v2660_v21 = vadd.f32 %v2590_v13, %v2362_v58 }
 0x24e   : > { %v2893_v30 = vpop.f32.mrf.mxu0 }
 0x24f   : > { %v2958_v28 = vadd.f32 %v2888_v3, %v2660_v21  ;;  %2334 = vmatmul.bf16.gmra.mxu2 %v2197_v57  ;;  %v2148_v3 = vld [vmem:[#allocation2 + $0x170] sm:$0xff] }
 0x250   : > { %v2001_v59 = vpop.f32.mrf.mxu1  ;;  %v2198_v45 = vpack.c.bf16 %v2148_v3, %v2147_v2  ;;  %v2447_v3 = vld [vmem:[#allocation2 + $0x181] sm:$0xff] }
 0x251   : > { %v3826_v34 = vpack.c.bf16 %v2958_v28, %v2957_v42  ;;  %v3117_v39 = vadd.f32 %v3116_v61, %v2958_v28  ;;  %v3155_v51 = vmul.f32 %v2958_v28, %v2958_v28  ;;  %2632 = vmatmul.bf16.gmra.mxu3 %v2495_v44  ;;  %v4744_v42 = vld [vmem:[#allocation12_spill] sm:$0xff]  ;;  %v2066_v44 = vadd.f32 %v2001_v59, %v4563_v53 }
 0x252   : > { %v2295_v10 = vpop.f32.mrf.mxu2  ;;  %v2065_v1 = vadd.f32 %v1998_v27, %v4744_v42  ;;  %v2445_v61 = vld [vmem:[#allocation2 + $0x169] sm:$0xff] }
 0x253   : > { %3890 = vst [vmem:[%s4658_s19 + $0x18] sm:$0xff] %v3826_v34   ;;  %v3186_v40 = vadd.f32 %v3185_v49, %v3155_v51  ;;  %v2363_v54 = vadd.f32 %v2295_v10, %v2064_v36  ;;  %2040 = vmatmul.bf16.gmra.mxu1 %v1899_v47  ;;  %v1851_v49 = vld [vmem:[#allocation2 + $0x172] sm:$0xff]  ;;  %v2496_v58 = vpack.c.bf16 %v2446_v4, %v2445_v61  ;;  %v2745_v47 = vld [vmem:[#allocation2 + $0x182] sm:$0xff]  ;;  %v2746_v34 = vld [vmem:[#allocation2 + $0x18a] sm:$0xff] }
 0x254   : > { %v2593_v26 = vpop.f32.mrf.mxu3  ;;  %v1900_v17 = vpack.c.bf16 %v1851_v49, %v1850_v55  ;;  %v2795_v10 = vpack.c.bf16 %v2746_v34, %v2745_v47  ;;  %v2747_v49 = vld [vmem:[#allocation2 + $0x19a] sm:$0xff] }
 0x255   : > { %v2661_v15 = vadd.f32 %v2593_v26, %v2363_v54  ;;  %v2149_v54 = vld [vmem:[#allocation2 + $0x180] sm:$0xff]  ;;  %v2150_v26 = vld [vmem:[#allocation2 + $0x188] sm:$0xff] }
 0x256   : > { %v2896_v23 = vpop.f32.mrf.mxu0 }
 0x257   : > { %v2959_v52 = vadd.f32 %v2891_v7, %v2661_v15 }
 0x258   : > { %v2003_v38 = vpop.f32.mrf.mxu1 }
 0x259   : > { %v3118_v63 = vadd.f32 %v3117_v39, %v2959_v52  ;;  %v3156_v0 = vmul.f32 %v2959_v52, %v2959_v52  ;;  %2935 = vmatmul.bf16.gmra.mxu0 %v4578_v19  ;;  %v2067_v53 = vadd.f32 %v2003_v38, %v4569_v6 }
 0x25a   : > { %v2297_v24 = vpop.f32.mrf.mxu2 }
 0x25b   : > { %v3187_v62 = vadd.f32 %v3186_v40, %v3156_v0  ;;  %v2364_v11 = vadd.f32 %v2297_v24, %v2065_v1  ;;  %v2199_v1 = vpack.c.bf16 %v2150_v26, %v2149_v54 }
 0x25c   : > { %v2595_v43 = vpop.f32.mrf.mxu3 }
 0x25d   : > { %v2662_v7 = vadd.f32 %v2595_v43, %v2364_v11 }
 0x25e   : > { %v2898_v57 = vpop.f32.mrf.mxu0 }
 0x25f   : > { %v2960_v13 = vadd.f32 %v2893_v30, %v2662_v7  ;;  %2339 = vmatmul.bf16.gmra.mxu2 %v2198_v45  ;;  %v2748_v7 = vld [vmem:[#allocation2 + $0x1a2] sm:$0xff] }
 0x260   : > { %v2006_v56 = vpop.f32.mrf.mxu1 }
 0x261   : > { %v3831_v27 = vpack.c.bf16 %v2960_v13, %v2959_v52  ;;  %v3119_v21 = vadd.f32 %v3118_v63, %v2960_v13  ;;  %v3157_v19 = vmul.f32 %v2960_v13, %v2960_v13  ;;  %2637 = vmatmul.bf16.gmra.mxu3 %v2496_v58  ;;  %v2448_v63 = vld [vmem:[#allocation2 + $0x189] sm:$0xff]  ;;  %v2068_v6 = vadd.f32 %v2006_v56, %v4575_v14  ;;  %v2449_v56 = vld [vmem:[#allocation2 + $0x199] sm:$0xff] }
 0x262   : > { %v2300_v28 = vpop.f32.mrf.mxu2  ;;  %v2497_v4 = vpack.c.bf16 %v2448_v63, %v2447_v3 }
 0x263   : > { %3891 = vst [vmem:[%s4658_s19 + $0x20] sm:$0xff] %v3831_v27   ;;  %v3188_v39 = vadd.f32 %v3187_v62, %v3157_v19  ;;  %v2365_v51 = vadd.f32 %v2300_v28, %v2066_v44  ;;  %2045 = vmatmul.bf16.gmra.mxu1 %v1900_v17 }
 0x264   : > { %v2598_v41 = vpop.f32.mrf.mxu3 }
 0x265   : > { %v2663_v36 = vadd.f32 %v2598_v41, %v2365_v51 }
 0x266   : > { %v2901_v30 = vpop.f32.mrf.mxu0 }
 0x267   : > { %v2961_v40 = vadd.f32 %v2896_v23, %v2663_v36  ;;  %v3936_v36 = vld [vmem:[#allocation2] sm:$0xff] }
 0x268   : > { %v2008_v15 = vpop.f32.mrf.mxu1 }
 0x269   : > { %v3120_v52 = vadd.f32 %v3119_v21, %v2961_v40  ;;  %v3158_v2 = vmul.f32 %v2961_v40, %v2961_v40  ;;  %2940 = vmatmul.bf16.gmra.mxu0 %v2795_v10  ;;  %v2796_v21 = vpack.c.bf16 %v2748_v7, %v2747_v49  ;;  %v2069_v34 = vadd.f32 %v2008_v15, %v4581_v8 }
 0x26a   : > { %v2302_v59 = vpop.f32.mrf.mxu2 }
 0x26b   : > { %v3189_v0 = vadd.f32 %v3188_v39, %v3158_v2  ;;  %v2366_v42 = vadd.f32 %v2302_v59, %v2067_v53  ;;  %v2450_v39 = vld [vmem:[#allocation2 + $0x1a1] sm:$0xff] }
 0x26c   : > { %v2600_v24 = vpop.f32.mrf.mxu3  ;;  %v2498_v26 = vpack.c.bf16 %v2450_v39, %v2449_v56 }
 0x26d   : > { %v2664_v61 = vadd.f32 %v2600_v24, %v2366_v42 }
 0x26e   : > { %v2903_v62 = vpop.f32.mrf.mxu0 }
 0x26f   : > { %v2962_v23 = vadd.f32 %v2898_v57, %v2664_v61  ;;  %2344 = vmatmul.bf16.gmra.mxu2 %v2199_v1 }
 0x270   : > { %v2011_v11 = vpop.f32.mrf.mxu1 }
 0x271   : > { %v3836_v45 = vpack.c.bf16 %v2962_v23, %v2961_v40  ;;  %v3121_v43 = vadd.f32 %v3120_v52, %v2962_v23  ;;  %v3159_v55 = vmul.f32 %v2962_v23, %v2962_v23  ;;  %2642 = vmatmul.bf16.gmra.mxu3 %v2497_v4  ;;  %v2200_v40 = vpack.c.bf16 %v3936_v36, %v3936_v36 }
 0x272   : > { %v2305_v38 = vpop.f32.mrf.mxu2  ;;  %v2070_v8 = vadd.f32 %v2011_v11, %v4585_v50 }
 0x273   : > { %3892 = vst [vmem:[%s4658_s19 + $0x28] sm:$0xff] %v3836_v45   ;;  %v3190_v58 = vadd.f32 %v3189_v0, %v3159_v55  ;;  %v2367_v13 = vadd.f32 %v2305_v38, %v2068_v6  ;;  %2050 = vmatmul.bf16.gmra.mxu1 %v2795_v10 }
 0x274   : > { %v2603_v17 = vpop.f32.mrf.mxu3 }
 0x275   : > { %v2665_v27 = vadd.f32 %v2603_v17, %v2367_v13 }
 0x276   : > { %v2906_v19 = vpop.f32.mrf.mxu0 }
 0x277   : > { %v2963_v57 = vadd.f32 %v2901_v30, %v2665_v27 }
 0x278   : > { %v2013_v44 = vpop.f32.mrf.mxu1 }
 0x279   : > { %v3122_v28 = vadd.f32 %v3121_v43, %v2963_v57  ;;  %v3160_v47 = vmul.f32 %v2963_v57, %v2963_v57  ;;  %2945 = vmatmul.bf16.gmra.mxu0 %v2796_v21  ;;  %v2071_v45 = vadd.f32 %v2013_v44, %v4589_v37 }
 0x27a   : > { %v2307_v14 = vpop.f32.mrf.mxu2 }
 0x27b   : > { %v3191_v51 = vadd.f32 %v3190_v58, %v3160_v47  ;;  %v2368_v41 = vadd.f32 %v2307_v14, %v2069_v34 }
 0x27c   : > { %v2605_v10 = vpop.f32.mrf.mxu3 }
 0x27d   : > { %v2666_v54 = vadd.f32 %v2605_v10, %v2368_v41 }
 0x27e   : > { %v2908_v52 = vpop.f32.mrf.mxu0 }
 0x27f   : > { %v2964_v2 = vadd.f32 %v2903_v62, %v2666_v54  ;;  %2349 = vmatmul.bf16.gmra.mxu2 %v2200_v40 }
 0x280   : > { %v2016_v30 = vpop.f32.mrf.mxu1 }
 0x281   : > { %v3841_v53 = vpack.c.bf16 %v2964_v2, %v2963_v57  ;;  %v3123_v59 = vadd.f32 %v3122_v28, %v2964_v2  ;;  %v3161_v3 = vmul.f32 %v2964_v2, %v2964_v2  ;;  %2647 = vmatmul.bf16.gmra.mxu3 %v2498_v26  ;;  %v2072_v27 = vadd.f32 %v2016_v30, %v4592_v9 }
 0x282   : > { %v2310_v15 = vpop.f32.mrf.mxu2 }
 0x283   : > { %3893 = vst [vmem:[%s4658_s19 + $0x30] sm:$0xff] %v3841_v53   ;;  %v3192_v63 = vadd.f32 %v3191_v51, %v3161_v3  ;;  %v2369_v0 = vadd.f32 %v2310_v15, %v2070_v8 }
 0x284   : > { %v2608_v42 = vpop.f32.mrf.mxu3 }
 0x285   : > { %v2667_v1 = vadd.f32 %v2608_v42, %v2369_v0 }
 0x286   : > { %v2911_v24 = vpop.f32.mrf.mxu0 }
 0x287   : > { %v2965_v61 = vadd.f32 %v2906_v19, %v2667_v1 }
 0x288   : > { %v2018_v4 = vpop.f32.mrf.mxu1 }
 0x289   : > { %v3124_v23 = vadd.f32 %v3123_v59, %v2965_v61  ;;  %v3162_v62 = vmul.f32 %v2965_v61, %v2965_v61  ;;  %v2073_v39 = vadd.f32 %v2018_v4, %v4596_v16 }
 0x28a   : > { %v2312_v43 = vpop.f32.mrf.mxu2 }
 0x28b   : > { %v3193_v55 = vadd.f32 %v3192_v63, %v3162_v62  ;;  %v2370_v6 = vadd.f32 %v2312_v43, %v2071_v45 }
 0x28c   : > { %v2610_v38 = vpop.f32.mrf.mxu3 }
 0x28d   : > { %v2668_v50 = vadd.f32 %v2610_v38, %v2370_v6 }
 0x28e   : > { %v2913_v11 = vpop.f32.mrf.mxu0 }
 0x28f   : > { %v2966_v49 = vadd.f32 %v2908_v52, %v2668_v50 }
 0x290   : > { %v2021_v7 = vpop.f32.mrf.mxu1 }
 0x291   : > { %v3846_v58 = vpack.c.bf16 %v2966_v49, %v2965_v61  ;;  %v3125_v13 = vadd.f32 %v3124_v23, %v2966_v49  ;;  %v3163_v17 = vmul.f32 %v2966_v49, %v2966_v49  ;;  %v2074_v53 = vadd.f32 %v2021_v7, %v4600_v5 }
 0x292   : > { %v2315_v21 = vpop.f32.mrf.mxu2 }
 0x293   : > { %3894 = vst [vmem:[%s4658_s19 + $0x38] sm:$0xff] %v3846_v58   ;;  %v3194_v19 = vadd.f32 %v3193_v55, %v3163_v17  ;;  %v2371_v57 = vadd.f32 %v2315_v21, %v2072_v27 }
 0x294   : > { %v2613_v28 = vpop.f32.mrf.mxu3 }
 0x295   : > { %v2669_v47 = vadd.f32 %v2613_v28, %v2371_v57 }
 0x296   : > { %v2916_v37 = vpop.f32.mrf.mxu0 }
 0x297   : > { %v2967_v44 = vadd.f32 %v2911_v24, %v2669_v47 }
 0x298   : > { %v2023_v34 = vpop.f32.mrf.mxu1 }
 0x299   : > { %v3126_v14 = vadd.f32 %v3125_v13, %v2967_v44  ;;  %v3164_v56 = vmul.f32 %v2967_v44, %v2967_v44  ;;  %v2075_v61 = vadd.f32 %v2023_v34, %v4604_v25 }
 0x29a   : > { %v2317_v51 = vpop.f32.mrf.mxu2 }
 0x29b   : > { %v3195_v41 = vadd.f32 %v3194_v19, %v3164_v56  ;;  %v2372_v36 = vadd.f32 %v2317_v51, %v2073_v39 }
 0x29c   : > { %v2615_v40 = vpop.f32.mrf.mxu3 }
 0x29d   : > { %v2670_v10 = vadd.f32 %v2615_v40, %v2372_v36 }
 0x29e   : > { %v2918_v9 = vpop.f32.mrf.mxu0 }
 0x29f   : > { %v2968_v54 = vadd.f32 %v2913_v11, %v2670_v10 }
 0x2a0   : > { %v2026_v26 = vpop.f32.mrf.mxu1 }
 0x2a1   : > { %v3851_v52 = vpack.c.bf16 %v2968_v54, %v2967_v44  ;;  %v3127_v2 = vadd.f32 %v3126_v14, %v2968_v54  ;;  %v3165_v30 = vmul.f32 %v2968_v54, %v2968_v54  ;;  %v2076_v49 = vadd.f32 %v2026_v26, %v4607_v12 }
 0x2a2   : > { %v2320_v59 = vpop.f32.mrf.mxu2 }
 0x2a3   : > { %3895 = vst [vmem:[%s4658_s19 + $0x40] sm:$0xff] %v3851_v52   ;;  %v3196_v3 = vadd.f32 %v3195_v41, %v3165_v30  ;;  %v2373_v8 = vadd.f32 %v2320_v59, %v2074_v53 }
 0x2a4   : > { %v2618_v15 = vpop.f32.mrf.mxu3 }
 0x2a5   : > { %v2671_v63 = vadd.f32 %v2618_v15, %v2373_v8 }
 0x2a6   : > { %v2921_v16 = vpop.f32.mrf.mxu0 }
 0x2a7   : > { %v2969_v0 = vadd.f32 %v2916_v37, %v2671_v63 }
 0x2a8   : > { %v2028_v42 = vpop.f32.mrf.mxu1 }
 0x2a9   : > { %v3128_v1 = vadd.f32 %v3127_v2, %v2969_v0  ;;  %v3166_v24 = vmul.f32 %v2969_v0, %v2969_v0  ;;  %v2077_v47 = vadd.f32 %v2028_v42, %v4611_v35 }
 0x2aa   : > { %v2322_v4 = vpop.f32.mrf.mxu2 }
 0x2ab   : > { %v3197_v23 = vadd.f32 %v3196_v3, %v3166_v24  ;;  %v2374_v62 = vadd.f32 %v2322_v4, %v2075_v61 }
 0x2ac   : > { %v2620_v45 = vpop.f32.mrf.mxu3 }
 0x2ad   : > { %v2672_v43 = vadd.f32 %v2620_v45, %v2374_v62 }
 0x2ae   : > { %v2923_v5 = vpop.f32.mrf.mxu0 }
 0x2af   : > { %v2970_v55 = vadd.f32 %v2918_v9, %v2672_v43 }
 0x2b0   : > { %v2031_v6 = vpop.f32.mrf.mxu1 }
 0x2b1   : > { %v3856_v38 = vpack.c.bf16 %v2970_v55, %v2969_v0  ;;  %v3129_v50 = vadd.f32 %v3128_v1, %v2970_v55  ;;  %v3167_v11 = vmul.f32 %v2970_v55, %v2970_v55  ;;  %v2078_v10 = vadd.f32 %v2031_v6, %v4614_v33 }
 0x2b2   : > { %v2325_v7 = vpop.f32.mrf.mxu2 }
 0x2b3   : > { %3896 = vst [vmem:[%s4658_s19 + $0x48] sm:$0xff] %v3856_v38   ;;  %v3198_v58 = vadd.f32 %v3197_v23, %v3167_v11  ;;  %v2375_v13 = vadd.f32 %v2325_v7, %v2076_v49 }
 0x2b4   : > { %v2623_v17 = vpop.f32.mrf.mxu3 }
 0x2b5   : > { %v2673_v27 = vadd.f32 %v2623_v17, %v2375_v13 }
 0x2b6   : > { %v2926_v25 = vpop.f32.mrf.mxu0 }
 0x2b7   : > { %v2971_v21 = vadd.f32 %v2921_v16, %v2673_v27 }
 0x2b8   : > { %v2033_v19 = vpop.f32.mrf.mxu1 }
 0x2b9   : > { %v3130_v57 = vadd.f32 %v3129_v50, %v2971_v21  ;;  %v3168_v28 = vmul.f32 %v2971_v21, %v2971_v21  ;;  %v2079_v3 = vadd.f32 %v2033_v19, %v4618_v60 }
 0x2ba   : > { %v2327_v37 = vpop.f32.mrf.mxu2 }
 0x2bb   : > { %v3199_v44 = vadd.f32 %v3198_v58, %v3168_v28  ;;  %v2376_v34 = vadd.f32 %v2327_v37, %v2077_v47 }
 0x2bc   : > { %v2625_v14 = vpop.f32.mrf.mxu3 }
 0x2bd   : > { %v2674_v56 = vadd.f32 %v2625_v14, %v2376_v34 }
 0x2be   : > { %v2928_v12 = vpop.f32.mrf.mxu0 }
 0x2bf   : > { %v2972_v39 = vadd.f32 %v2923_v5, %v2674_v56 }
 0x2c0   : > { %v2036_v51 = vpop.f32.mrf.mxu1 }
 0x2c1   : > { %v3861_v41 = vpack.c.bf16 %v2972_v39, %v2971_v21  ;;  %v3131_v36 = vadd.f32 %v3130_v57, %v2972_v39  ;;  %v3169_v40 = vmul.f32 %v2972_v39, %v2972_v39  ;;  %v2080_v4 = vadd.f32 %v2036_v51, %v4621_v29 }
 0x2c2   : > { %v2330_v9 = vpop.f32.mrf.mxu2 }
 0x2c3   : > { %3897 = vst [vmem:[%s4658_s19 + $0x50] sm:$0xff] %v3861_v41   ;;  %v3200_v54 = vadd.f32 %v3199_v44, %v3169_v40  ;;  %v2377_v26 = vadd.f32 %v2330_v9, %v2078_v10 }
 0x2c4   : > { %v2628_v52 = vpop.f32.mrf.mxu3 }
 0x2c5   : > { %v2675_v2 = vadd.f32 %v2628_v52, %v2377_v26 }
 0x2c6   : > { %v2931_v30 = vpop.f32.mrf.mxu0 }
 0x2c7   : > { %v2973_v35 = vadd.f32 %v2926_v25, %v2675_v2 }
 0x2c8   : > { %v2038_v15 = vpop.f32.mrf.mxu1 }
 0x2c9   : > { %v3132_v53 = vadd.f32 %v3131_v36, %v2973_v35  ;;  %v3170_v59 = vmul.f32 %v2973_v35, %v2973_v35  ;;  %v2081_v11 = vadd.f32 %v2038_v15, %v4625_v18 }
 0x2ca   : > { %v2332_v8 = vpop.f32.mrf.mxu2 }
 0x2cb   : > { %v3201_v63 = vadd.f32 %v3200_v54, %v3170_v59  ;;  %v2378_v16 = vadd.f32 %v2332_v8, %v2079_v3 }
 0x2cc   : > { %v2630_v0 = vpop.f32.mrf.mxu3 }
 0x2cd   : > { %v2676_v42 = vadd.f32 %v2630_v0, %v2378_v16 }
 0x2ce   : > { %v2933_v62 = vpop.f32.mrf.mxu0 }
 0x2cf   : > { %v2974_v33 = vadd.f32 %v2928_v12, %v2676_v42 }
 0x2d0   : > { %v2041_v55 = vpop.f32.mrf.mxu1 }
 0x2d1   : > { %v3866_v1 = vpack.c.bf16 %v2974_v33, %v2973_v35  ;;  %v3133_v24 = vadd.f32 %v3132_v53, %v2974_v33  ;;  %v3171_v61 = vmul.f32 %v2974_v33, %v2974_v33  ;;  %v2082_v28 = vadd.f32 %v2041_v55, %v4629_v48 }
 0x2d2   : > { %v2335_v23 = vpop.f32.mrf.mxu2 }
 0x2d3   : > { %3898 = vst [vmem:[%s4658_s19 + $0x58] sm:$0xff] %v3866_v1   ;;  %v3202_v45 = vadd.f32 %v3201_v63, %v3171_v61  ;;  %v2379_v43 = vadd.f32 %v2335_v23, %v2080_v4 }
 0x2d4   : > { %v2633_v5 = vpop.f32.mrf.mxu3 }
 0x2d5   : > { %v2677_v60 = vadd.f32 %v2633_v5, %v2379_v43 }
 0x2d6   : > { %v2936_v17 = vpop.f32.mrf.mxu0 }
 0x2d7   : > { %v2975_v6 = vadd.f32 %v2931_v30, %v2677_v60 }
 0x2d8   : > { %v2043_v27 = vpop.f32.mrf.mxu1 }
 0x2d9   : > { %v3134_v38 = vadd.f32 %v3133_v24, %v2975_v6  ;;  %v3172_v50 = vmul.f32 %v2975_v6, %v2975_v6  ;;  %v2083_v41 = vadd.f32 %v2043_v27, %v4633_v31 }
 0x2da   : > { %v2337_v49 = vpop.f32.mrf.mxu2 }
 0x2db   : > { %v3203_v7 = vadd.f32 %v3202_v45, %v3172_v50  ;;  %v2380_v58 = vadd.f32 %v2337_v49, %v2081_v11 }
 0x2dc   : > { %v2635_v13 = vpop.f32.mrf.mxu3 }
 0x2dd   : > { %v2678_v29 = vadd.f32 %v2635_v13, %v2380_v58 }
 0x2de   : > { %v2938_v18 = vpop.f32.mrf.mxu0 }
 0x2df   : > { %v2976_v25 = vadd.f32 %v2933_v62, %v2678_v29 }
 0x2e0   : > { %v2046_v12 = vpop.f32.mrf.mxu1 }
 0x2e1   : > { %v3871_v21 = vpack.c.bf16 %v2976_v25, %v2975_v6  ;;  %v3135_v19 = vadd.f32 %v3134_v38, %v2976_v25  ;;  %v3173_v57 = vmul.f32 %v2976_v25, %v2976_v25  ;;  %v2084_v30 = vadd.f32 %v2046_v12, %v4636_v20 }
 0x2e2   : > { %v2340_v47 = vpop.f32.mrf.mxu2 }
 0x2e3   : > { %3899 = vst [vmem:[%s4658_s19 + $0x60] sm:$0xff] %v3871_v21   ;;  %v3204_v37 = vadd.f32 %v3203_v7, %v3173_v57  ;;  %v2381_v44 = vadd.f32 %v2340_v47, %v2082_v28 }
 0x2e4   : > { %v2638_v34 = vpop.f32.mrf.mxu3 }
 0x2e5   : > { %v2679_v14 = vadd.f32 %v2638_v34, %v2381_v44 }
 0x2e6   : > { %v2941_v26 = vpop.f32.mrf.mxu0 }
 0x2e7   : > { %v2977_v56 = vadd.f32 %v2936_v17, %v2679_v14 }
 0x2e8   : > { %v2048_v59 = vpop.f32.mrf.mxu1 }
 0x2e9   : > { %v3136_v39 = vadd.f32 %v3135_v19, %v2977_v56  ;;  %v3174_v51 = vmul.f32 %v2977_v56, %v2977_v56  ;;  %v2085_v42 = vadd.f32 %v2048_v59, %v4640_v32 }
 0x2ea   : > { %v2342_v36 = vpop.f32.mrf.mxu2 }
 0x2eb   : > { %v3205_v40 = vadd.f32 %v3204_v37, %v3174_v51  ;;  %v2382_v10 = vadd.f32 %v2342_v36, %v2083_v41 }
 0x2ec   : > { %v2640_v9 = vpop.f32.mrf.mxu3 }
 0x2ed   : > { %v2680_v54 = vadd.f32 %v2640_v9, %v2382_v10 }
 0x2ee   : > { %v2943_v33 = vpop.f32.mrf.mxu0 }
 0x2ef   : > { %v2978_v48 = vadd.f32 %v2938_v18, %v2680_v54 }
 0x2f0   : > { %v2051_v23 = vpop.f32.mrf.mxu1 }
 0x2f1   : > { %v3876_v52 = vpack.c.bf16 %v2978_v48, %v2977_v56  ;;  %v3137_v2 = vadd.f32 %v3136_v39, %v2978_v48  ;;  %v3175_v35 = vmul.f32 %v2978_v48, %v2978_v48  ;;  %v2086_v55 = vadd.f32 %v2051_v23, %v4644_v22 }
 0x2f2   : > { %v2345_v53 = vpop.f32.mrf.mxu2 }
 0x2f3   : > { %3900 = vst [vmem:[%s4658_s19 + $0x68] sm:$0xff] %v3876_v52   ;;  %v3206_v3 = vadd.f32 %v3205_v40, %v3175_v35  ;;  %v2383_v8 = vadd.f32 %v2345_v53, %v2084_v30 }
 0x2f4   : > { %v2643_v15 = vpop.f32.mrf.mxu3 }
 0x2f5   : > { %v2681_v63 = vadd.f32 %v2643_v15, %v2383_v8 }
 0x2f6   : > { %v2946_v50 = vpop.f32.mrf.mxu0 }
 0x2f7   : > { %v2979_v31 = vadd.f32 %v2941_v26, %v2681_v63 }
 0x2f8   : > { %v2053_v49 = vpop.f32.mrf.mxu1 }
 0x2f9   : > { %v3138_v16 = vadd.f32 %v3137_v2, %v2979_v31  ;;  %v3176_v0 = vmul.f32 %v2979_v31, %v2979_v31  ;;  %v2087_v17 = vadd.f32 %v2053_v49, %v4648_v46 }
 0x2fa   : > { %v2347_v1 = vpop.f32.mrf.mxu2 }
 0x2fb   : > { %v3207_v24 = vadd.f32 %v3206_v3, %v3176_v0  ;;  %v2384_v61 = vadd.f32 %v2347_v1, %v2085_v42 }
 0x2fc   : > { %v2645_v4 = vpop.f32.mrf.mxu3 }
 0x2fd   : > { %v2682_v20 = vadd.f32 %v2645_v4, %v2384_v61 }
 0x2fe   : > { %v2948_v22 = vpop.f32.mrf.mxu0 }
 0x2ff   : > { %v2980_v62 = vadd.f32 %v2943_v33, %v2682_v20 }
 0x301   : > { %v3881_v45 = vpack.c.bf16 %v2980_v62, %v2979_v31  ;;  %v3139_v43 = vadd.f32 %v3138_v16, %v2980_v62  ;;  %v3177_v5 = vmul.f32 %v2980_v62, %v2980_v62 }
 0x302   : > { %v2350_v60 = vpop.f32.mrf.mxu2 }
 0x303   : > { %3901 = vst [vmem:[%s4658_s19 + $0x70] sm:$0xff] %v3881_v45   ;;  %v3208_v6 = vadd.f32 %v3207_v24, %v3177_v5  ;;  %v2385_v38 = vadd.f32 %v2350_v60, %v2086_v55 }
 0x304   : > { %v2648_v11 = vpop.f32.mrf.mxu3 }
 0x305   : > { %v2683_v32 = vadd.f32 %v2648_v11, %v2385_v38 }
 0x307   : > { %v2981_v7 = vadd.f32 %v2946_v50, %v2683_v32 }
 0x309   : > { %v3140_v58 = vadd.f32 %v3139_v43, %v2981_v7  ;;  %v3178_v13 = vmul.f32 %v2981_v7, %v2981_v7 }
 0x30a   : > { %v2352_v29 = vpop.f32.mrf.mxu2 }
 0x30b   : > { %v3209_v27 = vadd.f32 %v3208_v6, %v3178_v13  ;;  %v2386_v25 = vadd.f32 %v2352_v29, %v2087_v17 }
 0x30c   : > { %v2650_v21 = vpop.f32.mrf.mxu3 }
 0x30d   : > { %v2684_v19 = vadd.f32 %v2650_v21, %v2386_v25 }
 0x30f   : > { %v2982_v57 = vadd.f32 %v2948_v22, %v2684_v19 }
 0x311   : > { %v3886_v28 = vpack.c.bf16 %v2982_v57, %v2981_v7  ;;  %v3141_v47 = vadd.f32 %v3140_v58, %v2982_v57  ;;  %v3179_v37 = vmul.f32 %v2982_v57, %v2982_v57 }
 0x313   : > { %3902 = vst [vmem:[%s4658_s19 + $0x78] sm:$0xff] %v3886_v28   ;;  %v3142_v44 = vrot.slane %v3141_v47, 4  ;;  %v3210_v34 = vadd.f32 %v3209_v27, %v3179_v37 }
 0x315   : > { %v3143_v14 = vadd.f32 %v3142_v44, %v3141_v47  ;;  %v3211_v18 = vrot.slane %v3210_v34, 4 }
 0x317   : > { %v3144_v56 = vrot.slane %v3143_v14, 2  ;;  %v3212_v12 = vadd.f32 %v3211_v18, %v3210_v34 }
 0x319   : > { %v3145_v39 = vadd.f32 %v3144_v56, %v3143_v14  ;;  %v3213_v46 = vrot.slane %v3212_v12, 2 }
 0x31b   : > { %v3146_v51 = vrot.slane %v3145_v39, 1  ;;  %v3214_v41 = vadd.f32 %v3213_v46, %v3212_v12 }
 0x31d   : > { %v3215_v36 = vrot.slane %v3214_v41, 1  ;;  %v3147_v40 = vadd.f32 %v3146_v51, %v3145_v39 }
 0x31f   : > { %v3216_v10 = vadd.f32 %v3215_v36, %v3214_v41 }
 0x321   : > { %v3218_v9 = vsel %vm3217_vm0, %v3147_v40, %v3216_v10 }
 0x322   : > { %3219 = vst [vmem:[%s181_s24] sm:$0x3] %v3218_v9 }
 0x323 PF: > { %s14_s12 = sadd.s32 1, %s3943_s12  }
 0x324   : > { %p11_p4 = scmp.ge.s32.totalorder %s14_s12, 4  }
 0x326   :  { %13 = sbr.rel (!%p11_p4) target bundleno = 1 (0x1), region = 80 }

</bundles_post_ra>
